<compile_context>
chip_gen: v5e
topology: v5e:2x2
jax: 0.10.0
libtpu: 0.0.40
codegen_flags: <defaults>
</compile_context>

<pallas_src>
import numpy as np
import jax
import jax.numpy as jnp
from jax.experimental import pallas as pl
from jax.experimental.pallas import tpu as pltpu

# ----- model hyper-parameters (from the PyTorch module) -----
B = 2              # batch
S = 8              # sequence length (small demo size; tutorial uses 50)
D = 32             # d_model
N_HEADS = 4
HEAD_DIM = D // N_HEADS
FF = 64            # FFN hidden
N_LAYERS = 3
PAD = 0            # <PAD> token id used to build masks
EPS = 1e-5         # torch.nn.LayerNorm default eps
NEG = -1e9         # finite large-negative additive mask (no NaN on fully-masked rows)


# ---------------------------------------------------------------------------
# fused Pallas kernel (one grid step = one batch element, all 3 layers)
# ---------------------------------------------------------------------------
def _norm(x):
    """Parameter-free LayerNorm core; the affine (gamma, beta) is folded into the
    Linear layer that consumes the result (see fold_params)."""
    mu = jnp.mean(x, axis=-1, keepdims=True)
    xc = x - mu
    var = jnp.mean(xc * xc, axis=-1, keepdims=True)
    return xc * jax.lax.rsqrt(var + EPS)


def _attention(Q, K, V, mask_add, wo, bo, residual):
    """Masked softmax attention.  1/sqrt(HEAD_DIM) is pre-folded into Wq; the mask is
    additive; the output projection is accumulated per head (no concat); the residual
    and output bias are added once."""
    acc = residual + bo                                    # (S, D)
    for h in range(N_HEADS):                               # static unroll over heads
        lo = h * HEAD_DIM
        qh = Q[:, lo:lo + HEAD_DIM]                        # (S, HEAD_DIM)
        kh = K[:, lo:lo + HEAD_DIM]
        vh = V[:, lo:lo + HEAD_DIM]
        # qh @ kh.T without an explicit transpose
        s = jax.lax.dot_general(qh, kh, (((1,), (1,)), ((), ())),
                                preferred_element_type=jnp.float32)
        s = s + mask_add                                   # additive mask (0 / -1e9)
        p = jnp.exp(s - jnp.max(s, axis=-1, keepdims=True))
        p = p * pl.reciprocal(jnp.sum(p, axis=-1, keepdims=True), approx=True)
        ctx = jnp.dot(p, vh, preferred_element_type=jnp.float32)      # (S, HEAD_DIM)
        acc = acc + jnp.dot(ctx, wo[lo:lo + HEAD_DIM, :],             # fold out-proj
                            preferred_element_type=jnp.float32)
    return acc


def decoder_kernel(x_ref, y_ref, pad_ref, tril_ref,
                   m1_wqkv, m1_bqkv, m1_wo, m1_bo,
                   m2_wq, m2_bq, m2_wkv, m2_bkv, m2_wo, m2_bo,
                   fc_w1, fc_b1, fc_w2, fc_b2,
                   o_ref):
    x = x_ref[0]                    # (S, D)  encoder output (constant across layers)
    y = y_ref[0]                    # (S, D)  decoder stream
    pad_add = pad_ref[0, 0]         # (S, S)  additive masks
    tril_add = tril_ref[0, 0]

    # encoder stream normalized ONCE: the per-layer norm affine is folded into Wkv.
    xhat = _norm(x)

    for i in range(N_LAYERS):       # static unroll; weights indexed per layer
        # --- mh1: masked self-attention (single norm reused for Q/K/V; fused QKV) ---
        yn = _norm(y)
        qkv = jnp.dot(yn, m1_wqkv[i], preferred_element_type=jnp.float32) + m1_bqkv[i]
        y = _attention(qkv[:, :D], qkv[:, D:2 * D], qkv[:, 2 * D:],
                       tril_add, m1_wo[i], m1_bo[i], y)

        # --- mh2: cross-attention (Q from y, K/V from encoder output x) ---
        q = jnp.dot(_norm(y), m2_wq[i], preferred_element_type=jnp.float32) + m2_bq[i]
        kv = jnp.dot(xhat, m2_wkv[i], preferred_element_type=jnp.float32) + m2_bkv[i]
        y = _attention(q, kv[:, :D], kv[:, D:],
                       pad_add, m2_wo[i], m2_bo[i], y)

        # --- FullyConnectedOutput: norm -> Linear(32,64) -> ReLU -> Linear(64,32) -> resid ---
        h = jnp.dot(_norm(y), fc_w1[i], preferred_element_type=jnp.float32) + fc_b1[i]
        h = jnp.maximum(h, 0.0)
        y = y + jnp.dot(h, fc_w2[i], preferred_element_type=jnp.float32) + fc_b2[i]

    o_ref[0] = y


# ---------------------------------------------------------------------------
# wrapper: single pallas_call, grid over batch, "parallel" semantics (v7x 2-TC)
# ---------------------------------------------------------------------------
def decoder_forward(params, x, y, mask_pad_x, mask_tril_y):
    # precompute additive masks (0.0 keep / -1e9 masked)
    pad_add = mask_pad_x.astype(jnp.float32) * NEG
    tril_add = mask_tril_y.astype(jnp.float32) * NEG

    seq_spec = pl.BlockSpec((1, S, D), lambda b: (b, 0, 0))
    msk_spec = pl.BlockSpec((1, 1, S, S), lambda b: (b, 0, 0, 0))

    def full_spec(shape):
        n = len(shape)
        return pl.BlockSpec(shape, lambda b, _n=n: (0,) * _n)

    p = params
    w_args = (
        p["mh1"]["wqkv"], p["mh1"]["bqkv"], p["mh1"]["wo"], p["mh1"]["bo"],
        p["mh2"]["wq"], p["mh2"]["bq"], p["mh2"]["wkv"], p["mh2"]["bkv"],
        p["mh2"]["wo"], p["mh2"]["bo"],
        p["fc"]["w1"], p["fc"]["b1"], p["fc"]["w2"], p["fc"]["b2"],
    )
    in_specs = [seq_spec, seq_spec, msk_spec, msk_spec] + \
               [full_spec(tuple(w.shape)) for w in w_args]

    return pl.pallas_call(
        decoder_kernel,
        out_shape=jax.ShapeDtypeStruct((B, S, D), jnp.float32),
        grid=(B,),
        in_specs=in_specs,
        out_specs=pl.BlockSpec((1, S, D), lambda b: (b, 0, 0)),
        compiler_params=pltpu.CompilerParams(dimension_semantics=("parallel",)),
    )(x, y, pad_add, tril_add, *w_args)


# ---------------------------------------------------------------------------
# masks (plain-JAX glue, matches the PyTorch tutorial mask builders)
# ---------------------------------------------------------------------------
def mask_pad(x_tok):
    m = (x_tok == PAD)                                            # (B, S) key padding
    return jnp.broadcast_to(m[:, None, None, :], (B, 1, S, S)).astype(jnp.float32)


def mask_tril(y_tok):
    tril = 1 - jnp.tril(jnp.ones((S, S), jnp.int32))              # strict upper triangle
    m = (y_tok == PAD).astype(jnp.int32)[:, None, :]              # (B, 1, S)
    m = (m + tril[None]) > 0                                      # (B, S, S)
    return m.astype(jnp.float32)[:, None]                         # (B, 1, S, S)


# ---------------------------------------------------------------------------
# parameter init (PyTorch-style "raw" params) + fold into the kernel layout
# ---------------------------------------------------------------------------
def _linear_params(key, din, dout):
    k1, k2 = jax.random.split(key)
    lim = 1.0 / np.sqrt(din)                                      # nn.Linear-style init
    w = jax.random.uniform(k1, (din, dout), jnp.float32, -lim, lim)   # stored as (in, out)
    b = jax.random.uniform(k2, (1, dout), jnp.float32, -lim, lim)
    return w, b


def init_raw_params(key):
    def mh(k):
        ks = jax.random.split(k, 4)
        wq, bq = _linear_params(ks[0], D, D)
        wk, bk = _linear_params(ks[1], D, D)
        wv, bv = _linear_params(ks[2], D, D)
        wo, bo = _linear_params(ks[3], D, D)
        return {"ln_g": jnp.ones((D,), jnp.float32), "ln_b": jnp.zeros((D,), jnp.float32),
                "wq": wq, "bq": bq, "wk": wk, "bk": bk, "wv": wv, "bv": bv,
                "wo": wo, "bo": bo}

    def ffn(k):
        ks = jax.random.split(k, 2)
        w1, b1 = _linear_params(ks[0], D, FF)
        w2, b2 = _linear_params(ks[1], FF, D)
        return {"ln_g": jnp.ones((D,), jnp.float32), "ln_b": jnp.zeros((D,), jnp.float32),
                "w1": w1, "b1": b1, "w2": w2, "b2": b2}

    keys = jax.random.split(key, 3 * N_LAYERS)
    return [{"mh1": mh(keys[3 * l]), "mh2": mh(keys[3 * l + 1]), "fc": ffn(keys[3 * l + 2])}
            for l in range(N_LAYERS)]


def fold_params(raw):
    """Fold LayerNorm affine into the following Linear, the softmax 1/sqrt(HEAD_DIM)
    into Wq/bq, and stack all 3 layers along a leading (N_LAYERS,) axis."""
    scale = 1.0 / (HEAD_DIM ** 0.5)

    def fold(g, b, w, bias):
        # LN(x) @ W + bias = xhat @ (g[:,None]*W) + (b @ W + bias)
        return g[:, None] * w, b[None, :] @ w + bias

    layers = []
    for lyr in raw:
        m1, m2, fc = lyr["mh1"], lyr["mh2"], lyr["fc"]

        wq, bq = fold(m1["ln_g"], m1["ln_b"], m1["wq"] * scale, m1["bq"] * scale)
        wk, bk = fold(m1["ln_g"], m1["ln_b"], m1["wk"], m1["bk"])
        wv, bv = fold(m1["ln_g"], m1["ln_b"], m1["wv"], m1["bv"])
        m1p = {"wqkv": jnp.concatenate([wq, wk, wv], axis=1),     # (D, 3D)
               "bqkv": jnp.concatenate([bq, bk, bv], axis=1),     # (1, 3D)
               "wo": m1["wo"], "bo": m1["bo"]}

        wq, bq = fold(m2["ln_g"], m2["ln_b"], m2["wq"] * scale, m2["bq"] * scale)
        wk, bk = fold(m2["ln_g"], m2["ln_b"], m2["wk"], m2["bk"])
        wv, bv = fold(m2["ln_g"], m2["ln_b"], m2["wv"], m2["bv"])
        m2p = {"wq": wq, "bq": bq,
               "wkv": jnp.concatenate([wk, wv], axis=1),          # (D, 2D)
               "bkv": jnp.concatenate([bk, bv], axis=1),          # (1, 2D)
               "wo": m2["wo"], "bo": m2["bo"]}

        w1, b1 = fold(fc["ln_g"], fc["ln_b"], fc["w1"], fc["b1"])
        fcp = {"w1": w1, "b1": b1, "w2": fc["w2"], "b2": fc["b2"]}

        layers.append({"mh1": m1p, "mh2": m2p, "fc": fcp})

    return jax.tree_util.tree_map(lambda *xs: jnp.stack(xs, axis=0), *layers)


# ---------------------------------------------------------------------------
# pure-JAX reference (mirrors the PyTorch forward with the raw, un-folded params)
# ---------------------------------------------------------------------------
def reference_decoder(raw, x, y, mask_pad_x, mask_tril_y):
    def layernorm(v, g, b):
        mu = v.mean(-1, keepdims=True)
        var = ((v - mu) ** 2).mean(-1, keepdims=True)
        return (v - mu) / jnp.sqrt(var + EPS) * g + b

    def multihead(p, Q, K, V, mask):
        bsz = Q.shape[0]
        clone_q = Q
        Qn = layernorm(Q, p["ln_g"], p["ln_b"])
        Kn = layernorm(K, p["ln_g"], p["ln_b"])
        Vn = layernorm(V, p["ln_g"], p["ln_b"])
        q = Qn @ p["wq"] + p["bq"]
        k = Kn @ p["wk"] + p["bk"]
        v = Vn @ p["wv"] + p["bv"]
        q = q.reshape(bsz, S, N_HEADS, HEAD_DIM).transpose(0, 2, 1, 3)
        k = k.reshape(bsz, S, N_HEADS, HEAD_DIM).transpose(0, 2, 1, 3)
        v = v.reshape(bsz, S, N_HEADS, HEAD_DIM).transpose(0, 2, 1, 3)
        score = jnp.einsum("bhqd,bhkd->bhqk", q, k) / (HEAD_DIM ** 0.5)
        score = jnp.where(mask.astype(bool), NEG, score)
        prob = jax.nn.softmax(score, axis=-1)
        ctx = jnp.einsum("bhqk,bhkd->bhqd", prob, v)
        ctx = ctx.transpose(0, 2, 1, 3).reshape(bsz, S, D)
        return clone_q + ctx @ p["wo"] + p["bo"]

    def ffn(p, v):
        vn = layernorm(v, p["ln_g"], p["ln_b"])
        h = jnp.maximum(vn @ p["w1"] + p["b1"], 0.0)
        return v + h @ p["w2"] + p["b2"]

    for lyr in raw:
        y = multihead(lyr["mh1"], y, y, y, mask_tril_y)
        y = multihead(lyr["mh2"], y, x, x, mask_pad_x)
        y = ffn(lyr["fc"], y)
    return y


# TODO(synk): Dropout(p=0.1) layers (inside MultiHead and FullyConnectedOutput) are
# implemented as identity (eval/inference mode).

if __name__ == "__main__":
    key = jax.random.PRNGKey(0)
    kp, kx, ky, ktx, kty = jax.random.split(key, 5)

    raw_params = init_raw_params(kp)
    params = fold_params(raw_params)

    # Decoder inputs: encoder output x, decoder stream y, plus the two masks
    x = jax.random.normal(kx, (B, S, D), jnp.float32)
    y = jax.random.normal(ky, (B, S, D), jnp.float32)
    x_tok = jax.random.randint(ktx, (B, S), 1, 30, dtype=jnp.int32).at[:, -2:].set(PAD)
    y_tok = jax.random.randint(kty, (B, S), 1, 30, dtype=jnp.int32).at[:, -1:].set(PAD)
    mask_pad_x = mask_pad(x_tok)        # (B, 1, S, S), 1.0 = masked
    mask_tril_y = mask_tril(y_tok)

    fwd = jax.jit(decoder_forward)
    out = fwd(params, x, y, mask_pad_x, mask_tril_y)
    jax.block_until_ready(out)

    ref = reference_decoder(raw_params, x, y, mask_pad_x, mask_tril_y)
    jax.block_until_ready(ref)

    assert out.shape == (B, S, D) and out.dtype == jnp.float32
    assert bool(jnp.all(jnp.isfinite(out)))
    np.testing.assert_allclose(np.asarray(out), np.asarray(ref), atol=5e-2, rtol=5e-2)
    print("KERNEL_OK")
</pallas_src>

<mosaic_0001>
module attributes {stable_mosaic.version = 11 : i64} {
  func.func @decoder_kernel(%arg0: i32, %arg1: memref<1x8x32xf32, #tpu.memory_space<vmem>>, %arg2: memref<1x8x32xf32, #tpu.memory_space<vmem>>, %arg3: memref<1x1x8x8xf32, #tpu.memory_space<vmem>>, %arg4: memref<1x1x8x8xf32, #tpu.memory_space<vmem>>, %arg5: memref<3x32x96xf32, #tpu.memory_space<vmem>>, %arg6: memref<3x1x96xf32, #tpu.memory_space<vmem>>, %arg7: memref<3x32x32xf32, #tpu.memory_space<vmem>>, %arg8: memref<3x1x32xf32, #tpu.memory_space<vmem>>, %arg9: memref<3x32x32xf32, #tpu.memory_space<vmem>>, %arg10: memref<3x1x32xf32, #tpu.memory_space<vmem>>, %arg11: memref<3x32x64xf32, #tpu.memory_space<vmem>>, %arg12: memref<3x1x64xf32, #tpu.memory_space<vmem>>, %arg13: memref<3x32x32xf32, #tpu.memory_space<vmem>>, %arg14: memref<3x1x32xf32, #tpu.memory_space<vmem>>, %arg15: memref<3x32x64xf32, #tpu.memory_space<vmem>>, %arg16: memref<3x1x64xf32, #tpu.memory_space<vmem>>, %arg17: memref<3x64x32xf32, #tpu.memory_space<vmem>>, %arg18: memref<3x1x32xf32, #tpu.memory_space<vmem>>, %arg19: memref<1x8x32xf32, #tpu.memory_space<vmem>>) attributes {dimension_semantics = [#tpu.dimension_semantics<parallel>], iteration_bounds = array<i64: 2>, scalar_prefetch = 0 : i64, scratch_operands = 0 : i64, tpu.core_type = #tpu.core_type<tc>, window_params = [{transform_indices = @transform_0, window_bounds = array<i64: 1, 8, 32>}, {transform_indices = @transform_1, window_bounds = array<i64: 1, 8, 32>}, {transform_indices = @transform_2, window_bounds = array<i64: 1, 1, 8, 8>}, {transform_indices = @transform_3, window_bounds = array<i64: 1, 1, 8, 8>}, {pipeline_mode = #tpu.pipeline_mode<synchronous>, transform_indices = @transform_4, window_bounds = array<i64: 3, 32, 96>}, {pipeline_mode = #tpu.pipeline_mode<synchronous>, transform_indices = @transform_5, window_bounds = array<i64: 3, 1, 96>}, {pipeline_mode = #tpu.pipeline_mode<synchronous>, transform_indices = @transform_6, window_bounds = array<i64: 3, 32, 32>}, {pipeline_mode = #tpu.pipeline_mode<synchronous>, transform_indices = @transform_7, window_bounds = array<i64: 3, 1, 32>}, {pipeline_mode = #tpu.pipeline_mode<synchronous>, transform_indices = @transform_8, window_bounds = array<i64: 3, 32, 32>}, {pipeline_mode = #tpu.pipeline_mode<synchronous>, transform_indices = @transform_9, window_bounds = array<i64: 3, 1, 32>}, {pipeline_mode = #tpu.pipeline_mode<synchronous>, transform_indices = @transform_10, window_bounds = array<i64: 3, 32, 64>}, {pipeline_mode = #tpu.pipeline_mode<synchronous>, transform_indices = @transform_11, window_bounds = array<i64: 3, 1, 64>}, {pipeline_mode = #tpu.pipeline_mode<synchronous>, transform_indices = @transform_12, window_bounds = array<i64: 3, 32, 32>}, {pipeline_mode = #tpu.pipeline_mode<synchronous>, transform_indices = @transform_13, window_bounds = array<i64: 3, 1, 32>}, {pipeline_mode = #tpu.pipeline_mode<synchronous>, transform_indices = @transform_14, window_bounds = array<i64: 3, 32, 64>}, {pipeline_mode = #tpu.pipeline_mode<synchronous>, transform_indices = @transform_15, window_bounds = array<i64: 3, 1, 64>}, {pipeline_mode = #tpu.pipeline_mode<synchronous>, transform_indices = @transform_16, window_bounds = array<i64: 3, 64, 32>}, {pipeline_mode = #tpu.pipeline_mode<synchronous>, transform_indices = @transform_17, window_bounds = array<i64: 3, 1, 32>}, {transform_indices = @transform_18, window_bounds = array<i64: 1, 8, 32>}]} {
    %c0 = arith.constant 0 : index
    %c0_0 = arith.constant 0 : index
    %c0_1 = arith.constant 0 : index
    %0 = vector.load %arg1[%c0, %c0_0, %c0_1] : memref<1x8x32xf32, #tpu.memory_space<vmem>>, vector<1x8x32xf32>
    %1 = vector.shape_cast %0 : vector<1x8x32xf32> to vector<8x32xf32>
    %c0_2 = arith.constant 0 : index
    %c0_3 = arith.constant 0 : index
    %c0_4 = arith.constant 0 : index
    %2 = vector.load %arg2[%c0_2, %c0_3, %c0_4] : memref<1x8x32xf32, #tpu.memory_space<vmem>>, vector<1x8x32xf32>
    %3 = vector.shape_cast %2 : vector<1x8x32xf32> to vector<8x32xf32>
    %c0_5 = arith.constant 0 : index
    %c0_6 = arith.constant 0 : index
    %c0_7 = arith.constant 0 : index
    %c0_8 = arith.constant 0 : index
    %4 = vector.load %arg3[%c0_5, %c0_6, %c0_7, %c0_8] : memref<1x1x8x8xf32, #tpu.memory_space<vmem>>, vector<1x1x8x8xf32>
    %5 = vector.shape_cast %4 : vector<1x1x8x8xf32> to vector<8x8xf32>
    %c0_9 = arith.constant 0 : index
    %c0_10 = arith.constant 0 : index
    %c0_11 = arith.constant 0 : index
    %c0_12 = arith.constant 0 : index
    %6 = vector.load %arg4[%c0_9, %c0_10, %c0_11, %c0_12] : memref<1x1x8x8xf32, #tpu.memory_space<vmem>>, vector<1x1x8x8xf32>
    %7 = vector.shape_cast %6 : vector<1x1x8x8xf32> to vector<8x8xf32>
    %cst = arith.constant dense<0.000000e+00> : vector<8xf32>
    %8 = vector.multi_reduction <add>, %1, %cst [1] : vector<8x32xf32> to vector<8xf32>
    %9 = vector.shape_cast %8 : vector<8xf32> to vector<8x1xf32>
    %cst_13 = arith.constant 3.200000e+01 : f32
    %10 = vector.broadcast %cst_13 : f32 to vector<8x1xf32>
    %11 = arith.divf %9, %10 : vector<8x1xf32>
    %12 = vector.broadcast %11 : vector<8x1xf32> to vector<8x32xf32>
    %13 = arith.subf %1, %12 : vector<8x32xf32>
    %14 = arith.mulf %13, %13 : vector<8x32xf32>
    %cst_14 = arith.constant dense<0.000000e+00> : vector<8xf32>
    %15 = vector.multi_reduction <add>, %14, %cst_14 [1] : vector<8x32xf32> to vector<8xf32>
    %16 = vector.shape_cast %15 : vector<8xf32> to vector<8x1xf32>
    %cst_15 = arith.constant 3.200000e+01 : f32
    %17 = vector.broadcast %cst_15 : f32 to vector<8x1xf32>
    %18 = arith.divf %16, %17 : vector<8x1xf32>
    %cst_16 = arith.constant 9.99999974E-6 : f32
    %19 = vector.broadcast %cst_16 : f32 to vector<8x1xf32>
    %20 = arith.addf %18, %19 : vector<8x1xf32>
    %21 = math.rsqrt %20 : vector<8x1xf32>
    %22 = vector.broadcast %21 : vector<8x1xf32> to vector<8x32xf32>
    %23 = arith.mulf %13, %22 : vector<8x32xf32>
    %cst_17 = arith.constant dense<0.000000e+00> : vector<8xf32>
    %24 = vector.multi_reduction <add>, %3, %cst_17 [1] : vector<8x32xf32> to vector<8xf32>
    %25 = vector.shape_cast %24 : vector<8xf32> to vector<8x1xf32>
    %cst_18 = arith.constant 3.200000e+01 : f32
    %26 = vector.broadcast %cst_18 : f32 to vector<8x1xf32>
    %27 = arith.divf %25, %26 : vector<8x1xf32>
    %28 = vector.broadcast %27 : vector<8x1xf32> to vector<8x32xf32>
    %29 = arith.subf %3, %28 : vector<8x32xf32>
    %30 = arith.mulf %29, %29 : vector<8x32xf32>
    %cst_19 = arith.constant dense<0.000000e+00> : vector<8xf32>
    %31 = vector.multi_reduction <add>, %30, %cst_19 [1] : vector<8x32xf32> to vector<8xf32>
    %32 = vector.shape_cast %31 : vector<8xf32> to vector<8x1xf32>
    %cst_20 = arith.constant 3.200000e+01 : f32
    %33 = vector.broadcast %cst_20 : f32 to vector<8x1xf32>
    %34 = arith.divf %32, %33 : vector<8x1xf32>
    %cst_21 = arith.constant 9.99999974E-6 : f32
    %35 = vector.broadcast %cst_21 : f32 to vector<8x1xf32>
    %36 = arith.addf %34, %35 : vector<8x1xf32>
    %37 = math.rsqrt %36 : vector<8x1xf32>
    %38 = vector.broadcast %37 : vector<8x1xf32> to vector<8x32xf32>
    %39 = arith.mulf %29, %38 : vector<8x32xf32>
    %c0_22 = arith.constant 0 : index
    %c0_23 = arith.constant 0 : index
    %c0_24 = arith.constant 0 : index
    %40 = vector.load %arg5[%c0_22, %c0_23, %c0_24] : memref<3x32x96xf32, #tpu.memory_space<vmem>>, vector<1x32x96xf32>
    %41 = vector.shape_cast %40 : vector<1x32x96xf32> to vector<32x96xf32>
    %cst_25 = arith.constant dense<0.000000e+00> : vector<8x96xf32>
    %42 = tpu.matmul %39, %41, %cst_25 {dimension_numbers = #tpu.dot_dimension_numbers<[1], [0], [0], [1], [0, 0, 1, 1], [], []>} : vector<8x32xf32>, vector<32x96xf32>, vector<8x96xf32> -> vector<8x96xf32>
    %c0_26 = arith.constant 0 : index
    %c0_27 = arith.constant 0 : index
    %c0_28 = arith.constant 0 : index
    %43 = vector.load %arg6[%c0_26, %c0_27, %c0_28] : memref<3x1x96xf32, #tpu.memory_space<vmem>>, vector<1x1x96xf32>
    %44 = vector.shape_cast %43 : vector<1x1x96xf32> to vector<1x96xf32>
    %45 = vector.broadcast %44 : vector<1x96xf32> to vector<8x96xf32>
    %46 = arith.addf %42, %45 : vector<8x96xf32>
    %47 = vector.extract_strided_slice %46 {offsets = [0, 0], sizes = [8, 32], strides = [1, 1]} : vector<8x96xf32> to vector<8x32xf32>
    %48 = vector.extract_strided_slice %46 {offsets = [0, 32], sizes = [8, 32], strides = [1, 1]} : vector<8x96xf32> to vector<8x32xf32>
    %49 = vector.extract_strided_slice %46 {offsets = [0, 64], sizes = [8, 32], strides = [1, 1]} : vector<8x96xf32> to vector<8x32xf32>
    %c0_29 = arith.constant 0 : index
    %c0_30 = arith.constant 0 : index
    %c0_31 = arith.constant 0 : index
    %50 = vector.load %arg7[%c0_29, %c0_30, %c0_31] : memref<3x32x32xf32, #tpu.memory_space<vmem>>, vector<1x32x32xf32>
    %51 = vector.shape_cast %50 : vector<1x32x32xf32> to vector<32x32xf32>
    %c0_32 = arith.constant 0 : index
    %c0_33 = arith.constant 0 : index
    %c0_34 = arith.constant 0 : index
    %52 = vector.load %arg8[%c0_32, %c0_33, %c0_34] : memref<3x1x32xf32, #tpu.memory_space<vmem>>, vector<1x1x32xf32>
    %53 = vector.shape_cast %52 : vector<1x1x32xf32> to vector<1x32xf32>
    %54 = vector.broadcast %53 : vector<1x32xf32> to vector<8x32xf32>
    %55 = arith.addf %3, %54 : vector<8x32xf32>
    %56 = vector.extract_strided_slice %47 {offsets = [0, 0], sizes = [8, 8], strides = [1, 1]} : vector<8x32xf32> to vector<8x8xf32>
    %57 = vector.extract_strided_slice %48 {offsets = [0, 0], sizes = [8, 8], strides = [1, 1]} : vector<8x32xf32> to vector<8x8xf32>
    %58 = vector.extract_strided_slice %49 {offsets = [0, 0], sizes = [8, 8], strides = [1, 1]} : vector<8x32xf32> to vector<8x8xf32>
    %cst_35 = arith.constant dense<0.000000e+00> : vector<8x8xf32>
    %59 = tpu.matmul %56, %57, %cst_35 {dimension_numbers = #tpu.dot_dimension_numbers<[1], [1], [0], [0], [0, 0, 1, 0], [], []>} : vector<8x8xf32>, vector<8x8xf32>, vector<8x8xf32> -> vector<8x8xf32>
    %60 = arith.addf %59, %7 : vector<8x8xf32>
    %cst_36 = arith.constant dense<0xFF800000> : vector<8xf32>
    %61 = vector.multi_reduction <maximumf>, %60, %cst_36 [1] : vector<8x8xf32> to vector<8xf32>
    %62 = vector.shape_cast %61 : vector<8xf32> to vector<8x1xf32>
    %63 = vector.broadcast %62 : vector<8x1xf32> to vector<8x8xf32>
    %64 = arith.subf %60, %63 : vector<8x8xf32>
    %65 = math.exp %64 : vector<8x8xf32>
    %cst_37 = arith.constant dense<0.000000e+00> : vector<8xf32>
    %66 = vector.multi_reduction <add>, %65, %cst_37 [1] : vector<8x8xf32> to vector<8xf32>
    %67 = vector.shape_cast %66 : vector<8xf32> to vector<8x1xf32>
    %68 = tpu.reciprocal %67 {approx = true} : vector<8x1xf32> -> vector<8x1xf32>
    %69 = vector.broadcast %68 : vector<8x1xf32> to vector<8x8xf32>
    %70 = arith.mulf %65, %69 : vector<8x8xf32>
    %cst_38 = arith.constant dense<0.000000e+00> : vector<8x8xf32>
    %71 = tpu.matmul %70, %58, %cst_38 {dimension_numbers = #tpu.dot_dimension_numbers<[1], [0], [0], [1], [0, 0, 1, 1], [], []>} : vector<8x8xf32>, vector<8x8xf32>, vector<8x8xf32> -> vector<8x8xf32>
    %72 = vector.extract_strided_slice %51 {offsets = [0, 0], sizes = [8, 32], strides = [1, 1]} : vector<32x32xf32> to vector<8x32xf32>
    %cst_39 = arith.constant dense<0.000000e+00> : vector<8x32xf32>
    %73 = tpu.matmul %71, %72, %cst_39 {dimension_numbers = #tpu.dot_dimension_numbers<[1], [0], [0], [1], [0, 0, 1, 1], [], []>} : vector<8x8xf32>, vector<8x32xf32>, vector<8x32xf32> -> vector<8x32xf32>
    %74 = arith.addf %55, %73 : vector<8x32xf32>
    %75 = vector.extract_strided_slice %47 {offsets = [0, 8], sizes = [8, 8], strides = [1, 1]} : vector<8x32xf32> to vector<8x8xf32>
    %76 = vector.extract_strided_slice %48 {offsets = [0, 8], sizes = [8, 8], strides = [1, 1]} : vector<8x32xf32> to vector<8x8xf32>
    %77 = vector.extract_strided_slice %49 {offsets = [0, 8], sizes = [8, 8], strides = [1, 1]} : vector<8x32xf32> to vector<8x8xf32>
    %cst_40 = arith.constant dense<0.000000e+00> : vector<8x8xf32>
    %78 = tpu.matmul %75, %76, %cst_40 {dimension_numbers = #tpu.dot_dimension_numbers<[1], [1], [0], [0], [0, 0, 1, 0], [], []>} : vector<8x8xf32>, vector<8x8xf32>, vector<8x8xf32> -> vector<8x8xf32>
    %79 = arith.addf %78, %7 : vector<8x8xf32>
    %cst_41 = arith.constant dense<0xFF800000> : vector<8xf32>
    %80 = vector.multi_reduction <maximumf>, %79, %cst_41 [1] : vector<8x8xf32> to vector<8xf32>
    %81 = vector.shape_cast %80 : vector<8xf32> to vector<8x1xf32>
    %82 = vector.broadcast %81 : vector<8x1xf32> to vector<8x8xf32>
    %83 = arith.subf %79, %82 : vector<8x8xf32>
    %84 = math.exp %83 : vector<8x8xf32>
    %cst_42 = arith.constant dense<0.000000e+00> : vector<8xf32>
    %85 = vector.multi_reduction <add>, %84, %cst_42 [1] : vector<8x8xf32> to vector<8xf32>
    %86 = vector.shape_cast %85 : vector<8xf32> to vector<8x1xf32>
    %87 = tpu.reciprocal %86 {approx = true} : vector<8x1xf32> -> vector<8x1xf32>
    %88 = vector.broadcast %87 : vector<8x1xf32> to vector<8x8xf32>
    %89 = arith.mulf %84, %88 : vector<8x8xf32>
    %cst_43 = arith.constant dense<0.000000e+00> : vector<8x8xf32>
    %90 = tpu.matmul %89, %77, %cst_43 {dimension_numbers = #tpu.dot_dimension_numbers<[1], [0], [0], [1], [0, 0, 1, 1], [], []>} : vector<8x8xf32>, vector<8x8xf32>, vector<8x8xf32> -> vector<8x8xf32>
    %91 = vector.extract_strided_slice %51 {offsets = [8, 0], sizes = [8, 32], strides = [1, 1]} : vector<32x32xf32> to vector<8x32xf32>
    %cst_44 = arith.constant dense<0.000000e+00> : vector<8x32xf32>
    %92 = tpu.matmul %90, %91, %cst_44 {dimension_numbers = #tpu.dot_dimension_numbers<[1], [0], [0], [1], [0, 0, 1, 1], [], []>} : vector<8x8xf32>, vector<8x32xf32>, vector<8x32xf32> -> vector<8x32xf32>
    %93 = arith.addf %74, %92 : vector<8x32xf32>
    %94 = vector.extract_strided_slice %47 {offsets = [0, 16], sizes = [8, 8], strides = [1, 1]} : vector<8x32xf32> to vector<8x8xf32>
    %95 = vector.extract_strided_slice %48 {offsets = [0, 16], sizes = [8, 8], strides = [1, 1]} : vector<8x32xf32> to vector<8x8xf32>
    %96 = vector.extract_strided_slice %49 {offsets = [0, 16], sizes = [8, 8], strides = [1, 1]} : vector<8x32xf32> to vector<8x8xf32>
    %cst_45 = arith.constant dense<0.000000e+00> : vector<8x8xf32>
    %97 = tpu.matmul %94, %95, %cst_45 {dimension_numbers = #tpu.dot_dimension_numbers<[1], [1], [0], [0], [0, 0, 1, 0], [], []>} : vector<8x8xf32>, vector<8x8xf32>, vector<8x8xf32> -> vector<8x8xf32>
    %98 = arith.addf %97, %7 : vector<8x8xf32>
    %cst_46 = arith.constant dense<0xFF800000> : vector<8xf32>
    %99 = vector.multi_reduction <maximumf>, %98, %cst_46 [1] : vector<8x8xf32> to vector<8xf32>
    %100 = vector.shape_cast %99 : vector<8xf32> to vector<8x1xf32>
    %101 = vector.broadcast %100 : vector<8x1xf32> to vector<8x8xf32>
    %102 = arith.subf %98, %101 : vector<8x8xf32>
    %103 = math.exp %102 : vector<8x8xf32>
    %cst_47 = arith.constant dense<0.000000e+00> : vector<8xf32>
    %104 = vector.multi_reduction <add>, %103, %cst_47 [1] : vector<8x8xf32> to vector<8xf32>
    %105 = vector.shape_cast %104 : vector<8xf32> to vector<8x1xf32>
    %106 = tpu.reciprocal %105 {approx = true} : vector<8x1xf32> -> vector<8x1xf32>
    %107 = vector.broadcast %106 : vector<8x1xf32> to vector<8x8xf32>
    %108 = arith.mulf %103, %107 : vector<8x8xf32>
    %cst_48 = arith.constant dense<0.000000e+00> : vector<8x8xf32>
    %109 = tpu.matmul %108, %96, %cst_48 {dimension_numbers = #tpu.dot_dimension_numbers<[1], [0], [0], [1], [0, 0, 1, 1], [], []>} : vector<8x8xf32>, vector<8x8xf32>, vector<8x8xf32> -> vector<8x8xf32>
    %110 = vector.extract_strided_slice %51 {offsets = [16, 0], sizes = [8, 32], strides = [1, 1]} : vector<32x32xf32> to vector<8x32xf32>
    %cst_49 = arith.constant dense<0.000000e+00> : vector<8x32xf32>
    %111 = tpu.matmul %109, %110, %cst_49 {dimension_numbers = #tpu.dot_dimension_numbers<[1], [0], [0], [1], [0, 0, 1, 1], [], []>} : vector<8x8xf32>, vector<8x32xf32>, vector<8x32xf32> -> vector<8x32xf32>
    %112 = arith.addf %93, %111 : vector<8x32xf32>
    %113 = vector.extract_strided_slice %47 {offsets = [0, 24], sizes = [8, 8], strides = [1, 1]} : vector<8x32xf32> to vector<8x8xf32>
    %114 = vector.extract_strided_slice %48 {offsets = [0, 24], sizes = [8, 8], strides = [1, 1]} : vector<8x32xf32> to vector<8x8xf32>
    %115 = vector.extract_strided_slice %49 {offsets = [0, 24], sizes = [8, 8], strides = [1, 1]} : vector<8x32xf32> to vector<8x8xf32>
    %cst_50 = arith.constant dense<0.000000e+00> : vector<8x8xf32>
    %116 = tpu.matmul %113, %114, %cst_50 {dimension_numbers = #tpu.dot_dimension_numbers<[1], [1], [0], [0], [0, 0, 1, 0], [], []>} : vector<8x8xf32>, vector<8x8xf32>, vector<8x8xf32> -> vector<8x8xf32>
    %117 = arith.addf %116, %7 : vector<8x8xf32>
    %cst_51 = arith.constant dense<0xFF800000> : vector<8xf32>
    %118 = vector.multi_reduction <maximumf>, %117, %cst_51 [1] : vector<8x8xf32> to vector<8xf32>
    %119 = vector.shape_cast %118 : vector<8xf32> to vector<8x1xf32>
    %120 = vector.broadcast %119 : vector<8x1xf32> to vector<8x8xf32>
    %121 = arith.subf %117, %120 : vector<8x8xf32>
    %122 = math.exp %121 : vector<8x8xf32>
    %cst_52 = arith.constant dense<0.000000e+00> : vector<8xf32>
    %123 = vector.multi_reduction <add>, %122, %cst_52 [1] : vector<8x8xf32> to vector<8xf32>
    %124 = vector.shape_cast %123 : vector<8xf32> to vector<8x1xf32>
    %125 = tpu.reciprocal %124 {approx = true} : vector<8x1xf32> -> vector<8x1xf32>
    %126 = vector.broadcast %125 : vector<8x1xf32> to vector<8x8xf32>
    %127 = arith.mulf %122, %126 : vector<8x8xf32>
    %cst_53 = arith.constant dense<0.000000e+00> : vector<8x8xf32>
    %128 = tpu.matmul %127, %115, %cst_53 {dimension_numbers = #tpu.dot_dimension_numbers<[1], [0], [0], [1], [0, 0, 1, 1], [], []>} : vector<8x8xf32>, vector<8x8xf32>, vector<8x8xf32> -> vector<8x8xf32>
    %129 = vector.extract_strided_slice %51 {offsets = [24, 0], sizes = [8, 32], strides = [1, 1]} : vector<32x32xf32> to vector<8x32xf32>
    %cst_54 = arith.constant dense<0.000000e+00> : vector<8x32xf32>
    %130 = tpu.matmul %128, %129, %cst_54 {dimension_numbers = #tpu.dot_dimension_numbers<[1], [0], [0], [1], [0, 0, 1, 1], [], []>} : vector<8x8xf32>, vector<8x32xf32>, vector<8x32xf32> -> vector<8x32xf32>
    %131 = arith.addf %112, %130 : vector<8x32xf32>
    %cst_55 = arith.constant dense<0.000000e+00> : vector<8xf32>
    %132 = vector.multi_reduction <add>, %131, %cst_55 [1] : vector<8x32xf32> to vector<8xf32>
    %133 = vector.shape_cast %132 : vector<8xf32> to vector<8x1xf32>
    %cst_56 = arith.constant 3.200000e+01 : f32
    %134 = vector.broadcast %cst_56 : f32 to vector<8x1xf32>
    %135 = arith.divf %133, %134 : vector<8x1xf32>
    %136 = vector.broadcast %135 : vector<8x1xf32> to vector<8x32xf32>
    %137 = arith.subf %131, %136 : vector<8x32xf32>
    %138 = arith.mulf %137, %137 : vector<8x32xf32>
    %cst_57 = arith.constant dense<0.000000e+00> : vector<8xf32>
    %139 = vector.multi_reduction <add>, %138, %cst_57 [1] : vector<8x32xf32> to vector<8xf32>
    %140 = vector.shape_cast %139 : vector<8xf32> to vector<8x1xf32>
    %cst_58 = arith.constant 3.200000e+01 : f32
    %141 = vector.broadcast %cst_58 : f32 to vector<8x1xf32>
    %142 = arith.divf %140, %141 : vector<8x1xf32>
    %cst_59 = arith.constant 9.99999974E-6 : f32
    %143 = vector.broadcast %cst_59 : f32 to vector<8x1xf32>
    %144 = arith.addf %142, %143 : vector<8x1xf32>
    %145 = math.rsqrt %144 : vector<8x1xf32>
    %146 = vector.broadcast %145 : vector<8x1xf32> to vector<8x32xf32>
    %147 = arith.mulf %137, %146 : vector<8x32xf32>
    %c0_60 = arith.constant 0 : index
    %c0_61 = arith.constant 0 : index
    %c0_62 = arith.constant 0 : index
    %148 = vector.load %arg9[%c0_60, %c0_61, %c0_62] : memref<3x32x32xf32, #tpu.memory_space<vmem>>, vector<1x32x32xf32>
    %149 = vector.shape_cast %148 : vector<1x32x32xf32> to vector<32x32xf32>
    %cst_63 = arith.constant dense<0.000000e+00> : vector<8x32xf32>
    %150 = tpu.matmul %147, %149, %cst_63 {dimension_numbers = #tpu.dot_dimension_numbers<[1], [0], [0], [1], [0, 0, 1, 1], [], []>} : vector<8x32xf32>, vector<32x32xf32>, vector<8x32xf32> -> vector<8x32xf32>
    %c0_64 = arith.constant 0 : index
    %c0_65 = arith.constant 0 : index
    %c0_66 = arith.constant 0 : index
    %151 = vector.load %arg10[%c0_64, %c0_65, %c0_66] : memref<3x1x32xf32, #tpu.memory_space<vmem>>, vector<1x1x32xf32>
    %152 = vector.shape_cast %151 : vector<1x1x32xf32> to vector<1x32xf32>
    %153 = vector.broadcast %152 : vector<1x32xf32> to vector<8x32xf32>
    %154 = arith.addf %150, %153 : vector<8x32xf32>
    %c0_67 = arith.constant 0 : index
    %c0_68 = arith.constant 0 : index
    %c0_69 = arith.constant 0 : index
    %155 = vector.load %arg11[%c0_67, %c0_68, %c0_69] : memref<3x32x64xf32, #tpu.memory_space<vmem>>, vector<1x32x64xf32>
    %156 = vector.shape_cast %155 : vector<1x32x64xf32> to vector<32x64xf32>
    %cst_70 = arith.constant dense<0.000000e+00> : vector<8x64xf32>
    %157 = tpu.matmul %23, %156, %cst_70 {dimension_numbers = #tpu.dot_dimension_numbers<[1], [0], [0], [1], [0, 0, 1, 1], [], []>} : vector<8x32xf32>, vector<32x64xf32>, vector<8x64xf32> -> vector<8x64xf32>
    %c0_71 = arith.constant 0 : index
    %c0_72 = arith.constant 0 : index
    %c0_73 = arith.constant 0 : index
    %158 = vector.load %arg12[%c0_71, %c0_72, %c0_73] : memref<3x1x64xf32, #tpu.memory_space<vmem>>, vector<1x1x64xf32>
    %159 = vector.shape_cast %158 : vector<1x1x64xf32> to vector<1x64xf32>
    %160 = vector.broadcast %159 : vector<1x64xf32> to vector<8x64xf32>
    %161 = arith.addf %157, %160 : vector<8x64xf32>
    %162 = vector.extract_strided_slice %161 {offsets = [0, 0], sizes = [8, 32], strides = [1, 1]} : vector<8x64xf32> to vector<8x32xf32>
    %163 = vector.extract_strided_slice %161 {offsets = [0, 32], sizes = [8, 32], strides = [1, 1]} : vector<8x64xf32> to vector<8x32xf32>
    %c0_74 = arith.constant 0 : index
    %c0_75 = arith.constant 0 : index
    %c0_76 = arith.constant 0 : index
    %164 = vector.load %arg13[%c0_74, %c0_75, %c0_76] : memref<3x32x32xf32, #tpu.memory_space<vmem>>, vector<1x32x32xf32>
    %165 = vector.shape_cast %164 : vector<1x32x32xf32> to vector<32x32xf32>
    %c0_77 = arith.constant 0 : index
    %c0_78 = arith.constant 0 : index
    %c0_79 = arith.constant 0 : index
    %166 = vector.load %arg14[%c0_77, %c0_78, %c0_79] : memref<3x1x32xf32, #tpu.memory_space<vmem>>, vector<1x1x32xf32>
    %167 = vector.shape_cast %166 : vector<1x1x32xf32> to vector<1x32xf32>
    %168 = vector.broadcast %167 : vector<1x32xf32> to vector<8x32xf32>
    %169 = arith.addf %131, %168 : vector<8x32xf32>
    %170 = vector.extract_strided_slice %154 {offsets = [0, 0], sizes = [8, 8], strides = [1, 1]} : vector<8x32xf32> to vector<8x8xf32>
    %171 = vector.extract_strided_slice %162 {offsets = [0, 0], sizes = [8, 8], strides = [1, 1]} : vector<8x32xf32> to vector<8x8xf32>
    %172 = vector.extract_strided_slice %163 {offsets = [0, 0], sizes = [8, 8], strides = [1, 1]} : vector<8x32xf32> to vector<8x8xf32>
    %cst_80 = arith.constant dense<0.000000e+00> : vector<8x8xf32>
    %173 = tpu.matmul %170, %171, %cst_80 {dimension_numbers = #tpu.dot_dimension_numbers<[1], [1], [0], [0], [0, 0, 1, 0], [], []>} : vector<8x8xf32>, vector<8x8xf32>, vector<8x8xf32> -> vector<8x8xf32>
    %174 = arith.addf %173, %5 : vector<8x8xf32>
    %cst_81 = arith.constant dense<0xFF800000> : vector<8xf32>
    %175 = vector.multi_reduction <maximumf>, %174, %cst_81 [1] : vector<8x8xf32> to vector<8xf32>
    %176 = vector.shape_cast %175 : vector<8xf32> to vector<8x1xf32>
    %177 = vector.broadcast %176 : vector<8x1xf32> to vector<8x8xf32>
    %178 = arith.subf %174, %177 : vector<8x8xf32>
    %179 = math.exp %178 : vector<8x8xf32>
    %cst_82 = arith.constant dense<0.000000e+00> : vector<8xf32>
    %180 = vector.multi_reduction <add>, %179, %cst_82 [1] : vector<8x8xf32> to vector<8xf32>
    %181 = vector.shape_cast %180 : vector<8xf32> to vector<8x1xf32>
    %182 = tpu.reciprocal %181 {approx = true} : vector<8x1xf32> -> vector<8x1xf32>
    %183 = vector.broadcast %182 : vector<8x1xf32> to vector<8x8xf32>
    %184 = arith.mulf %179, %183 : vector<8x8xf32>
    %cst_83 = arith.constant dense<0.000000e+00> : vector<8x8xf32>
    %185 = tpu.matmul %184, %172, %cst_83 {dimension_numbers = #tpu.dot_dimension_numbers<[1], [0], [0], [1], [0, 0, 1, 1], [], []>} : vector<8x8xf32>, vector<8x8xf32>, vector<8x8xf32> -> vector<8x8xf32>
    %186 = vector.extract_strided_slice %165 {offsets = [0, 0], sizes = [8, 32], strides = [1, 1]} : vector<32x32xf32> to vector<8x32xf32>
    %cst_84 = arith.constant dense<0.000000e+00> : vector<8x32xf32>
    %187 = tpu.matmul %185, %186, %cst_84 {dimension_numbers = #tpu.dot_dimension_numbers<[1], [0], [0], [1], [0, 0, 1, 1], [], []>} : vector<8x8xf32>, vector<8x32xf32>, vector<8x32xf32> -> vector<8x32xf32>
    %188 = arith.addf %169, %187 : vector<8x32xf32>
    %189 = vector.extract_strided_slice %154 {offsets = [0, 8], sizes = [8, 8], strides = [1, 1]} : vector<8x32xf32> to vector<8x8xf32>
    %190 = vector.extract_strided_slice %162 {offsets = [0, 8], sizes = [8, 8], strides = [1, 1]} : vector<8x32xf32> to vector<8x8xf32>
    %191 = vector.extract_strided_slice %163 {offsets = [0, 8], sizes = [8, 8], strides = [1, 1]} : vector<8x32xf32> to vector<8x8xf32>
    %cst_85 = arith.constant dense<0.000000e+00> : vector<8x8xf32>
    %192 = tpu.matmul %189, %190, %cst_85 {dimension_numbers = #tpu.dot_dimension_numbers<[1], [1], [0], [0], [0, 0, 1, 0], [], []>} : vector<8x8xf32>, vector<8x8xf32>, vector<8x8xf32> -> vector<8x8xf32>
    %193 = arith.addf %192, %5 : vector<8x8xf32>
    %cst_86 = arith.constant dense<0xFF800000> : vector<8xf32>
    %194 = vector.multi_reduction <maximumf>, %193, %cst_86 [1] : vector<8x8xf32> to vector<8xf32>
    %195 = vector.shape_cast %194 : vector<8xf32> to vector<8x1xf32>
    %196 = vector.broadcast %195 : vector<8x1xf32> to vector<8x8xf32>
    %197 = arith.subf %193, %196 : vector<8x8xf32>
    %198 = math.exp %197 : vector<8x8xf32>
    %cst_87 = arith.constant dense<0.000000e+00> : vector<8xf32>
    %199 = vector.multi_reduction <add>, %198, %cst_87 [1] : vector<8x8xf32> to vector<8xf32>
    %200 = vector.shape_cast %199 : vector<8xf32> to vector<8x1xf32>
    %201 = tpu.reciprocal %200 {approx = true} : vector<8x1xf32> -> vector<8x1xf32>
    %202 = vector.broadcast %201 : vector<8x1xf32> to vector<8x8xf32>
    %203 = arith.mulf %198, %202 : vector<8x8xf32>
    %cst_88 = arith.constant dense<0.000000e+00> : vector<8x8xf32>
    %204 = tpu.matmul %203, %191, %cst_88 {dimension_numbers = #tpu.dot_dimension_numbers<[1], [0], [0], [1], [0, 0, 1, 1], [], []>} : vector<8x8xf32>, vector<8x8xf32>, vector<8x8xf32> -> vector<8x8xf32>
    %205 = vector.extract_strided_slice %165 {offsets = [8, 0], sizes = [8, 32], strides = [1, 1]} : vector<32x32xf32> to vector<8x32xf32>
    %cst_89 = arith.constant dense<0.000000e+00> : vector<8x32xf32>
    %206 = tpu.matmul %204, %205, %cst_89 {dimension_numbers = #tpu.dot_dimension_numbers<[1], [0], [0], [1], [0, 0, 1, 1], [], []>} : vector<8x8xf32>, vector<8x32xf32>, vector<8x32xf32> -> vector<8x32xf32>
    %207 = arith.addf %188, %206 : vector<8x32xf32>
    %208 = vector.extract_strided_slice %154 {offsets = [0, 16], sizes = [8, 8], strides = [1, 1]} : vector<8x32xf32> to vector<8x8xf32>
    %209 = vector.extract_strided_slice %162 {offsets = [0, 16], sizes = [8, 8], strides = [1, 1]} : vector<8x32xf32> to vector<8x8xf32>
    %210 = vector.extract_strided_slice %163 {offsets = [0, 16], sizes = [8, 8], strides = [1, 1]} : vector<8x32xf32> to vector<8x8xf32>
    %cst_90 = arith.constant dense<0.000000e+00> : vector<8x8xf32>
    %211 = tpu.matmul %208, %209, %cst_90 {dimension_numbers = #tpu.dot_dimension_numbers<[1], [1], [0], [0], [0, 0, 1, 0], [], []>} : vector<8x8xf32>, vector<8x8xf32>, vector<8x8xf32> -> vector<8x8xf32>
    %212 = arith.addf %211, %5 : vector<8x8xf32>
    %cst_91 = arith.constant dense<0xFF800000> : vector<8xf32>
    %213 = vector.multi_reduction <maximumf>, %212, %cst_91 [1] : vector<8x8xf32> to vector<8xf32>
    %214 = vector.shape_cast %213 : vector<8xf32> to vector<8x1xf32>
    %215 = vector.broadcast %214 : vector<8x1xf32> to vector<8x8xf32>
    %216 = arith.subf %212, %215 : vector<8x8xf32>
    %217 = math.exp %216 : vector<8x8xf32>
    %cst_92 = arith.constant dense<0.000000e+00> : vector<8xf32>
    %218 = vector.multi_reduction <add>, %217, %cst_92 [1] : vector<8x8xf32> to vector<8xf32>
    %219 = vector.shape_cast %218 : vector<8xf32> to vector<8x1xf32>
    %220 = tpu.reciprocal %219 {approx = true} : vector<8x1xf32> -> vector<8x1xf32>
    %221 = vector.broadcast %220 : vector<8x1xf32> to vector<8x8xf32>
    %222 = arith.mulf %217, %221 : vector<8x8xf32>
    %cst_93 = arith.constant dense<0.000000e+00> : vector<8x8xf32>
    %223 = tpu.matmul %222, %210, %cst_93 {dimension_numbers = #tpu.dot_dimension_numbers<[1], [0], [0], [1], [0, 0, 1, 1], [], []>} : vector<8x8xf32>, vector<8x8xf32>, vector<8x8xf32> -> vector<8x8xf32>
    %224 = vector.extract_strided_slice %165 {offsets = [16, 0], sizes = [8, 32], strides = [1, 1]} : vector<32x32xf32> to vector<8x32xf32>
    %cst_94 = arith.constant dense<0.000000e+00> : vector<8x32xf32>
    %225 = tpu.matmul %223, %224, %cst_94 {dimension_numbers = #tpu.dot_dimension_numbers<[1], [0], [0], [1], [0, 0, 1, 1], [], []>} : vector<8x8xf32>, vector<8x32xf32>, vector<8x32xf32> -> vector<8x32xf32>
    %226 = arith.addf %207, %225 : vector<8x32xf32>
    %227 = vector.extract_strided_slice %154 {offsets = [0, 24], sizes = [8, 8], strides = [1, 1]} : vector<8x32xf32> to vector<8x8xf32>
    %228 = vector.extract_strided_slice %162 {offsets = [0, 24], sizes = [8, 8], strides = [1, 1]} : vector<8x32xf32> to vector<8x8xf32>
    %229 = vector.extract_strided_slice %163 {offsets = [0, 24], sizes = [8, 8], strides = [1, 1]} : vector<8x32xf32> to vector<8x8xf32>
    %cst_95 = arith.constant dense<0.000000e+00> : vector<8x8xf32>
    %230 = tpu.matmul %227, %228, %cst_95 {dimension_numbers = #tpu.dot_dimension_numbers<[1], [1], [0], [0], [0, 0, 1, 0], [], []>} : vector<8x8xf32>, vector<8x8xf32>, vector<8x8xf32> -> vector<8x8xf32>
    %231 = arith.addf %230, %5 : vector<8x8xf32>
    %cst_96 = arith.constant dense<0xFF800000> : vector<8xf32>
    %232 = vector.multi_reduction <maximumf>, %231, %cst_96 [1] : vector<8x8xf32> to vector<8xf32>
    %233 = vector.shape_cast %232 : vector<8xf32> to vector<8x1xf32>
    %234 = vector.broadcast %233 : vector<8x1xf32> to vector<8x8xf32>
    %235 = arith.subf %231, %234 : vector<8x8xf32>
    %236 = math.exp %235 : vector<8x8xf32>
    %cst_97 = arith.constant dense<0.000000e+00> : vector<8xf32>
    %237 = vector.multi_reduction <add>, %236, %cst_97 [1] : vector<8x8xf32> to vector<8xf32>
    %238 = vector.shape_cast %237 : vector<8xf32> to vector<8x1xf32>
    %239 = tpu.reciprocal %238 {approx = true} : vector<8x1xf32> -> vector<8x1xf32>
    %240 = vector.broadcast %239 : vector<8x1xf32> to vector<8x8xf32>
    %241 = arith.mulf %236, %240 : vector<8x8xf32>
    %cst_98 = arith.constant dense<0.000000e+00> : vector<8x8xf32>
    %242 = tpu.matmul %241, %229, %cst_98 {dimension_numbers = #tpu.dot_dimension_numbers<[1], [0], [0], [1], [0, 0, 1, 1], [], []>} : vector<8x8xf32>, vector<8x8xf32>, vector<8x8xf32> -> vector<8x8xf32>
    %243 = vector.extract_strided_slice %165 {offsets = [24, 0], sizes = [8, 32], strides = [1, 1]} : vector<32x32xf32> to vector<8x32xf32>
    %cst_99 = arith.constant dense<0.000000e+00> : vector<8x32xf32>
    %244 = tpu.matmul %242, %243, %cst_99 {dimension_numbers = #tpu.dot_dimension_numbers<[1], [0], [0], [1], [0, 0, 1, 1], [], []>} : vector<8x8xf32>, vector<8x32xf32>, vector<8x32xf32> -> vector<8x32xf32>
    %245 = arith.addf %226, %244 : vector<8x32xf32>
    %cst_100 = arith.constant dense<0.000000e+00> : vector<8xf32>
    %246 = vector.multi_reduction <add>, %245, %cst_100 [1] : vector<8x32xf32> to vector<8xf32>
    %247 = vector.shape_cast %246 : vector<8xf32> to vector<8x1xf32>
    %cst_101 = arith.constant 3.200000e+01 : f32
    %248 = vector.broadcast %cst_101 : f32 to vector<8x1xf32>
    %249 = arith.divf %247, %248 : vector<8x1xf32>
    %250 = vector.broadcast %249 : vector<8x1xf32> to vector<8x32xf32>
    %251 = arith.subf %245, %250 : vector<8x32xf32>
    %252 = arith.mulf %251, %251 : vector<8x32xf32>
    %cst_102 = arith.constant dense<0.000000e+00> : vector<8xf32>
    %253 = vector.multi_reduction <add>, %252, %cst_102 [1] : vector<8x32xf32> to vector<8xf32>
    %254 = vector.shape_cast %253 : vector<8xf32> to vector<8x1xf32>
    %cst_103 = arith.constant 3.200000e+01 : f32
    %255 = vector.broadcast %cst_103 : f32 to vector<8x1xf32>
    %256 = arith.divf %254, %255 : vector<8x1xf32>
    %cst_104 = arith.constant 9.99999974E-6 : f32
    %257 = vector.broadcast %cst_104 : f32 to vector<8x1xf32>
    %258 = arith.addf %256, %257 : vector<8x1xf32>
    %259 = math.rsqrt %258 : vector<8x1xf32>
    %260 = vector.broadcast %259 : vector<8x1xf32> to vector<8x32xf32>
    %261 = arith.mulf %251, %260 : vector<8x32xf32>
    %c0_105 = arith.constant 0 : index
    %c0_106 = arith.constant 0 : index
    %c0_107 = arith.constant 0 : index
    %262 = vector.load %arg15[%c0_105, %c0_106, %c0_107] : memref<3x32x64xf32, #tpu.memory_space<vmem>>, vector<1x32x64xf32>
    %263 = vector.shape_cast %262 : vector<1x32x64xf32> to vector<32x64xf32>
    %cst_108 = arith.constant dense<0.000000e+00> : vector<8x64xf32>
    %264 = tpu.matmul %261, %263, %cst_108 {dimension_numbers = #tpu.dot_dimension_numbers<[1], [0], [0], [1], [0, 0, 1, 1], [], []>} : vector<8x32xf32>, vector<32x64xf32>, vector<8x64xf32> -> vector<8x64xf32>
    %c0_109 = arith.constant 0 : index
    %c0_110 = arith.constant 0 : index
    %c0_111 = arith.constant 0 : index
    %265 = vector.load %arg16[%c0_109, %c0_110, %c0_111] : memref<3x1x64xf32, #tpu.memory_space<vmem>>, vector<1x1x64xf32>
    %266 = vector.shape_cast %265 : vector<1x1x64xf32> to vector<1x64xf32>
    %267 = vector.broadcast %266 : vector<1x64xf32> to vector<8x64xf32>
    %268 = arith.addf %264, %267 : vector<8x64xf32>
    %cst_112 = arith.constant 0.000000e+00 : f32
    %269 = vector.broadcast %cst_112 : f32 to vector<8x64xf32>
    %270 = arith.maximumf %268, %269 : vector<8x64xf32>
    %c0_113 = arith.constant 0 : index
    %c0_114 = arith.constant 0 : index
    %c0_115 = arith.constant 0 : index
    %271 = vector.load %arg17[%c0_113, %c0_114, %c0_115] : memref<3x64x32xf32, #tpu.memory_space<vmem>>, vector<1x64x32xf32>
    %272 = vector.shape_cast %271 : vector<1x64x32xf32> to vector<64x32xf32>
    %cst_116 = arith.constant dense<0.000000e+00> : vector<8x32xf32>
    %273 = tpu.matmul %270, %272, %cst_116 {dimension_numbers = #tpu.dot_dimension_numbers<[1], [0], [0], [1], [0, 0, 1, 1], [], []>} : vector<8x64xf32>, vector<64x32xf32>, vector<8x32xf32> -> vector<8x32xf32>
    %274 = arith.addf %245, %273 : vector<8x32xf32>
    %c0_117 = arith.constant 0 : index
    %c0_118 = arith.constant 0 : index
    %c0_119 = arith.constant 0 : index
    %275 = vector.load %arg18[%c0_117, %c0_118, %c0_119] : memref<3x1x32xf32, #tpu.memory_space<vmem>>, vector<1x1x32xf32>
    %276 = vector.shape_cast %275 : vector<1x1x32xf32> to vector<1x32xf32>
    %277 = vector.broadcast %276 : vector<1x32xf32> to vector<8x32xf32>
    %278 = arith.addf %274, %277 : vector<8x32xf32>
    %cst_120 = arith.constant dense<0.000000e+00> : vector<8xf32>
    %279 = vector.multi_reduction <add>, %278, %cst_120 [1] : vector<8x32xf32> to vector<8xf32>
    %280 = vector.shape_cast %279 : vector<8xf32> to vector<8x1xf32>
    %cst_121 = arith.constant 3.200000e+01 : f32
    %281 = vector.broadcast %cst_121 : f32 to vector<8x1xf32>
    %282 = arith.divf %280, %281 : vector<8x1xf32>
    %283 = vector.broadcast %282 : vector<8x1xf32> to vector<8x32xf32>
    %284 = arith.subf %278, %283 : vector<8x32xf32>
    %285 = arith.mulf %284, %284 : vector<8x32xf32>
    %cst_122 = arith.constant dense<0.000000e+00> : vector<8xf32>
    %286 = vector.multi_reduction <add>, %285, %cst_122 [1] : vector<8x32xf32> to vector<8xf32>
    %287 = vector.shape_cast %286 : vector<8xf32> to vector<8x1xf32>
    %cst_123 = arith.constant 3.200000e+01 : f32
    %288 = vector.broadcast %cst_123 : f32 to vector<8x1xf32>
    %289 = arith.divf %287, %288 : vector<8x1xf32>
    %cst_124 = arith.constant 9.99999974E-6 : f32
    %290 = vector.broadcast %cst_124 : f32 to vector<8x1xf32>
    %291 = arith.addf %289, %290 : vector<8x1xf32>
    %292 = math.rsqrt %291 : vector<8x1xf32>
    %293 = vector.broadcast %292 : vector<8x1xf32> to vector<8x32xf32>
    %294 = arith.mulf %284, %293 : vector<8x32xf32>
    %c1 = arith.constant 1 : index
    %c0_125 = arith.constant 0 : index
    %c0_126 = arith.constant 0 : index
    %295 = vector.load %arg5[%c1, %c0_125, %c0_126] : memref<3x32x96xf32, #tpu.memory_space<vmem>>, vector<1x32x96xf32>
    %296 = vector.shape_cast %295 : vector<1x32x96xf32> to vector<32x96xf32>
    %cst_127 = arith.constant dense<0.000000e+00> : vector<8x96xf32>
    %297 = tpu.matmul %294, %296, %cst_127 {dimension_numbers = #tpu.dot_dimension_numbers<[1], [0], [0], [1], [0, 0, 1, 1], [], []>} : vector<8x32xf32>, vector<32x96xf32>, vector<8x96xf32> -> vector<8x96xf32>
    %c1_128 = arith.constant 1 : index
    %c0_129 = arith.constant 0 : index
    %c0_130 = arith.constant 0 : index
    %298 = vector.load %arg6[%c1_128, %c0_129, %c0_130] : memref<3x1x96xf32, #tpu.memory_space<vmem>>, vector<1x1x96xf32>
    %299 = vector.shape_cast %298 : vector<1x1x96xf32> to vector<1x96xf32>
    %300 = vector.broadcast %299 : vector<1x96xf32> to vector<8x96xf32>
    %301 = arith.addf %297, %300 : vector<8x96xf32>
    %302 = vector.extract_strided_slice %301 {offsets = [0, 0], sizes = [8, 32], strides = [1, 1]} : vector<8x96xf32> to vector<8x32xf32>
    %303 = vector.extract_strided_slice %301 {offsets = [0, 32], sizes = [8, 32], strides = [1, 1]} : vector<8x96xf32> to vector<8x32xf32>
    %304 = vector.extract_strided_slice %301 {offsets = [0, 64], sizes = [8, 32], strides = [1, 1]} : vector<8x96xf32> to vector<8x32xf32>
    %c1_131 = arith.constant 1 : index
    %c0_132 = arith.constant 0 : index
    %c0_133 = arith.constant 0 : index
    %305 = vector.load %arg7[%c1_131, %c0_132, %c0_133] : memref<3x32x32xf32, #tpu.memory_space<vmem>>, vector<1x32x32xf32>
    %306 = vector.shape_cast %305 : vector<1x32x32xf32> to vector<32x32xf32>
    %c1_134 = arith.constant 1 : index
    %c0_135 = arith.constant 0 : index
    %c0_136 = arith.constant 0 : index
    %307 = vector.load %arg8[%c1_134, %c0_135, %c0_136] : memref<3x1x32xf32, #tpu.memory_space<vmem>>, vector<1x1x32xf32>
    %308 = vector.shape_cast %307 : vector<1x1x32xf32> to vector<1x32xf32>
    %309 = vector.broadcast %308 : vector<1x32xf32> to vector<8x32xf32>
    %310 = arith.addf %278, %309 : vector<8x32xf32>
    %311 = vector.extract_strided_slice %302 {offsets = [0, 0], sizes = [8, 8], strides = [1, 1]} : vector<8x32xf32> to vector<8x8xf32>
    %312 = vector.extract_strided_slice %303 {offsets = [0, 0], sizes = [8, 8], strides = [1, 1]} : vector<8x32xf32> to vector<8x8xf32>
    %313 = vector.extract_strided_slice %304 {offsets = [0, 0], sizes = [8, 8], strides = [1, 1]} : vector<8x32xf32> to vector<8x8xf32>
    %cst_137 = arith.constant dense<0.000000e+00> : vector<8x8xf32>
    %314 = tpu.matmul %311, %312, %cst_137 {dimension_numbers = #tpu.dot_dimension_numbers<[1], [1], [0], [0], [0, 0, 1, 0], [], []>} : vector<8x8xf32>, vector<8x8xf32>, vector<8x8xf32> -> vector<8x8xf32>
    %315 = arith.addf %314, %7 : vector<8x8xf32>
    %cst_138 = arith.constant dense<0xFF800000> : vector<8xf32>
    %316 = vector.multi_reduction <maximumf>, %315, %cst_138 [1] : vector<8x8xf32> to vector<8xf32>
    %317 = vector.shape_cast %316 : vector<8xf32> to vector<8x1xf32>
    %318 = vector.broadcast %317 : vector<8x1xf32> to vector<8x8xf32>
    %319 = arith.subf %315, %318 : vector<8x8xf32>
    %320 = math.exp %319 : vector<8x8xf32>
    %cst_139 = arith.constant dense<0.000000e+00> : vector<8xf32>
    %321 = vector.multi_reduction <add>, %320, %cst_139 [1] : vector<8x8xf32> to vector<8xf32>
    %322 = vector.shape_cast %321 : vector<8xf32> to vector<8x1xf32>
    %323 = tpu.reciprocal %322 {approx = true} : vector<8x1xf32> -> vector<8x1xf32>
    %324 = vector.broadcast %323 : vector<8x1xf32> to vector<8x8xf32>
    %325 = arith.mulf %320, %324 : vector<8x8xf32>
    %cst_140 = arith.constant dense<0.000000e+00> : vector<8x8xf32>
    %326 = tpu.matmul %325, %313, %cst_140 {dimension_numbers = #tpu.dot_dimension_numbers<[1], [0], [0], [1], [0, 0, 1, 1], [], []>} : vector<8x8xf32>, vector<8x8xf32>, vector<8x8xf32> -> vector<8x8xf32>
    %327 = vector.extract_strided_slice %306 {offsets = [0, 0], sizes = [8, 32], strides = [1, 1]} : vector<32x32xf32> to vector<8x32xf32>
    %cst_141 = arith.constant dense<0.000000e+00> : vector<8x32xf32>
    %328 = tpu.matmul %326, %327, %cst_141 {dimension_numbers = #tpu.dot_dimension_numbers<[1], [0], [0], [1], [0, 0, 1, 1], [], []>} : vector<8x8xf32>, vector<8x32xf32>, vector<8x32xf32> -> vector<8x32xf32>
    %329 = arith.addf %310, %328 : vector<8x32xf32>
    %330 = vector.extract_strided_slice %302 {offsets = [0, 8], sizes = [8, 8], strides = [1, 1]} : vector<8x32xf32> to vector<8x8xf32>
    %331 = vector.extract_strided_slice %303 {offsets = [0, 8], sizes = [8, 8], strides = [1, 1]} : vector<8x32xf32> to vector<8x8xf32>
    %332 = vector.extract_strided_slice %304 {offsets = [0, 8], sizes = [8, 8], strides = [1, 1]} : vector<8x32xf32> to vector<8x8xf32>
    %cst_142 = arith.constant dense<0.000000e+00> : vector<8x8xf32>
    %333 = tpu.matmul %330, %331, %cst_142 {dimension_numbers = #tpu.dot_dimension_numbers<[1], [1], [0], [0], [0, 0, 1, 0], [], []>} : vector<8x8xf32>, vector<8x8xf32>, vector<8x8xf32> -> vector<8x8xf32>
    %334 = arith.addf %333, %7 : vector<8x8xf32>
    %cst_143 = arith.constant dense<0xFF800000> : vector<8xf32>
    %335 = vector.multi_reduction <maximumf>, %334, %cst_143 [1] : vector<8x8xf32> to vector<8xf32>
    %336 = vector.shape_cast %335 : vector<8xf32> to vector<8x1xf32>
    %337 = vector.broadcast %336 : vector<8x1xf32> to vector<8x8xf32>
    %338 = arith.subf %334, %337 : vector<8x8xf32>
    %339 = math.exp %338 : vector<8x8xf32>
    %cst_144 = arith.constant dense<0.000000e+00> : vector<8xf32>
    %340 = vector.multi_reduction <add>, %339, %cst_144 [1] : vector<8x8xf32> to vector<8xf32>
    %341 = vector.shape_cast %340 : vector<8xf32> to vector<8x1xf32>
    %342 = tpu.reciprocal %341 {approx = true} : vector<8x1xf32> -> vector<8x1xf32>
    %343 = vector.broadcast %342 : vector<8x1xf32> to vector<8x8xf32>
    %344 = arith.mulf %339, %343 : vector<8x8xf32>
    %cst_145 = arith.constant dense<0.000000e+00> : vector<8x8xf32>
    %345 = tpu.matmul %344, %332, %cst_145 {dimension_numbers = #tpu.dot_dimension_numbers<[1], [0], [0], [1], [0, 0, 1, 1], [], []>} : vector<8x8xf32>, vector<8x8xf32>, vector<8x8xf32> -> vector<8x8xf32>
    %346 = vector.extract_strided_slice %306 {offsets = [8, 0], sizes = [8, 32], strides = [1, 1]} : vector<32x32xf32> to vector<8x32xf32>
    %cst_146 = arith.constant dense<0.000000e+00> : vector<8x32xf32>
    %347 = tpu.matmul %345, %346, %cst_146 {dimension_numbers = #tpu.dot_dimension_numbers<[1], [0], [0], [1], [0, 0, 1, 1], [], []>} : vector<8x8xf32>, vector<8x32xf32>, vector<8x32xf32> -> vector<8x32xf32>
    %348 = arith.addf %329, %347 : vector<8x32xf32>
    %349 = vector.extract_strided_slice %302 {offsets = [0, 16], sizes = [8, 8], strides = [1, 1]} : vector<8x32xf32> to vector<8x8xf32>
    %350 = vector.extract_strided_slice %303 {offsets = [0, 16], sizes = [8, 8], strides = [1, 1]} : vector<8x32xf32> to vector<8x8xf32>
    %351 = vector.extract_strided_slice %304 {offsets = [0, 16], sizes = [8, 8], strides = [1, 1]} : vector<8x32xf32> to vector<8x8xf32>
    %cst_147 = arith.constant dense<0.000000e+00> : vector<8x8xf32>
    %352 = tpu.matmul %349, %350, %cst_147 {dimension_numbers = #tpu.dot_dimension_numbers<[1], [1], [0], [0], [0, 0, 1, 0], [], []>} : vector<8x8xf32>, vector<8x8xf32>, vector<8x8xf32> -> vector<8x8xf32>
    %353 = arith.addf %352, %7 : vector<8x8xf32>
    %cst_148 = arith.constant dense<0xFF800000> : vector<8xf32>
    %354 = vector.multi_reduction <maximumf>, %353, %cst_148 [1] : vector<8x8xf32> to vector<8xf32>
    %355 = vector.shape_cast %354 : vector<8xf32> to vector<8x1xf32>
    %356 = vector.broadcast %355 : vector<8x1xf32> to vector<8x8xf32>
    %357 = arith.subf %353, %356 : vector<8x8xf32>
    %358 = math.exp %357 : vector<8x8xf32>
    %cst_149 = arith.constant dense<0.000000e+00> : vector<8xf32>
    %359 = vector.multi_reduction <add>, %358, %cst_149 [1] : vector<8x8xf32> to vector<8xf32>
    %360 = vector.shape_cast %359 : vector<8xf32> to vector<8x1xf32>
    %361 = tpu.reciprocal %360 {approx = true} : vector<8x1xf32> -> vector<8x1xf32>
    %362 = vector.broadcast %361 : vector<8x1xf32> to vector<8x8xf32>
    %363 = arith.mulf %358, %362 : vector<8x8xf32>
    %cst_150 = arith.constant dense<0.000000e+00> : vector<8x8xf32>
    %364 = tpu.matmul %363, %351, %cst_150 {dimension_numbers = #tpu.dot_dimension_numbers<[1], [0], [0], [1], [0, 0, 1, 1], [], []>} : vector<8x8xf32>, vector<8x8xf32>, vector<8x8xf32> -> vector<8x8xf32>
    %365 = vector.extract_strided_slice %306 {offsets = [16, 0], sizes = [8, 32], strides = [1, 1]} : vector<32x32xf32> to vector<8x32xf32>
    %cst_151 = arith.constant dense<0.000000e+00> : vector<8x32xf32>
    %366 = tpu.matmul %364, %365, %cst_151 {dimension_numbers = #tpu.dot_dimension_numbers<[1], [0], [0], [1], [0, 0, 1, 1], [], []>} : vector<8x8xf32>, vector<8x32xf32>, vector<8x32xf32> -> vector<8x32xf32>
    %367 = arith.addf %348, %366 : vector<8x32xf32>
    %368 = vector.extract_strided_slice %302 {offsets = [0, 24], sizes = [8, 8], strides = [1, 1]} : vector<8x32xf32> to vector<8x8xf32>
    %369 = vector.extract_strided_slice %303 {offsets = [0, 24], sizes = [8, 8], strides = [1, 1]} : vector<8x32xf32> to vector<8x8xf32>
    %370 = vector.extract_strided_slice %304 {offsets = [0, 24], sizes = [8, 8], strides = [1, 1]} : vector<8x32xf32> to vector<8x8xf32>
    %cst_152 = arith.constant dense<0.000000e+00> : vector<8x8xf32>
    %371 = tpu.matmul %368, %369, %cst_152 {dimension_numbers = #tpu.dot_dimension_numbers<[1], [1], [0], [0], [0, 0, 1, 0], [], []>} : vector<8x8xf32>, vector<8x8xf32>, vector<8x8xf32> -> vector<8x8xf32>
    %372 = arith.addf %371, %7 : vector<8x8xf32>
    %cst_153 = arith.constant dense<0xFF800000> : vector<8xf32>
    %373 = vector.multi_reduction <maximumf>, %372, %cst_153 [1] : vector<8x8xf32> to vector<8xf32>
    %374 = vector.shape_cast %373 : vector<8xf32> to vector<8x1xf32>
    %375 = vector.broadcast %374 : vector<8x1xf32> to vector<8x8xf32>
    %376 = arith.subf %372, %375 : vector<8x8xf32>
    %377 = math.exp %376 : vector<8x8xf32>
    %cst_154 = arith.constant dense<0.000000e+00> : vector<8xf32>
    %378 = vector.multi_reduction <add>, %377, %cst_154 [1] : vector<8x8xf32> to vector<8xf32>
    %379 = vector.shape_cast %378 : vector<8xf32> to vector<8x1xf32>
    %380 = tpu.reciprocal %379 {approx = true} : vector<8x1xf32> -> vector<8x1xf32>
    %381 = vector.broadcast %380 : vector<8x1xf32> to vector<8x8xf32>
    %382 = arith.mulf %377, %381 : vector<8x8xf32>
    %cst_155 = arith.constant dense<0.000000e+00> : vector<8x8xf32>
    %383 = tpu.matmul %382, %370, %cst_155 {dimension_numbers = #tpu.dot_dimension_numbers<[1], [0], [0], [1], [0, 0, 1, 1], [], []>} : vector<8x8xf32>, vector<8x8xf32>, vector<8x8xf32> -> vector<8x8xf32>
    %384 = vector.extract_strided_slice %306 {offsets = [24, 0], sizes = [8, 32], strides = [1, 1]} : vector<32x32xf32> to vector<8x32xf32>
    %cst_156 = arith.constant dense<0.000000e+00> : vector<8x32xf32>
    %385 = tpu.matmul %383, %384, %cst_156 {dimension_numbers = #tpu.dot_dimension_numbers<[1], [0], [0], [1], [0, 0, 1, 1], [], []>} : vector<8x8xf32>, vector<8x32xf32>, vector<8x32xf32> -> vector<8x32xf32>
    %386 = arith.addf %367, %385 : vector<8x32xf32>
    %cst_157 = arith.constant dense<0.000000e+00> : vector<8xf32>
    %387 = vector.multi_reduction <add>, %386, %cst_157 [1] : vector<8x32xf32> to vector<8xf32>
    %388 = vector.shape_cast %387 : vector<8xf32> to vector<8x1xf32>
    %cst_158 = arith.constant 3.200000e+01 : f32
    %389 = vector.broadcast %cst_158 : f32 to vector<8x1xf32>
    %390 = arith.divf %388, %389 : vector<8x1xf32>
    %391 = vector.broadcast %390 : vector<8x1xf32> to vector<8x32xf32>
    %392 = arith.subf %386, %391 : vector<8x32xf32>
    %393 = arith.mulf %392, %392 : vector<8x32xf32>
    %cst_159 = arith.constant dense<0.000000e+00> : vector<8xf32>
    %394 = vector.multi_reduction <add>, %393, %cst_159 [1] : vector<8x32xf32> to vector<8xf32>
    %395 = vector.shape_cast %394 : vector<8xf32> to vector<8x1xf32>
    %cst_160 = arith.constant 3.200000e+01 : f32
    %396 = vector.broadcast %cst_160 : f32 to vector<8x1xf32>
    %397 = arith.divf %395, %396 : vector<8x1xf32>
    %cst_161 = arith.constant 9.99999974E-6 : f32
    %398 = vector.broadcast %cst_161 : f32 to vector<8x1xf32>
    %399 = arith.addf %397, %398 : vector<8x1xf32>
    %400 = math.rsqrt %399 : vector<8x1xf32>
    %401 = vector.broadcast %400 : vector<8x1xf32> to vector<8x32xf32>
    %402 = arith.mulf %392, %401 : vector<8x32xf32>
    %c1_162 = arith.constant 1 : index
    %c0_163 = arith.constant 0 : index
    %c0_164 = arith.constant 0 : index
    %403 = vector.load %arg9[%c1_162, %c0_163, %c0_164] : memref<3x32x32xf32, #tpu.memory_space<vmem>>, vector<1x32x32xf32>
    %404 = vector.shape_cast %403 : vector<1x32x32xf32> to vector<32x32xf32>
    %cst_165 = arith.constant dense<0.000000e+00> : vector<8x32xf32>
    %405 = tpu.matmul %402, %404, %cst_165 {dimension_numbers = #tpu.dot_dimension_numbers<[1], [0], [0], [1], [0, 0, 1, 1], [], []>} : vector<8x32xf32>, vector<32x32xf32>, vector<8x32xf32> -> vector<8x32xf32>
    %c1_166 = arith.constant 1 : index
    %c0_167 = arith.constant 0 : index
    %c0_168 = arith.constant 0 : index
    %406 = vector.load %arg10[%c1_166, %c0_167, %c0_168] : memref<3x1x32xf32, #tpu.memory_space<vmem>>, vector<1x1x32xf32>
    %407 = vector.shape_cast %406 : vector<1x1x32xf32> to vector<1x32xf32>
    %408 = vector.broadcast %407 : vector<1x32xf32> to vector<8x32xf32>
    %409 = arith.addf %405, %408 : vector<8x32xf32>
    %c1_169 = arith.constant 1 : index
    %c0_170 = arith.constant 0 : index
    %c0_171 = arith.constant 0 : index
    %410 = vector.load %arg11[%c1_169, %c0_170, %c0_171] : memref<3x32x64xf32, #tpu.memory_space<vmem>>, vector<1x32x64xf32>
    %411 = vector.shape_cast %410 : vector<1x32x64xf32> to vector<32x64xf32>
    %cst_172 = arith.constant dense<0.000000e+00> : vector<8x64xf32>
    %412 = tpu.matmul %23, %411, %cst_172 {dimension_numbers = #tpu.dot_dimension_numbers<[1], [0], [0], [1], [0, 0, 1, 1], [], []>} : vector<8x32xf32>, vector<32x64xf32>, vector<8x64xf32> -> vector<8x64xf32>
    %c1_173 = arith.constant 1 : index
    %c0_174 = arith.constant 0 : index
    %c0_175 = arith.constant 0 : index
    %413 = vector.load %arg12[%c1_173, %c0_174, %c0_175] : memref<3x1x64xf32, #tpu.memory_space<vmem>>, vector<1x1x64xf32>
    %414 = vector.shape_cast %413 : vector<1x1x64xf32> to vector<1x64xf32>
    %415 = vector.broadcast %414 : vector<1x64xf32> to vector<8x64xf32>
    %416 = arith.addf %412, %415 : vector<8x64xf32>
    %417 = vector.extract_strided_slice %416 {offsets = [0, 0], sizes = [8, 32], strides = [1, 1]} : vector<8x64xf32> to vector<8x32xf32>
    %418 = vector.extract_strided_slice %416 {offsets = [0, 32], sizes = [8, 32], strides = [1, 1]} : vector<8x64xf32> to vector<8x32xf32>
    %c1_176 = arith.constant 1 : index
    %c0_177 = arith.constant 0 : index
    %c0_178 = arith.constant 0 : index
    %419 = vector.load %arg13[%c1_176, %c0_177, %c0_178] : memref<3x32x32xf32, #tpu.memory_space<vmem>>, vector<1x32x32xf32>
    %420 = vector.shape_cast %419 : vector<1x32x32xf32> to vector<32x32xf32>
    %c1_179 = arith.constant 1 : index
    %c0_180 = arith.constant 0 : index
    %c0_181 = arith.constant 0 : index
    %421 = vector.load %arg14[%c1_179, %c0_180, %c0_181] : memref<3x1x32xf32, #tpu.memory_space<vmem>>, vector<1x1x32xf32>
    %422 = vector.shape_cast %421 : vector<1x1x32xf32> to vector<1x32xf32>
    %423 = vector.broadcast %422 : vector<1x32xf32> to vector<8x32xf32>
    %424 = arith.addf %386, %423 : vector<8x32xf32>
    %425 = vector.extract_strided_slice %409 {offsets = [0, 0], sizes = [8, 8], strides = [1, 1]} : vector<8x32xf32> to vector<8x8xf32>
    %426 = vector.extract_strided_slice %417 {offsets = [0, 0], sizes = [8, 8], strides = [1, 1]} : vector<8x32xf32> to vector<8x8xf32>
    %427 = vector.extract_strided_slice %418 {offsets = [0, 0], sizes = [8, 8], strides = [1, 1]} : vector<8x32xf32> to vector<8x8xf32>
    %cst_182 = arith.constant dense<0.000000e+00> : vector<8x8xf32>
    %428 = tpu.matmul %425, %426, %cst_182 {dimension_numbers = #tpu.dot_dimension_numbers<[1], [1], [0], [0], [0, 0, 1, 0], [], []>} : vector<8x8xf32>, vector<8x8xf32>, vector<8x8xf32> -> vector<8x8xf32>
    %429 = arith.addf %428, %5 : vector<8x8xf32>
    %cst_183 = arith.constant dense<0xFF800000> : vector<8xf32>
    %430 = vector.multi_reduction <maximumf>, %429, %cst_183 [1] : vector<8x8xf32> to vector<8xf32>
    %431 = vector.shape_cast %430 : vector<8xf32> to vector<8x1xf32>
    %432 = vector.broadcast %431 : vector<8x1xf32> to vector<8x8xf32>
    %433 = arith.subf %429, %432 : vector<8x8xf32>
    %434 = math.exp %433 : vector<8x8xf32>
    %cst_184 = arith.constant dense<0.000000e+00> : vector<8xf32>
    %435 = vector.multi_reduction <add>, %434, %cst_184 [1] : vector<8x8xf32> to vector<8xf32>
    %436 = vector.shape_cast %435 : vector<8xf32> to vector<8x1xf32>
    %437 = tpu.reciprocal %436 {approx = true} : vector<8x1xf32> -> vector<8x1xf32>
    %438 = vector.broadcast %437 : vector<8x1xf32> to vector<8x8xf32>
    %439 = arith.mulf %434, %438 : vector<8x8xf32>
    %cst_185 = arith.constant dense<0.000000e+00> : vector<8x8xf32>
    %440 = tpu.matmul %439, %427, %cst_185 {dimension_numbers = #tpu.dot_dimension_numbers<[1], [0], [0], [1], [0, 0, 1, 1], [], []>} : vector<8x8xf32>, vector<8x8xf32>, vector<8x8xf32> -> vector<8x8xf32>
    %441 = vector.extract_strided_slice %420 {offsets = [0, 0], sizes = [8, 32], strides = [1, 1]} : vector<32x32xf32> to vector<8x32xf32>
    %cst_186 = arith.constant dense<0.000000e+00> : vector<8x32xf32>
    %442 = tpu.matmul %440, %441, %cst_186 {dimension_numbers = #tpu.dot_dimension_numbers<[1], [0], [0], [1], [0, 0, 1, 1], [], []>} : vector<8x8xf32>, vector<8x32xf32>, vector<8x32xf32> -> vector<8x32xf32>
    %443 = arith.addf %424, %442 : vector<8x32xf32>
    %444 = vector.extract_strided_slice %409 {offsets = [0, 8], sizes = [8, 8], strides = [1, 1]} : vector<8x32xf32> to vector<8x8xf32>
    %445 = vector.extract_strided_slice %417 {offsets = [0, 8], sizes = [8, 8], strides = [1, 1]} : vector<8x32xf32> to vector<8x8xf32>
    %446 = vector.extract_strided_slice %418 {offsets = [0, 8], sizes = [8, 8], strides = [1, 1]} : vector<8x32xf32> to vector<8x8xf32>
    %cst_187 = arith.constant dense<0.000000e+00> : vector<8x8xf32>
    %447 = tpu.matmul %444, %445, %cst_187 {dimension_numbers = #tpu.dot_dimension_numbers<[1], [1], [0], [0], [0, 0, 1, 0], [], []>} : vector<8x8xf32>, vector<8x8xf32>, vector<8x8xf32> -> vector<8x8xf32>
    %448 = arith.addf %447, %5 : vector<8x8xf32>
    %cst_188 = arith.constant dense<0xFF800000> : vector<8xf32>
    %449 = vector.multi_reduction <maximumf>, %448, %cst_188 [1] : vector<8x8xf32> to vector<8xf32>
    %450 = vector.shape_cast %449 : vector<8xf32> to vector<8x1xf32>
    %451 = vector.broadcast %450 : vector<8x1xf32> to vector<8x8xf32>
    %452 = arith.subf %448, %451 : vector<8x8xf32>
    %453 = math.exp %452 : vector<8x8xf32>
    %cst_189 = arith.constant dense<0.000000e+00> : vector<8xf32>
    %454 = vector.multi_reduction <add>, %453, %cst_189 [1] : vector<8x8xf32> to vector<8xf32>
    %455 = vector.shape_cast %454 : vector<8xf32> to vector<8x1xf32>
    %456 = tpu.reciprocal %455 {approx = true} : vector<8x1xf32> -> vector<8x1xf32>
    %457 = vector.broadcast %456 : vector<8x1xf32> to vector<8x8xf32>
    %458 = arith.mulf %453, %457 : vector<8x8xf32>
    %cst_190 = arith.constant dense<0.000000e+00> : vector<8x8xf32>
    %459 = tpu.matmul %458, %446, %cst_190 {dimension_numbers = #tpu.dot_dimension_numbers<[1], [0], [0], [1], [0, 0, 1, 1], [], []>} : vector<8x8xf32>, vector<8x8xf32>, vector<8x8xf32> -> vector<8x8xf32>
    %460 = vector.extract_strided_slice %420 {offsets = [8, 0], sizes = [8, 32], strides = [1, 1]} : vector<32x32xf32> to vector<8x32xf32>
    %cst_191 = arith.constant dense<0.000000e+00> : vector<8x32xf32>
    %461 = tpu.matmul %459, %460, %cst_191 {dimension_numbers = #tpu.dot_dimension_numbers<[1], [0], [0], [1], [0, 0, 1, 1], [], []>} : vector<8x8xf32>, vector<8x32xf32>, vector<8x32xf32> -> vector<8x32xf32>
    %462 = arith.addf %443, %461 : vector<8x32xf32>
    %463 = vector.extract_strided_slice %409 {offsets = [0, 16], sizes = [8, 8], strides = [1, 1]} : vector<8x32xf32> to vector<8x8xf32>
    %464 = vector.extract_strided_slice %417 {offsets = [0, 16], sizes = [8, 8], strides = [1, 1]} : vector<8x32xf32> to vector<8x8xf32>
    %465 = vector.extract_strided_slice %418 {offsets = [0, 16], sizes = [8, 8], strides = [1, 1]} : vector<8x32xf32> to vector<8x8xf32>
    %cst_192 = arith.constant dense<0.000000e+00> : vector<8x8xf32>
    %466 = tpu.matmul %463, %464, %cst_192 {dimension_numbers = #tpu.dot_dimension_numbers<[1], [1], [0], [0], [0, 0, 1, 0], [], []>} : vector<8x8xf32>, vector<8x8xf32>, vector<8x8xf32> -> vector<8x8xf32>
    %467 = arith.addf %466, %5 : vector<8x8xf32>
    %cst_193 = arith.constant dense<0xFF800000> : vector<8xf32>
    %468 = vector.multi_reduction <maximumf>, %467, %cst_193 [1] : vector<8x8xf32> to vector<8xf32>
    %469 = vector.shape_cast %468 : vector<8xf32> to vector<8x1xf32>
    %470 = vector.broadcast %469 : vector<8x1xf32> to vector<8x8xf32>
    %471 = arith.subf %467, %470 : vector<8x8xf32>
    %472 = math.exp %471 : vector<8x8xf32>
    %cst_194 = arith.constant dense<0.000000e+00> : vector<8xf32>
    %473 = vector.multi_reduction <add>, %472, %cst_194 [1] : vector<8x8xf32> to vector<8xf32>
    %474 = vector.shape_cast %473 : vector<8xf32> to vector<8x1xf32>
    %475 = tpu.reciprocal %474 {approx = true} : vector<8x1xf32> -> vector<8x1xf32>
    %476 = vector.broadcast %475 : vector<8x1xf32> to vector<8x8xf32>
    %477 = arith.mulf %472, %476 : vector<8x8xf32>
    %cst_195 = arith.constant dense<0.000000e+00> : vector<8x8xf32>
    %478 = tpu.matmul %477, %465, %cst_195 {dimension_numbers = #tpu.dot_dimension_numbers<[1], [0], [0], [1], [0, 0, 1, 1], [], []>} : vector<8x8xf32>, vector<8x8xf32>, vector<8x8xf32> -> vector<8x8xf32>
    %479 = vector.extract_strided_slice %420 {offsets = [16, 0], sizes = [8, 32], strides = [1, 1]} : vector<32x32xf32> to vector<8x32xf32>
    %cst_196 = arith.constant dense<0.000000e+00> : vector<8x32xf32>
    %480 = tpu.matmul %478, %479, %cst_196 {dimension_numbers = #tpu.dot_dimension_numbers<[1], [0], [0], [1], [0, 0, 1, 1], [], []>} : vector<8x8xf32>, vector<8x32xf32>, vector<8x32xf32> -> vector<8x32xf32>
    %481 = arith.addf %462, %480 : vector<8x32xf32>
    %482 = vector.extract_strided_slice %409 {offsets = [0, 24], sizes = [8, 8], strides = [1, 1]} : vector<8x32xf32> to vector<8x8xf32>
    %483 = vector.extract_strided_slice %417 {offsets = [0, 24], sizes = [8, 8], strides = [1, 1]} : vector<8x32xf32> to vector<8x8xf32>
    %484 = vector.extract_strided_slice %418 {offsets = [0, 24], sizes = [8, 8], strides = [1, 1]} : vector<8x32xf32> to vector<8x8xf32>
    %cst_197 = arith.constant dense<0.000000e+00> : vector<8x8xf32>
    %485 = tpu.matmul %482, %483, %cst_197 {dimension_numbers = #tpu.dot_dimension_numbers<[1], [1], [0], [0], [0, 0, 1, 0], [], []>} : vector<8x8xf32>, vector<8x8xf32>, vector<8x8xf32> -> vector<8x8xf32>
    %486 = arith.addf %485, %5 : vector<8x8xf32>
    %cst_198 = arith.constant dense<0xFF800000> : vector<8xf32>
    %487 = vector.multi_reduction <maximumf>, %486, %cst_198 [1] : vector<8x8xf32> to vector<8xf32>
    %488 = vector.shape_cast %487 : vector<8xf32> to vector<8x1xf32>
    %489 = vector.broadcast %488 : vector<8x1xf32> to vector<8x8xf32>
    %490 = arith.subf %486, %489 : vector<8x8xf32>
    %491 = math.exp %490 : vector<8x8xf32>
    %cst_199 = arith.constant dense<0.000000e+00> : vector<8xf32>
    %492 = vector.multi_reduction <add>, %491, %cst_199 [1] : vector<8x8xf32> to vector<8xf32>
    %493 = vector.shape_cast %492 : vector<8xf32> to vector<8x1xf32>
    %494 = tpu.reciprocal %493 {approx = true} : vector<8x1xf32> -> vector<8x1xf32>
    %495 = vector.broadcast %494 : vector<8x1xf32> to vector<8x8xf32>
    %496 = arith.mulf %491, %495 : vector<8x8xf32>
    %cst_200 = arith.constant dense<0.000000e+00> : vector<8x8xf32>
    %497 = tpu.matmul %496, %484, %cst_200 {dimension_numbers = #tpu.dot_dimension_numbers<[1], [0], [0], [1], [0, 0, 1, 1], [], []>} : vector<8x8xf32>, vector<8x8xf32>, vector<8x8xf32> -> vector<8x8xf32>
    %498 = vector.extract_strided_slice %420 {offsets = [24, 0], sizes = [8, 32], strides = [1, 1]} : vector<32x32xf32> to vector<8x32xf32>
    %cst_201 = arith.constant dense<0.000000e+00> : vector<8x32xf32>
    %499 = tpu.matmul %497, %498, %cst_201 {dimension_numbers = #tpu.dot_dimension_numbers<[1], [0], [0], [1], [0, 0, 1, 1], [], []>} : vector<8x8xf32>, vector<8x32xf32>, vector<8x32xf32> -> vector<8x32xf32>
    %500 = arith.addf %481, %499 : vector<8x32xf32>
    %cst_202 = arith.constant dense<0.000000e+00> : vector<8xf32>
    %501 = vector.multi_reduction <add>, %500, %cst_202 [1] : vector<8x32xf32> to vector<8xf32>
    %502 = vector.shape_cast %501 : vector<8xf32> to vector<8x1xf32>
    %cst_203 = arith.constant 3.200000e+01 : f32
    %503 = vector.broadcast %cst_203 : f32 to vector<8x1xf32>
    %504 = arith.divf %502, %503 : vector<8x1xf32>
    %505 = vector.broadcast %504 : vector<8x1xf32> to vector<8x32xf32>
    %506 = arith.subf %500, %505 : vector<8x32xf32>
    %507 = arith.mulf %506, %506 : vector<8x32xf32>
    %cst_204 = arith.constant dense<0.000000e+00> : vector<8xf32>
    %508 = vector.multi_reduction <add>, %507, %cst_204 [1] : vector<8x32xf32> to vector<8xf32>
    %509 = vector.shape_cast %508 : vector<8xf32> to vector<8x1xf32>
    %cst_205 = arith.constant 3.200000e+01 : f32
    %510 = vector.broadcast %cst_205 : f32 to vector<8x1xf32>
    %511 = arith.divf %509, %510 : vector<8x1xf32>
    %cst_206 = arith.constant 9.99999974E-6 : f32
    %512 = vector.broadcast %cst_206 : f32 to vector<8x1xf32>
    %513 = arith.addf %511, %512 : vector<8x1xf32>
    %514 = math.rsqrt %513 : vector<8x1xf32>
    %515 = vector.broadcast %514 : vector<8x1xf32> to vector<8x32xf32>
    %516 = arith.mulf %506, %515 : vector<8x32xf32>
    %c1_207 = arith.constant 1 : index
    %c0_208 = arith.constant 0 : index
    %c0_209 = arith.constant 0 : index
    %517 = vector.load %arg15[%c1_207, %c0_208, %c0_209] : memref<3x32x64xf32, #tpu.memory_space<vmem>>, vector<1x32x64xf32>
    %518 = vector.shape_cast %517 : vector<1x32x64xf32> to vector<32x64xf32>
    %cst_210 = arith.constant dense<0.000000e+00> : vector<8x64xf32>
    %519 = tpu.matmul %516, %518, %cst_210 {dimension_numbers = #tpu.dot_dimension_numbers<[1], [0], [0], [1], [0, 0, 1, 1], [], []>} : vector<8x32xf32>, vector<32x64xf32>, vector<8x64xf32> -> vector<8x64xf32>
    %c1_211 = arith.constant 1 : index
    %c0_212 = arith.constant 0 : index
    %c0_213 = arith.constant 0 : index
    %520 = vector.load %arg16[%c1_211, %c0_212, %c0_213] : memref<3x1x64xf32, #tpu.memory_space<vmem>>, vector<1x1x64xf32>
    %521 = vector.shape_cast %520 : vector<1x1x64xf32> to vector<1x64xf32>
    %522 = vector.broadcast %521 : vector<1x64xf32> to vector<8x64xf32>
    %523 = arith.addf %519, %522 : vector<8x64xf32>
    %cst_214 = arith.constant 0.000000e+00 : f32
    %524 = vector.broadcast %cst_214 : f32 to vector<8x64xf32>
    %525 = arith.maximumf %523, %524 : vector<8x64xf32>
    %c1_215 = arith.constant 1 : index
    %c0_216 = arith.constant 0 : index
    %c0_217 = arith.constant 0 : index
    %526 = vector.load %arg17[%c1_215, %c0_216, %c0_217] : memref<3x64x32xf32, #tpu.memory_space<vmem>>, vector<1x64x32xf32>
    %527 = vector.shape_cast %526 : vector<1x64x32xf32> to vector<64x32xf32>
    %cst_218 = arith.constant dense<0.000000e+00> : vector<8x32xf32>
    %528 = tpu.matmul %525, %527, %cst_218 {dimension_numbers = #tpu.dot_dimension_numbers<[1], [0], [0], [1], [0, 0, 1, 1], [], []>} : vector<8x64xf32>, vector<64x32xf32>, vector<8x32xf32> -> vector<8x32xf32>
    %529 = arith.addf %500, %528 : vector<8x32xf32>
    %c1_219 = arith.constant 1 : index
    %c0_220 = arith.constant 0 : index
    %c0_221 = arith.constant 0 : index
    %530 = vector.load %arg18[%c1_219, %c0_220, %c0_221] : memref<3x1x32xf32, #tpu.memory_space<vmem>>, vector<1x1x32xf32>
    %531 = vector.shape_cast %530 : vector<1x1x32xf32> to vector<1x32xf32>
    %532 = vector.broadcast %531 : vector<1x32xf32> to vector<8x32xf32>
    %533 = arith.addf %529, %532 : vector<8x32xf32>
    %cst_222 = arith.constant dense<0.000000e+00> : vector<8xf32>
    %534 = vector.multi_reduction <add>, %533, %cst_222 [1] : vector<8x32xf32> to vector<8xf32>
    %535 = vector.shape_cast %534 : vector<8xf32> to vector<8x1xf32>
    %cst_223 = arith.constant 3.200000e+01 : f32
    %536 = vector.broadcast %cst_223 : f32 to vector<8x1xf32>
    %537 = arith.divf %535, %536 : vector<8x1xf32>
    %538 = vector.broadcast %537 : vector<8x1xf32> to vector<8x32xf32>
    %539 = arith.subf %533, %538 : vector<8x32xf32>
    %540 = arith.mulf %539, %539 : vector<8x32xf32>
    %cst_224 = arith.constant dense<0.000000e+00> : vector<8xf32>
    %541 = vector.multi_reduction <add>, %540, %cst_224 [1] : vector<8x32xf32> to vector<8xf32>
    %542 = vector.shape_cast %541 : vector<8xf32> to vector<8x1xf32>
    %cst_225 = arith.constant 3.200000e+01 : f32
    %543 = vector.broadcast %cst_225 : f32 to vector<8x1xf32>
    %544 = arith.divf %542, %543 : vector<8x1xf32>
    %cst_226 = arith.constant 9.99999974E-6 : f32
    %545 = vector.broadcast %cst_226 : f32 to vector<8x1xf32>
    %546 = arith.addf %544, %545 : vector<8x1xf32>
    %547 = math.rsqrt %546 : vector<8x1xf32>
    %548 = vector.broadcast %547 : vector<8x1xf32> to vector<8x32xf32>
    %549 = arith.mulf %539, %548 : vector<8x32xf32>
    %c2 = arith.constant 2 : index
    %c0_227 = arith.constant 0 : index
    %c0_228 = arith.constant 0 : index
    %550 = vector.load %arg5[%c2, %c0_227, %c0_228] : memref<3x32x96xf32, #tpu.memory_space<vmem>>, vector<1x32x96xf32>
    %551 = vector.shape_cast %550 : vector<1x32x96xf32> to vector<32x96xf32>
    %cst_229 = arith.constant dense<0.000000e+00> : vector<8x96xf32>
    %552 = tpu.matmul %549, %551, %cst_229 {dimension_numbers = #tpu.dot_dimension_numbers<[1], [0], [0], [1], [0, 0, 1, 1], [], []>} : vector<8x32xf32>, vector<32x96xf32>, vector<8x96xf32> -> vector<8x96xf32>
    %c2_230 = arith.constant 2 : index
    %c0_231 = arith.constant 0 : index
    %c0_232 = arith.constant 0 : index
    %553 = vector.load %arg6[%c2_230, %c0_231, %c0_232] : memref<3x1x96xf32, #tpu.memory_space<vmem>>, vector<1x1x96xf32>
    %554 = vector.shape_cast %553 : vector<1x1x96xf32> to vector<1x96xf32>
    %555 = vector.broadcast %554 : vector<1x96xf32> to vector<8x96xf32>
    %556 = arith.addf %552, %555 : vector<8x96xf32>
    %557 = vector.extract_strided_slice %556 {offsets = [0, 0], sizes = [8, 32], strides = [1, 1]} : vector<8x96xf32> to vector<8x32xf32>
    %558 = vector.extract_strided_slice %556 {offsets = [0, 32], sizes = [8, 32], strides = [1, 1]} : vector<8x96xf32> to vector<8x32xf32>
    %559 = vector.extract_strided_slice %556 {offsets = [0, 64], sizes = [8, 32], strides = [1, 1]} : vector<8x96xf32> to vector<8x32xf32>
    %c2_233 = arith.constant 2 : index
    %c0_234 = arith.constant 0 : index
    %c0_235 = arith.constant 0 : index
    %560 = vector.load %arg7[%c2_233, %c0_234, %c0_235] : memref<3x32x32xf32, #tpu.memory_space<vmem>>, vector<1x32x32xf32>
    %561 = vector.shape_cast %560 : vector<1x32x32xf32> to vector<32x32xf32>
    %c2_236 = arith.constant 2 : index
    %c0_237 = arith.constant 0 : index
    %c0_238 = arith.constant 0 : index
    %562 = vector.load %arg8[%c2_236, %c0_237, %c0_238] : memref<3x1x32xf32, #tpu.memory_space<vmem>>, vector<1x1x32xf32>
    %563 = vector.shape_cast %562 : vector<1x1x32xf32> to vector<1x32xf32>
    %564 = vector.broadcast %563 : vector<1x32xf32> to vector<8x32xf32>
    %565 = arith.addf %533, %564 : vector<8x32xf32>
    %566 = vector.extract_strided_slice %557 {offsets = [0, 0], sizes = [8, 8], strides = [1, 1]} : vector<8x32xf32> to vector<8x8xf32>
    %567 = vector.extract_strided_slice %558 {offsets = [0, 0], sizes = [8, 8], strides = [1, 1]} : vector<8x32xf32> to vector<8x8xf32>
    %568 = vector.extract_strided_slice %559 {offsets = [0, 0], sizes = [8, 8], strides = [1, 1]} : vector<8x32xf32> to vector<8x8xf32>
    %cst_239 = arith.constant dense<0.000000e+00> : vector<8x8xf32>
    %569 = tpu.matmul %566, %567, %cst_239 {dimension_numbers = #tpu.dot_dimension_numbers<[1], [1], [0], [0], [0, 0, 1, 0], [], []>} : vector<8x8xf32>, vector<8x8xf32>, vector<8x8xf32> -> vector<8x8xf32>
    %570 = arith.addf %569, %7 : vector<8x8xf32>
    %cst_240 = arith.constant dense<0xFF800000> : vector<8xf32>
    %571 = vector.multi_reduction <maximumf>, %570, %cst_240 [1] : vector<8x8xf32> to vector<8xf32>
    %572 = vector.shape_cast %571 : vector<8xf32> to vector<8x1xf32>
    %573 = vector.broadcast %572 : vector<8x1xf32> to vector<8x8xf32>
    %574 = arith.subf %570, %573 : vector<8x8xf32>
    %575 = math.exp %574 : vector<8x8xf32>
    %cst_241 = arith.constant dense<0.000000e+00> : vector<8xf32>
    %576 = vector.multi_reduction <add>, %575, %cst_241 [1] : vector<8x8xf32> to vector<8xf32>
    %577 = vector.shape_cast %576 : vector<8xf32> to vector<8x1xf32>
    %578 = tpu.reciprocal %577 {approx = true} : vector<8x1xf32> -> vector<8x1xf32>
    %579 = vector.broadcast %578 : vector<8x1xf32> to vector<8x8xf32>
    %580 = arith.mulf %575, %579 : vector<8x8xf32>
    %cst_242 = arith.constant dense<0.000000e+00> : vector<8x8xf32>
    %581 = tpu.matmul %580, %568, %cst_242 {dimension_numbers = #tpu.dot_dimension_numbers<[1], [0], [0], [1], [0, 0, 1, 1], [], []>} : vector<8x8xf32>, vector<8x8xf32>, vector<8x8xf32> -> vector<8x8xf32>
    %582 = vector.extract_strided_slice %561 {offsets = [0, 0], sizes = [8, 32], strides = [1, 1]} : vector<32x32xf32> to vector<8x32xf32>
    %cst_243 = arith.constant dense<0.000000e+00> : vector<8x32xf32>
    %583 = tpu.matmul %581, %582, %cst_243 {dimension_numbers = #tpu.dot_dimension_numbers<[1], [0], [0], [1], [0, 0, 1, 1], [], []>} : vector<8x8xf32>, vector<8x32xf32>, vector<8x32xf32> -> vector<8x32xf32>
    %584 = arith.addf %565, %583 : vector<8x32xf32>
    %585 = vector.extract_strided_slice %557 {offsets = [0, 8], sizes = [8, 8], strides = [1, 1]} : vector<8x32xf32> to vector<8x8xf32>
    %586 = vector.extract_strided_slice %558 {offsets = [0, 8], sizes = [8, 8], strides = [1, 1]} : vector<8x32xf32> to vector<8x8xf32>
    %587 = vector.extract_strided_slice %559 {offsets = [0, 8], sizes = [8, 8], strides = [1, 1]} : vector<8x32xf32> to vector<8x8xf32>
    %cst_244 = arith.constant dense<0.000000e+00> : vector<8x8xf32>
    %588 = tpu.matmul %585, %586, %cst_244 {dimension_numbers = #tpu.dot_dimension_numbers<[1], [1], [0], [0], [0, 0, 1, 0], [], []>} : vector<8x8xf32>, vector<8x8xf32>, vector<8x8xf32> -> vector<8x8xf32>
    %589 = arith.addf %588, %7 : vector<8x8xf32>
    %cst_245 = arith.constant dense<0xFF800000> : vector<8xf32>
    %590 = vector.multi_reduction <maximumf>, %589, %cst_245 [1] : vector<8x8xf32> to vector<8xf32>
    %591 = vector.shape_cast %590 : vector<8xf32> to vector<8x1xf32>
    %592 = vector.broadcast %591 : vector<8x1xf32> to vector<8x8xf32>
    %593 = arith.subf %589, %592 : vector<8x8xf32>
    %594 = math.exp %593 : vector<8x8xf32>
    %cst_246 = arith.constant dense<0.000000e+00> : vector<8xf32>
    %595 = vector.multi_reduction <add>, %594, %cst_246 [1] : vector<8x8xf32> to vector<8xf32>
    %596 = vector.shape_cast %595 : vector<8xf32> to vector<8x1xf32>
    %597 = tpu.reciprocal %596 {approx = true} : vector<8x1xf32> -> vector<8x1xf32>
    %598 = vector.broadcast %597 : vector<8x1xf32> to vector<8x8xf32>
    %599 = arith.mulf %594, %598 : vector<8x8xf32>
    %cst_247 = arith.constant dense<0.000000e+00> : vector<8x8xf32>
    %600 = tpu.matmul %599, %587, %cst_247 {dimension_numbers = #tpu.dot_dimension_numbers<[1], [0], [0], [1], [0, 0, 1, 1], [], []>} : vector<8x8xf32>, vector<8x8xf32>, vector<8x8xf32> -> vector<8x8xf32>
    %601 = vector.extract_strided_slice %561 {offsets = [8, 0], sizes = [8, 32], strides = [1, 1]} : vector<32x32xf32> to vector<8x32xf32>
    %cst_248 = arith.constant dense<0.000000e+00> : vector<8x32xf32>
    %602 = tpu.matmul %600, %601, %cst_248 {dimension_numbers = #tpu.dot_dimension_numbers<[1], [0], [0], [1], [0, 0, 1, 1], [], []>} : vector<8x8xf32>, vector<8x32xf32>, vector<8x32xf32> -> vector<8x32xf32>
    %603 = arith.addf %584, %602 : vector<8x32xf32>
    %604 = vector.extract_strided_slice %557 {offsets = [0, 16], sizes = [8, 8], strides = [1, 1]} : vector<8x32xf32> to vector<8x8xf32>
    %605 = vector.extract_strided_slice %558 {offsets = [0, 16], sizes = [8, 8], strides = [1, 1]} : vector<8x32xf32> to vector<8x8xf32>
    %606 = vector.extract_strided_slice %559 {offsets = [0, 16], sizes = [8, 8], strides = [1, 1]} : vector<8x32xf32> to vector<8x8xf32>
    %cst_249 = arith.constant dense<0.000000e+00> : vector<8x8xf32>
    %607 = tpu.matmul %604, %605, %cst_249 {dimension_numbers = #tpu.dot_dimension_numbers<[1], [1], [0], [0], [0, 0, 1, 0], [], []>} : vector<8x8xf32>, vector<8x8xf32>, vector<8x8xf32> -> vector<8x8xf32>
    %608 = arith.addf %607, %7 : vector<8x8xf32>
    %cst_250 = arith.constant dense<0xFF800000> : vector<8xf32>
    %609 = vector.multi_reduction <maximumf>, %608, %cst_250 [1] : vector<8x8xf32> to vector<8xf32>
    %610 = vector.shape_cast %609 : vector<8xf32> to vector<8x1xf32>
    %611 = vector.broadcast %610 : vector<8x1xf32> to vector<8x8xf32>
    %612 = arith.subf %608, %611 : vector<8x8xf32>
    %613 = math.exp %612 : vector<8x8xf32>
    %cst_251 = arith.constant dense<0.000000e+00> : vector<8xf32>
    %614 = vector.multi_reduction <add>, %613, %cst_251 [1] : vector<8x8xf32> to vector<8xf32>
    %615 = vector.shape_cast %614 : vector<8xf32> to vector<8x1xf32>
    %616 = tpu.reciprocal %615 {approx = true} : vector<8x1xf32> -> vector<8x1xf32>
    %617 = vector.broadcast %616 : vector<8x1xf32> to vector<8x8xf32>
    %618 = arith.mulf %613, %617 : vector<8x8xf32>
    %cst_252 = arith.constant dense<0.000000e+00> : vector<8x8xf32>
    %619 = tpu.matmul %618, %606, %cst_252 {dimension_numbers = #tpu.dot_dimension_numbers<[1], [0], [0], [1], [0, 0, 1, 1], [], []>} : vector<8x8xf32>, vector<8x8xf32>, vector<8x8xf32> -> vector<8x8xf32>
    %620 = vector.extract_strided_slice %561 {offsets = [16, 0], sizes = [8, 32], strides = [1, 1]} : vector<32x32xf32> to vector<8x32xf32>
    %cst_253 = arith.constant dense<0.000000e+00> : vector<8x32xf32>
    %621 = tpu.matmul %619, %620, %cst_253 {dimension_numbers = #tpu.dot_dimension_numbers<[1], [0], [0], [1], [0, 0, 1, 1], [], []>} : vector<8x8xf32>, vector<8x32xf32>, vector<8x32xf32> -> vector<8x32xf32>
    %622 = arith.addf %603, %621 : vector<8x32xf32>
    %623 = vector.extract_strided_slice %557 {offsets = [0, 24], sizes = [8, 8], strides = [1, 1]} : vector<8x32xf32> to vector<8x8xf32>
    %624 = vector.extract_strided_slice %558 {offsets = [0, 24], sizes = [8, 8], strides = [1, 1]} : vector<8x32xf32> to vector<8x8xf32>
    %625 = vector.extract_strided_slice %559 {offsets = [0, 24], sizes = [8, 8], strides = [1, 1]} : vector<8x32xf32> to vector<8x8xf32>
    %cst_254 = arith.constant dense<0.000000e+00> : vector<8x8xf32>
    %626 = tpu.matmul %623, %624, %cst_254 {dimension_numbers = #tpu.dot_dimension_numbers<[1], [1], [0], [0], [0, 0, 1, 0], [], []>} : vector<8x8xf32>, vector<8x8xf32>, vector<8x8xf32> -> vector<8x8xf32>
    %627 = arith.addf %626, %7 : vector<8x8xf32>
    %cst_255 = arith.constant dense<0xFF800000> : vector<8xf32>
    %628 = vector.multi_reduction <maximumf>, %627, %cst_255 [1] : vector<8x8xf32> to vector<8xf32>
    %629 = vector.shape_cast %628 : vector<8xf32> to vector<8x1xf32>
    %630 = vector.broadcast %629 : vector<8x1xf32> to vector<8x8xf32>
    %631 = arith.subf %627, %630 : vector<8x8xf32>
    %632 = math.exp %631 : vector<8x8xf32>
    %cst_256 = arith.constant dense<0.000000e+00> : vector<8xf32>
    %633 = vector.multi_reduction <add>, %632, %cst_256 [1] : vector<8x8xf32> to vector<8xf32>
    %634 = vector.shape_cast %633 : vector<8xf32> to vector<8x1xf32>
    %635 = tpu.reciprocal %634 {approx = true} : vector<8x1xf32> -> vector<8x1xf32>
    %636 = vector.broadcast %635 : vector<8x1xf32> to vector<8x8xf32>
    %637 = arith.mulf %632, %636 : vector<8x8xf32>
    %cst_257 = arith.constant dense<0.000000e+00> : vector<8x8xf32>
    %638 = tpu.matmul %637, %625, %cst_257 {dimension_numbers = #tpu.dot_dimension_numbers<[1], [0], [0], [1], [0, 0, 1, 1], [], []>} : vector<8x8xf32>, vector<8x8xf32>, vector<8x8xf32> -> vector<8x8xf32>
    %639 = vector.extract_strided_slice %561 {offsets = [24, 0], sizes = [8, 32], strides = [1, 1]} : vector<32x32xf32> to vector<8x32xf32>
    %cst_258 = arith.constant dense<0.000000e+00> : vector<8x32xf32>
    %640 = tpu.matmul %638, %639, %cst_258 {dimension_numbers = #tpu.dot_dimension_numbers<[1], [0], [0], [1], [0, 0, 1, 1], [], []>} : vector<8x8xf32>, vector<8x32xf32>, vector<8x32xf32> -> vector<8x32xf32>
    %641 = arith.addf %622, %640 : vector<8x32xf32>
    %cst_259 = arith.constant dense<0.000000e+00> : vector<8xf32>
    %642 = vector.multi_reduction <add>, %641, %cst_259 [1] : vector<8x32xf32> to vector<8xf32>
    %643 = vector.shape_cast %642 : vector<8xf32> to vector<8x1xf32>
    %cst_260 = arith.constant 3.200000e+01 : f32
    %644 = vector.broadcast %cst_260 : f32 to vector<8x1xf32>
    %645 = arith.divf %643, %644 : vector<8x1xf32>
    %646 = vector.broadcast %645 : vector<8x1xf32> to vector<8x32xf32>
    %647 = arith.subf %641, %646 : vector<8x32xf32>
    %648 = arith.mulf %647, %647 : vector<8x32xf32>
    %cst_261 = arith.constant dense<0.000000e+00> : vector<8xf32>
    %649 = vector.multi_reduction <add>, %648, %cst_261 [1] : vector<8x32xf32> to vector<8xf32>
    %650 = vector.shape_cast %649 : vector<8xf32> to vector<8x1xf32>
    %cst_262 = arith.constant 3.200000e+01 : f32
    %651 = vector.broadcast %cst_262 : f32 to vector<8x1xf32>
    %652 = arith.divf %650, %651 : vector<8x1xf32>
    %cst_263 = arith.constant 9.99999974E-6 : f32
    %653 = vector.broadcast %cst_263 : f32 to vector<8x1xf32>
    %654 = arith.addf %652, %653 : vector<8x1xf32>
    %655 = math.rsqrt %654 : vector<8x1xf32>
    %656 = vector.broadcast %655 : vector<8x1xf32> to vector<8x32xf32>
    %657 = arith.mulf %647, %656 : vector<8x32xf32>
    %c2_264 = arith.constant 2 : index
    %c0_265 = arith.constant 0 : index
    %c0_266 = arith.constant 0 : index
    %658 = vector.load %arg9[%c2_264, %c0_265, %c0_266] : memref<3x32x32xf32, #tpu.memory_space<vmem>>, vector<1x32x32xf32>
    %659 = vector.shape_cast %658 : vector<1x32x32xf32> to vector<32x32xf32>
    %cst_267 = arith.constant dense<0.000000e+00> : vector<8x32xf32>
    %660 = tpu.matmul %657, %659, %cst_267 {dimension_numbers = #tpu.dot_dimension_numbers<[1], [0], [0], [1], [0, 0, 1, 1], [], []>} : vector<8x32xf32>, vector<32x32xf32>, vector<8x32xf32> -> vector<8x32xf32>
    %c2_268 = arith.constant 2 : index
    %c0_269 = arith.constant 0 : index
    %c0_270 = arith.constant 0 : index
    %661 = vector.load %arg10[%c2_268, %c0_269, %c0_270] : memref<3x1x32xf32, #tpu.memory_space<vmem>>, vector<1x1x32xf32>
    %662 = vector.shape_cast %661 : vector<1x1x32xf32> to vector<1x32xf32>
    %663 = vector.broadcast %662 : vector<1x32xf32> to vector<8x32xf32>
    %664 = arith.addf %660, %663 : vector<8x32xf32>
    %c2_271 = arith.constant 2 : index
    %c0_272 = arith.constant 0 : index
    %c0_273 = arith.constant 0 : index
    %665 = vector.load %arg11[%c2_271, %c0_272, %c0_273] : memref<3x32x64xf32, #tpu.memory_space<vmem>>, vector<1x32x64xf32>
    %666 = vector.shape_cast %665 : vector<1x32x64xf32> to vector<32x64xf32>
    %cst_274 = arith.constant dense<0.000000e+00> : vector<8x64xf32>
    %667 = tpu.matmul %23, %666, %cst_274 {dimension_numbers = #tpu.dot_dimension_numbers<[1], [0], [0], [1], [0, 0, 1, 1], [], []>} : vector<8x32xf32>, vector<32x64xf32>, vector<8x64xf32> -> vector<8x64xf32>
    %c2_275 = arith.constant 2 : index
    %c0_276 = arith.constant 0 : index
    %c0_277 = arith.constant 0 : index
    %668 = vector.load %arg12[%c2_275, %c0_276, %c0_277] : memref<3x1x64xf32, #tpu.memory_space<vmem>>, vector<1x1x64xf32>
    %669 = vector.shape_cast %668 : vector<1x1x64xf32> to vector<1x64xf32>
    %670 = vector.broadcast %669 : vector<1x64xf32> to vector<8x64xf32>
    %671 = arith.addf %667, %670 : vector<8x64xf32>
    %672 = vector.extract_strided_slice %671 {offsets = [0, 0], sizes = [8, 32], strides = [1, 1]} : vector<8x64xf32> to vector<8x32xf32>
    %673 = vector.extract_strided_slice %671 {offsets = [0, 32], sizes = [8, 32], strides = [1, 1]} : vector<8x64xf32> to vector<8x32xf32>
    %c2_278 = arith.constant 2 : index
    %c0_279 = arith.constant 0 : index
    %c0_280 = arith.constant 0 : index
    %674 = vector.load %arg13[%c2_278, %c0_279, %c0_280] : memref<3x32x32xf32, #tpu.memory_space<vmem>>, vector<1x32x32xf32>
    %675 = vector.shape_cast %674 : vector<1x32x32xf32> to vector<32x32xf32>
    %c2_281 = arith.constant 2 : index
    %c0_282 = arith.constant 0 : index
    %c0_283 = arith.constant 0 : index
    %676 = vector.load %arg14[%c2_281, %c0_282, %c0_283] : memref<3x1x32xf32, #tpu.memory_space<vmem>>, vector<1x1x32xf32>
    %677 = vector.shape_cast %676 : vector<1x1x32xf32> to vector<1x32xf32>
    %678 = vector.broadcast %677 : vector<1x32xf32> to vector<8x32xf32>
    %679 = arith.addf %641, %678 : vector<8x32xf32>
    %680 = vector.extract_strided_slice %664 {offsets = [0, 0], sizes = [8, 8], strides = [1, 1]} : vector<8x32xf32> to vector<8x8xf32>
    %681 = vector.extract_strided_slice %672 {offsets = [0, 0], sizes = [8, 8], strides = [1, 1]} : vector<8x32xf32> to vector<8x8xf32>
    %682 = vector.extract_strided_slice %673 {offsets = [0, 0], sizes = [8, 8], strides = [1, 1]} : vector<8x32xf32> to vector<8x8xf32>
    %cst_284 = arith.constant dense<0.000000e+00> : vector<8x8xf32>
    %683 = tpu.matmul %680, %681, %cst_284 {dimension_numbers = #tpu.dot_dimension_numbers<[1], [1], [0], [0], [0, 0, 1, 0], [], []>} : vector<8x8xf32>, vector<8x8xf32>, vector<8x8xf32> -> vector<8x8xf32>
    %684 = arith.addf %683, %5 : vector<8x8xf32>
    %cst_285 = arith.constant dense<0xFF800000> : vector<8xf32>
    %685 = vector.multi_reduction <maximumf>, %684, %cst_285 [1] : vector<8x8xf32> to vector<8xf32>
    %686 = vector.shape_cast %685 : vector<8xf32> to vector<8x1xf32>
    %687 = vector.broadcast %686 : vector<8x1xf32> to vector<8x8xf32>
    %688 = arith.subf %684, %687 : vector<8x8xf32>
    %689 = math.exp %688 : vector<8x8xf32>
    %cst_286 = arith.constant dense<0.000000e+00> : vector<8xf32>
    %690 = vector.multi_reduction <add>, %689, %cst_286 [1] : vector<8x8xf32> to vector<8xf32>
    %691 = vector.shape_cast %690 : vector<8xf32> to vector<8x1xf32>
    %692 = tpu.reciprocal %691 {approx = true} : vector<8x1xf32> -> vector<8x1xf32>
    %693 = vector.broadcast %692 : vector<8x1xf32> to vector<8x8xf32>
    %694 = arith.mulf %689, %693 : vector<8x8xf32>
    %cst_287 = arith.constant dense<0.000000e+00> : vector<8x8xf32>
    %695 = tpu.matmul %694, %682, %cst_287 {dimension_numbers = #tpu.dot_dimension_numbers<[1], [0], [0], [1], [0, 0, 1, 1], [], []>} : vector<8x8xf32>, vector<8x8xf32>, vector<8x8xf32> -> vector<8x8xf32>
    %696 = vector.extract_strided_slice %675 {offsets = [0, 0], sizes = [8, 32], strides = [1, 1]} : vector<32x32xf32> to vector<8x32xf32>
    %cst_288 = arith.constant dense<0.000000e+00> : vector<8x32xf32>
    %697 = tpu.matmul %695, %696, %cst_288 {dimension_numbers = #tpu.dot_dimension_numbers<[1], [0], [0], [1], [0, 0, 1, 1], [], []>} : vector<8x8xf32>, vector<8x32xf32>, vector<8x32xf32> -> vector<8x32xf32>
    %698 = arith.addf %679, %697 : vector<8x32xf32>
    %699 = vector.extract_strided_slice %664 {offsets = [0, 8], sizes = [8, 8], strides = [1, 1]} : vector<8x32xf32> to vector<8x8xf32>
    %700 = vector.extract_strided_slice %672 {offsets = [0, 8], sizes = [8, 8], strides = [1, 1]} : vector<8x32xf32> to vector<8x8xf32>
    %701 = vector.extract_strided_slice %673 {offsets = [0, 8], sizes = [8, 8], strides = [1, 1]} : vector<8x32xf32> to vector<8x8xf32>
    %cst_289 = arith.constant dense<0.000000e+00> : vector<8x8xf32>
    %702 = tpu.matmul %699, %700, %cst_289 {dimension_numbers = #tpu.dot_dimension_numbers<[1], [1], [0], [0], [0, 0, 1, 0], [], []>} : vector<8x8xf32>, vector<8x8xf32>, vector<8x8xf32> -> vector<8x8xf32>
    %703 = arith.addf %702, %5 : vector<8x8xf32>
    %cst_290 = arith.constant dense<0xFF800000> : vector<8xf32>
    %704 = vector.multi_reduction <maximumf>, %703, %cst_290 [1] : vector<8x8xf32> to vector<8xf32>
    %705 = vector.shape_cast %704 : vector<8xf32> to vector<8x1xf32>
    %706 = vector.broadcast %705 : vector<8x1xf32> to vector<8x8xf32>
    %707 = arith.subf %703, %706 : vector<8x8xf32>
    %708 = math.exp %707 : vector<8x8xf32>
    %cst_291 = arith.constant dense<0.000000e+00> : vector<8xf32>
    %709 = vector.multi_reduction <add>, %708, %cst_291 [1] : vector<8x8xf32> to vector<8xf32>
    %710 = vector.shape_cast %709 : vector<8xf32> to vector<8x1xf32>
    %711 = tpu.reciprocal %710 {approx = true} : vector<8x1xf32> -> vector<8x1xf32>
    %712 = vector.broadcast %711 : vector<8x1xf32> to vector<8x8xf32>
    %713 = arith.mulf %708, %712 : vector<8x8xf32>
    %cst_292 = arith.constant dense<0.000000e+00> : vector<8x8xf32>
    %714 = tpu.matmul %713, %701, %cst_292 {dimension_numbers = #tpu.dot_dimension_numbers<[1], [0], [0], [1], [0, 0, 1, 1], [], []>} : vector<8x8xf32>, vector<8x8xf32>, vector<8x8xf32> -> vector<8x8xf32>
    %715 = vector.extract_strided_slice %675 {offsets = [8, 0], sizes = [8, 32], strides = [1, 1]} : vector<32x32xf32> to vector<8x32xf32>
    %cst_293 = arith.constant dense<0.000000e+00> : vector<8x32xf32>
    %716 = tpu.matmul %714, %715, %cst_293 {dimension_numbers = #tpu.dot_dimension_numbers<[1], [0], [0], [1], [0, 0, 1, 1], [], []>} : vector<8x8xf32>, vector<8x32xf32>, vector<8x32xf32> -> vector<8x32xf32>
    %717 = arith.addf %698, %716 : vector<8x32xf32>
    %718 = vector.extract_strided_slice %664 {offsets = [0, 16], sizes = [8, 8], strides = [1, 1]} : vector<8x32xf32> to vector<8x8xf32>
    %719 = vector.extract_strided_slice %672 {offsets = [0, 16], sizes = [8, 8], strides = [1, 1]} : vector<8x32xf32> to vector<8x8xf32>
    %720 = vector.extract_strided_slice %673 {offsets = [0, 16], sizes = [8, 8], strides = [1, 1]} : vector<8x32xf32> to vector<8x8xf32>
    %cst_294 = arith.constant dense<0.000000e+00> : vector<8x8xf32>
    %721 = tpu.matmul %718, %719, %cst_294 {dimension_numbers = #tpu.dot_dimension_numbers<[1], [1], [0], [0], [0, 0, 1, 0], [], []>} : vector<8x8xf32>, vector<8x8xf32>, vector<8x8xf32> -> vector<8x8xf32>
    %722 = arith.addf %721, %5 : vector<8x8xf32>
    %cst_295 = arith.constant dense<0xFF800000> : vector<8xf32>
    %723 = vector.multi_reduction <maximumf>, %722, %cst_295 [1] : vector<8x8xf32> to vector<8xf32>
    %724 = vector.shape_cast %723 : vector<8xf32> to vector<8x1xf32>
    %725 = vector.broadcast %724 : vector<8x1xf32> to vector<8x8xf32>
    %726 = arith.subf %722, %725 : vector<8x8xf32>
    %727 = math.exp %726 : vector<8x8xf32>
    %cst_296 = arith.constant dense<0.000000e+00> : vector<8xf32>
    %728 = vector.multi_reduction <add>, %727, %cst_296 [1] : vector<8x8xf32> to vector<8xf32>
    %729 = vector.shape_cast %728 : vector<8xf32> to vector<8x1xf32>
    %730 = tpu.reciprocal %729 {approx = true} : vector<8x1xf32> -> vector<8x1xf32>
    %731 = vector.broadcast %730 : vector<8x1xf32> to vector<8x8xf32>
    %732 = arith.mulf %727, %731 : vector<8x8xf32>
    %cst_297 = arith.constant dense<0.000000e+00> : vector<8x8xf32>
    %733 = tpu.matmul %732, %720, %cst_297 {dimension_numbers = #tpu.dot_dimension_numbers<[1], [0], [0], [1], [0, 0, 1, 1], [], []>} : vector<8x8xf32>, vector<8x8xf32>, vector<8x8xf32> -> vector<8x8xf32>
    %734 = vector.extract_strided_slice %675 {offsets = [16, 0], sizes = [8, 32], strides = [1, 1]} : vector<32x32xf32> to vector<8x32xf32>
    %cst_298 = arith.constant dense<0.000000e+00> : vector<8x32xf32>
    %735 = tpu.matmul %733, %734, %cst_298 {dimension_numbers = #tpu.dot_dimension_numbers<[1], [0], [0], [1], [0, 0, 1, 1], [], []>} : vector<8x8xf32>, vector<8x32xf32>, vector<8x32xf32> -> vector<8x32xf32>
    %736 = arith.addf %717, %735 : vector<8x32xf32>
    %737 = vector.extract_strided_slice %664 {offsets = [0, 24], sizes = [8, 8], strides = [1, 1]} : vector<8x32xf32> to vector<8x8xf32>
    %738 = vector.extract_strided_slice %672 {offsets = [0, 24], sizes = [8, 8], strides = [1, 1]} : vector<8x32xf32> to vector<8x8xf32>
    %739 = vector.extract_strided_slice %673 {offsets = [0, 24], sizes = [8, 8], strides = [1, 1]} : vector<8x32xf32> to vector<8x8xf32>
    %cst_299 = arith.constant dense<0.000000e+00> : vector<8x8xf32>
    %740 = tpu.matmul %737, %738, %cst_299 {dimension_numbers = #tpu.dot_dimension_numbers<[1], [1], [0], [0], [0, 0, 1, 0], [], []>} : vector<8x8xf32>, vector<8x8xf32>, vector<8x8xf32> -> vector<8x8xf32>
    %741 = arith.addf %740, %5 : vector<8x8xf32>
    %cst_300 = arith.constant dense<0xFF800000> : vector<8xf32>
    %742 = vector.multi_reduction <maximumf>, %741, %cst_300 [1] : vector<8x8xf32> to vector<8xf32>
    %743 = vector.shape_cast %742 : vector<8xf32> to vector<8x1xf32>
    %744 = vector.broadcast %743 : vector<8x1xf32> to vector<8x8xf32>
    %745 = arith.subf %741, %744 : vector<8x8xf32>
    %746 = math.exp %745 : vector<8x8xf32>
    %cst_301 = arith.constant dense<0.000000e+00> : vector<8xf32>
    %747 = vector.multi_reduction <add>, %746, %cst_301 [1] : vector<8x8xf32> to vector<8xf32>
    %748 = vector.shape_cast %747 : vector<8xf32> to vector<8x1xf32>
    %749 = tpu.reciprocal %748 {approx = true} : vector<8x1xf32> -> vector<8x1xf32>
    %750 = vector.broadcast %749 : vector<8x1xf32> to vector<8x8xf32>
    %751 = arith.mulf %746, %750 : vector<8x8xf32>
    %cst_302 = arith.constant dense<0.000000e+00> : vector<8x8xf32>
    %752 = tpu.matmul %751, %739, %cst_302 {dimension_numbers = #tpu.dot_dimension_numbers<[1], [0], [0], [1], [0, 0, 1, 1], [], []>} : vector<8x8xf32>, vector<8x8xf32>, vector<8x8xf32> -> vector<8x8xf32>
    %753 = vector.extract_strided_slice %675 {offsets = [24, 0], sizes = [8, 32], strides = [1, 1]} : vector<32x32xf32> to vector<8x32xf32>
    %cst_303 = arith.constant dense<0.000000e+00> : vector<8x32xf32>
    %754 = tpu.matmul %752, %753, %cst_303 {dimension_numbers = #tpu.dot_dimension_numbers<[1], [0], [0], [1], [0, 0, 1, 1], [], []>} : vector<8x8xf32>, vector<8x32xf32>, vector<8x32xf32> -> vector<8x32xf32>
    %755 = arith.addf %736, %754 : vector<8x32xf32>
    %cst_304 = arith.constant dense<0.000000e+00> : vector<8xf32>
    %756 = vector.multi_reduction <add>, %755, %cst_304 [1] : vector<8x32xf32> to vector<8xf32>
    %757 = vector.shape_cast %756 : vector<8xf32> to vector<8x1xf32>
    %cst_305 = arith.constant 3.200000e+01 : f32
    %758 = vector.broadcast %cst_305 : f32 to vector<8x1xf32>
    %759 = arith.divf %757, %758 : vector<8x1xf32>
    %760 = vector.broadcast %759 : vector<8x1xf32> to vector<8x32xf32>
    %761 = arith.subf %755, %760 : vector<8x32xf32>
    %762 = arith.mulf %761, %761 : vector<8x32xf32>
    %cst_306 = arith.constant dense<0.000000e+00> : vector<8xf32>
    %763 = vector.multi_reduction <add>, %762, %cst_306 [1] : vector<8x32xf32> to vector<8xf32>
    %764 = vector.shape_cast %763 : vector<8xf32> to vector<8x1xf32>
    %cst_307 = arith.constant 3.200000e+01 : f32
    %765 = vector.broadcast %cst_307 : f32 to vector<8x1xf32>
    %766 = arith.divf %764, %765 : vector<8x1xf32>
    %cst_308 = arith.constant 9.99999974E-6 : f32
    %767 = vector.broadcast %cst_308 : f32 to vector<8x1xf32>
    %768 = arith.addf %766, %767 : vector<8x1xf32>
    %769 = math.rsqrt %768 : vector<8x1xf32>
    %770 = vector.broadcast %769 : vector<8x1xf32> to vector<8x32xf32>
    %771 = arith.mulf %761, %770 : vector<8x32xf32>
    %c2_309 = arith.constant 2 : index
    %c0_310 = arith.constant 0 : index
    %c0_311 = arith.constant 0 : index
    %772 = vector.load %arg15[%c2_309, %c0_310, %c0_311] : memref<3x32x64xf32, #tpu.memory_space<vmem>>, vector<1x32x64xf32>
    %773 = vector.shape_cast %772 : vector<1x32x64xf32> to vector<32x64xf32>
    %cst_312 = arith.constant dense<0.000000e+00> : vector<8x64xf32>
    %774 = tpu.matmul %771, %773, %cst_312 {dimension_numbers = #tpu.dot_dimension_numbers<[1], [0], [0], [1], [0, 0, 1, 1], [], []>} : vector<8x32xf32>, vector<32x64xf32>, vector<8x64xf32> -> vector<8x64xf32>
    %c2_313 = arith.constant 2 : index
    %c0_314 = arith.constant 0 : index
    %c0_315 = arith.constant 0 : index
    %775 = vector.load %arg16[%c2_313, %c0_314, %c0_315] : memref<3x1x64xf32, #tpu.memory_space<vmem>>, vector<1x1x64xf32>
    %776 = vector.shape_cast %775 : vector<1x1x64xf32> to vector<1x64xf32>
    %777 = vector.broadcast %776 : vector<1x64xf32> to vector<8x64xf32>
    %778 = arith.addf %774, %777 : vector<8x64xf32>
    %cst_316 = arith.constant 0.000000e+00 : f32
    %779 = vector.broadcast %cst_316 : f32 to vector<8x64xf32>
    %780 = arith.maximumf %778, %779 : vector<8x64xf32>
    %c2_317 = arith.constant 2 : index
    %c0_318 = arith.constant 0 : index
    %c0_319 = arith.constant 0 : index
    %781 = vector.load %arg17[%c2_317, %c0_318, %c0_319] : memref<3x64x32xf32, #tpu.memory_space<vmem>>, vector<1x64x32xf32>
    %782 = vector.shape_cast %781 : vector<1x64x32xf32> to vector<64x32xf32>
    %cst_320 = arith.constant dense<0.000000e+00> : vector<8x32xf32>
    %783 = tpu.matmul %780, %782, %cst_320 {dimension_numbers = #tpu.dot_dimension_numbers<[1], [0], [0], [1], [0, 0, 1, 1], [], []>} : vector<8x64xf32>, vector<64x32xf32>, vector<8x32xf32> -> vector<8x32xf32>
    %784 = arith.addf %755, %783 : vector<8x32xf32>
    %c2_321 = arith.constant 2 : index
    %c0_322 = arith.constant 0 : index
    %c0_323 = arith.constant 0 : index
    %785 = vector.load %arg18[%c2_321, %c0_322, %c0_323] : memref<3x1x32xf32, #tpu.memory_space<vmem>>, vector<1x1x32xf32>
    %786 = vector.shape_cast %785 : vector<1x1x32xf32> to vector<1x32xf32>
    %787 = vector.broadcast %786 : vector<1x32xf32> to vector<8x32xf32>
    %788 = arith.addf %784, %787 : vector<8x32xf32>
    %c0_324 = arith.constant 0 : index
    %c0_325 = arith.constant 0 : index
    %c0_326 = arith.constant 0 : index
    %789 = vector.load %arg19[%c0_324, %c0_325, %c0_326] : memref<1x8x32xf32, #tpu.memory_space<vmem>>, vector<1x8x32xf32>
    %790 = vector.shape_cast %789 : vector<1x8x32xf32> to vector<8x32xf32>
    %791 = vector.shape_cast %788 : vector<8x32xf32> to vector<1x8x32xf32>
    tpu.vector_store %arg19[%c0_324, %c0_325, %c0_326], %791 {strides = array<i32>} : memref<1x8x32xf32, #tpu.memory_space<vmem>>, vector<1x8x32xf32>,
    return
  }
  func.func @transform_0(%arg0: i32) -> (i32, i32, i32) {
    %c0_i32 = arith.constant 0 : i32
    %c0_i32_0 = arith.constant 0 : i32
    %c0_i32_1 = arith.constant 0 : i32
    return %arg0, %c0_i32, %c0_i32_0 : i32, i32, i32
  }
  func.func @transform_1(%arg0: i32) -> (i32, i32, i32) {
    %c0_i32 = arith.constant 0 : i32
    %c0_i32_0 = arith.constant 0 : i32
    %c0_i32_1 = arith.constant 0 : i32
    return %arg0, %c0_i32, %c0_i32_0 : i32, i32, i32
  }
  func.func @transform_2(%arg0: i32) -> (i32, i32, i32, i32) {
    %c0_i32 = arith.constant 0 : i32
    %c0_i32_0 = arith.constant 0 : i32
    %c0_i32_1 = arith.constant 0 : i32
    %c0_i32_2 = arith.constant 0 : i32
    return %arg0, %c0_i32, %c0_i32_0, %c0_i32_1 : i32, i32, i32, i32
  }
  func.func @transform_3(%arg0: i32) -> (i32, i32, i32, i32) {
    %c0_i32 = arith.constant 0 : i32
    %c0_i32_0 = arith.constant 0 : i32
    %c0_i32_1 = arith.constant 0 : i32
    %c0_i32_2 = arith.constant 0 : i32
    return %arg0, %c0_i32, %c0_i32_0, %c0_i32_1 : i32, i32, i32, i32
  }
  func.func @transform_4(%arg0: i32) -> (i32, i32, i32) {
    %c0_i32 = arith.constant 0 : i32
    %c0_i32_0 = arith.constant 0 : i32
    %c0_i32_1 = arith.constant 0 : i32
    %c0_i32_2 = arith.constant 0 : i32
    return %c0_i32, %c0_i32_0, %c0_i32_1 : i32, i32, i32
  }
  func.func @transform_5(%arg0: i32) -> (i32, i32, i32) {
    %c0_i32 = arith.constant 0 : i32
    %c0_i32_0 = arith.constant 0 : i32
    %c0_i32_1 = arith.constant 0 : i32
    %c0_i32_2 = arith.constant 0 : i32
    return %c0_i32, %c0_i32_0, %c0_i32_1 : i32, i32, i32
  }
  func.func @transform_6(%arg0: i32) -> (i32, i32, i32) {
    %c0_i32 = arith.constant 0 : i32
    %c0_i32_0 = arith.constant 0 : i32
    %c0_i32_1 = arith.constant 0 : i32
    %c0_i32_2 = arith.constant 0 : i32
    return %c0_i32, %c0_i32_0, %c0_i32_1 : i32, i32, i32
  }
  func.func @transform_7(%arg0: i32) -> (i32, i32, i32) {
    %c0_i32 = arith.constant 0 : i32
    %c0_i32_0 = arith.constant 0 : i32
    %c0_i32_1 = arith.constant 0 : i32
    %c0_i32_2 = arith.constant 0 : i32
    return %c0_i32, %c0_i32_0, %c0_i32_1 : i32, i32, i32
  }
  func.func @transform_8(%arg0: i32) -> (i32, i32, i32) {
    %c0_i32 = arith.constant 0 : i32
    %c0_i32_0 = arith.constant 0 : i32
    %c0_i32_1 = arith.constant 0 : i32
    %c0_i32_2 = arith.constant 0 : i32
    return %c0_i32, %c0_i32_0, %c0_i32_1 : i32, i32, i32
  }
  func.func @transform_9(%arg0: i32) -> (i32, i32, i32) {
    %c0_i32 = arith.constant 0 : i32
    %c0_i32_0 = arith.constant 0 : i32
    %c0_i32_1 = arith.constant 0 : i32
    %c0_i32_2 = arith.constant 0 : i32
    return %c0_i32, %c0_i32_0, %c0_i32_1 : i32, i32, i32
  }
  func.func @transform_10(%arg0: i32) -> (i32, i32, i32) {
    %c0_i32 = arith.constant 0 : i32
    %c0_i32_0 = arith.constant 0 : i32
    %c0_i32_1 = arith.constant 0 : i32
    %c0_i32_2 = arith.constant 0 : i32
    return %c0_i32, %c0_i32_0, %c0_i32_1 : i32, i32, i32
  }
  func.func @transform_11(%arg0: i32) -> (i32, i32, i32) {
    %c0_i32 = arith.constant 0 : i32
    %c0_i32_0 = arith.constant 0 : i32
    %c0_i32_1 = arith.constant 0 : i32
    %c0_i32_2 = arith.constant 0 : i32
    return %c0_i32, %c0_i32_0, %c0_i32_1 : i32, i32, i32
  }
  func.func @transform_12(%arg0: i32) -> (i32, i32, i32) {
    %c0_i32 = arith.constant 0 : i32
    %c0_i32_0 = arith.constant 0 : i32
    %c0_i32_1 = arith.constant 0 : i32
    %c0_i32_2 = arith.constant 0 : i32
    return %c0_i32, %c0_i32_0, %c0_i32_1 : i32, i32, i32
  }
  func.func @transform_13(%arg0: i32) -> (i32, i32, i32) {
    %c0_i32 = arith.constant 0 : i32
    %c0_i32_0 = arith.constant 0 : i32
    %c0_i32_1 = arith.constant 0 : i32
    %c0_i32_2 = arith.constant 0 : i32
    return %c0_i32, %c0_i32_0, %c0_i32_1 : i32, i32, i32
  }
  func.func @transform_14(%arg0: i32) -> (i32, i32, i32) {
    %c0_i32 = arith.constant 0 : i32
    %c0_i32_0 = arith.constant 0 : i32
    %c0_i32_1 = arith.constant 0 : i32
    %c0_i32_2 = arith.constant 0 : i32
    return %c0_i32, %c0_i32_0, %c0_i32_1 : i32, i32, i32
  }
  func.func @transform_15(%arg0: i32) -> (i32, i32, i32) {
    %c0_i32 = arith.constant 0 : i32
    %c0_i32_0 = arith.constant 0 : i32
    %c0_i32_1 = arith.constant 0 : i32
    %c0_i32_2 = arith.constant 0 : i32
    return %c0_i32, %c0_i32_0, %c0_i32_1 : i32, i32, i32
  }
  func.func @transform_16(%arg0: i32) -> (i32, i32, i32) {
    %c0_i32 = arith.constant 0 : i32
    %c0_i32_0 = arith.constant 0 : i32
    %c0_i32_1 = arith.constant 0 : i32
    %c0_i32_2 = arith.constant 0 : i32
    return %c0_i32, %c0_i32_0, %c0_i32_1 : i32, i32, i32
  }
  func.func @transform_17(%arg0: i32) -> (i32, i32, i32) {
    %c0_i32 = arith.constant 0 : i32
    %c0_i32_0 = arith.constant 0 : i32
    %c0_i32_1 = arith.constant 0 : i32
    %c0_i32_2 = arith.constant 0 : i32
    return %c0_i32, %c0_i32_0, %c0_i32_1 : i32, i32, i32
  }
  func.func @transform_18(%arg0: i32) -> (i32, i32, i32) {
    %c0_i32 = arith.constant 0 : i32
    %c0_i32_0 = arith.constant 0 : i32
    %c0_i32_1 = arith.constant 0 : i32
    return %arg0, %c0_i32, %c0_i32_0 : i32, i32, i32
  }
}

</mosaic_0001>

<bundles_post_ra>
// kernel: decoder_forward.1
= control target key start
LH: loop header
LB: loop body
LE: loop exit
PB: predicated region body
PF: predicated region fallthrough
CT: control target
= control target key end

     0   :  { %s5357_s0 = inlined_call_operand.vmem [shape: f32[2,8,32], index: 0, kind: input, shape index: {}]   ;;  %s5358_s1 = inlined_call_operand.vmem [shape: f32[2,8,32], index: 1, kind: input, shape index: {}]   ;;  %s5359_s2 = inlined_call_operand.vmem [shape: f32[2,1,8,8], index: 2, kind: input, shape index: {}]   ;;  %s5360_s3 = inlined_call_operand.vmem [shape: f32[2,1,8,8], index: 3, kind: input, shape index: {}]   ;;  %s5361_s4 = inlined_call_operand.vmem [shape: f32[3,32,96], index: 4, kind: input, shape index: {}]   ;;  %s5362_s5 = inlined_call_operand.vmem [shape: f32[3,1,96], index: 5, kind: input, shape index: {}]   ;;  %s5363_s6 = inlined_call_operand.vmem [shape: f32[3,32,32], index: 6, kind: input, shape index: {}]   ;;  %s5364_s7 = inlined_call_operand.vmem [shape: f32[3,1,32], index: 7, kind: input, shape index: {}]   ;;  %s5365_s8 = inlined_call_operand.vmem [shape: f32[3,32,32], index: 8, kind: input, shape index: {}]   ;;  %s5366_s9 = inlined_call_operand.vmem [shape: f32[3,1,32], index: 9, kind: input, shape index: {}]   ;;  %s5367_s10 = inlined_call_operand.hbm [shape: f32[3,32,64], index: 10, kind: input, shape index: {}]   ;;  %s5368_s11 = inlined_call_operand.vmem [shape: f32[3,1,64], index: 11, kind: input, shape index: {}]   ;;  %s5369_s12 = inlined_call_operand.hbm [shape: f32[3,32,32], index: 12, kind: input, shape index: {}]   ;;  %s5370_s13 = inlined_call_operand.vmem [shape: f32[3,1,32], index: 13, kind: input, shape index: {}]   ;;  %s5371_s14 = inlined_call_operand.hbm [shape: f32[3,32,64], index: 14, kind: input, shape index: {}]   ;;  %s5372_s15 = inlined_call_operand.hbm [shape: f32[3,1,64], index: 15, kind: input, shape index: {}]   ;;  %s5373_s16 = inlined_call_operand.vmem [shape: f32[3,64,32], index: 16, kind: input, shape index: {}]   ;;  %s5374_s17 = inlined_call_operand.hbm [shape: f32[3,1,32], index: 17, kind: input, shape index: {}]   ;;  %s5375_s18 = inlined_call_operand.hbm [shape: f32[2,8,32], index: 18, kind: output, shape index: {}]  }
   0x1   :  { %5409 = sst [smem:[#allocation24_spill]] %s5357_s0 }
   0x2   :  { %5410 = sst [smem:[#allocation25_spill]] %s5358_s1 }
   0x3   :  { %5411 = sst [smem:[#allocation26_spill]] %s5359_s2 }
   0x4   :  { %5412 = sst [smem:[#allocation27_spill]] %s5360_s3 }
   0x5   :  { %5413 = sst [smem:[#allocation28_spill]] %s5367_s10 }
   0x6   :  { %5414 = sst [smem:[#allocation29_spill]] %s5369_s12 }
   0x7   :  { %5415 = sst [smem:[#allocation30_spill]] %s5370_s13 }
   0x8   :  { %5416 = sst [smem:[#allocation31_spill]] %s5371_s14 }
   0x9   :  { %5417 = sst [smem:[#allocation32_spill]] %s5372_s15 }
   0xa   :  { %5418 = sst [smem:[#allocation33_spill]] %s5373_s16 }
   0xb   :  { %5419 = sst [smem:[#allocation34_spill]] %s5374_s17 }
   0xc   :  { %5420 = sst [smem:[#allocation35_spill]] %s5375_s18 }
   0xd   :  { %23 = vsyncpa [#allocation3], 0 }
   0xe   :  { %24 = vsyncpa [#allocation6], 0 }
   0xf   :  { %25 = vsyncpa [#allocation9], 0 }
  0x10   :  { %26 = vsyncpa [#allocation4], 0 }
  0x11   :  { %28 = vsyncpa [#allocation4 + $0x1], 0  ;;  %s4563_s27 = smov 0   ;;  %s4565_s28 = smov 0  }
  0x12   :  { %s4567_s29 = smov 0   ;;  %s4569_s30 = smov 0  }
  0x13 LB: > { %5421 = sst [smem:[#allocation16_spill]] %s4433_s27  ;;  %s4584_s0 = sadd.s32 4294967295, %s4445_s30   ;;  %s4445_s30 = sphi %s4569_s30, %s5461_s30   ;;  %s4441_s29 = sphi %s4567_s29, %s5464_s29   ;;  %s4437_s28 = sphi %s4565_s28, %s5463_s28   ;;  %s4433_s27 = sphi %s4563_s27, %s5462_s27  }
  0x14   : > { %5422 = sst [smem:[#allocation17_spill]] %s4437_s28  ;;  %s3790_s19 = sadd.s32 4294967294, %s4445_s30  }
  0x15   : > { %5423 = sst [smem:[#allocation18_spill]] %s4441_s29  ;;  %s4588_s1 = sadd.s32 1, %s4445_s30  }
  0x16   : > { %5424 = sst [smem:[#allocation19_spill]] %s4445_s30  ;;  %s439_s20 = sadd.s32 1, %s4441_s29 }
  0x17   : > { %5425 = sst [smem:[#allocation20_spill]] %s4588_s1  ;;  %s436_s21 = ssub.s32 %s4445_s30, %s4588_s1 }
  0x18   : > { %p449_p0 = scmp.ne.s32.totalorder %s4441_s29, %s4437_s28  ;;  %p437_p1 = scmp.eq.s32.totalorder %s436_s21, 0 }
  0x19   : > { %p450_p2 = scmp.eq.s32.totalorder %s4584_s0, 1  ;;  %p455_p3 = scmp.ne.s32.totalorder %s4437_s28, %s4433_s27 }
  0x1a   : > { %p456_p4 = scmp.eq.s32.totalorder %s3790_s19, 1  ;;  %p3791_p7 = scmp.ge.s32.totalorder %s4445_s30, 1 }
  0x1b   : > { %s4599_s22 = scalar_select %p437_p1, %s4441_s29, %s439_s20  }
  0x1c   : > { %p4601_p5 = por %p450_p2, %p449_p0  ;;  %p4605_p6 = por %p456_p4, %p455_p3 }
  0x1d   : > { %5426 = sst [smem:[#allocation21_spill]] %s4599_s22  ;;  %p463_p8 = scmp.lt.s32.totalorder %s4445_s30, 3 }
  0x1e   : > { %s5427_s2 = scalar_select %p4601_p5, 1, 0 }
  0x1f   : > { %s5429_s23 = scalar_select %p4605_p6, 1, 0 }
  0x20   : > { %5428 = sst [smem:[#allocation22_spill]] %s5427_s2  ;;  %p4016_p9 = scmp.eq.s32.totalorder %s4584_s0, 0 }
  0x21   : > { %5430 = sst [smem:[#allocation23_spill]] %s5429_s23  ;;  %p4612_p10 = pnand %p3791_p7, %p463_p8 }
  0x22   : > { %s5432_s12 = sld [smem:[#allocation29_spill]]  ;;  %s4447_s1 = smov [#allocation5]  }
  0x23   : > { %p3996_p11 = pneg %p4612_p10  ;;  %s5433_s15 = sld [smem:[#allocation32_spill]] }
  0x24   : > { %s511_s23 = sshll.u32 %s4447_s1, 4  ;;  %s4448_s25 = smov 128   ;;  %s512_s23 = int_to_ptr.vmem [resolvable:$true] %s511_s23 }
  0x25   : > { %p4626_p12 = pnand %p4016_p9, %p3996_p11  ;;  %s4449_s26 = smov 8  }
  0x26   : > { %s4451_s20 = smov 16   ;;  %s4452_s21 = smov 1  }
  0x27   : > { %s5435_s10 = sld [smem:[#allocation28_spill]]  ;;  %s4453_s1 = smov [#allocation2]  }
  0x28   : > { %s509_s19 = sshll.u32 %s5432_s12, 4  ;;  %s4450_s12 = smov [#allocation8]   ;;  %s510_s19 = int_to_ptr.hbm [resolvable:$true] %s509_s19 }
  0x29   : > { %s540_s22 = sshll.u32 %s5433_s15, 4  ;;  %s542_s27 = sshll.u32 %s4450_s12, 4  ;;  %s541_s22 = int_to_ptr.hbm [resolvable:$true] %s540_s22  ;;  %s543_s27 = int_to_ptr.vmem [resolvable:$true] %s542_s27 }
  0x2a   : > { %4002 = dma.hbm_to_vmem [thread:$0]  (!%p4626_p12), %s510_s19, 1536, %s512_s23, [#allocation6], %s4448_s25, %s4448_s25, %s4449_s26  }
  0x2b   : > { %4008 = dma.hbm_to_vmem [thread:$0]  (!%p4626_p12), %s541_s22, 48, %s543_s27, [#allocation9], %s4451_s20, %s4451_s20, %s4452_s21  }
  0x2c   : > { %s494_s18 = sshll.u32 %s4453_s1, 4  ;;  %s5436_s14 = sld [smem:[#allocation31_spill]]  ;;  %s495_s18 = int_to_ptr.vmem [resolvable:$true] %s494_s18 }
  0x2d   : > { %s492_s2 = sshll.u32 %s5435_s10, 4  ;;  %s4454_s12 = smov [#allocation7]   ;;  %s493_s2 = int_to_ptr.hbm [resolvable:$true] %s492_s2 }
  0x2e   : > { %3999 = dma.hbm_to_vmem [thread:$0]  (!%p4626_p12), %s493_s2, 1536, %s495_s18, [#allocation3], %s4448_s25, %s4448_s25, %s4449_s26  }
  0x2f   : > { %s528_s19 = sshll.u32 %s4454_s12, 4  ;;  %s5437_s17 = sld [smem:[#allocation34_spill]]  ;;  %s529_s19 = int_to_ptr.vmem [resolvable:$true] %s528_s19 }
  0x30   : > { %s4455_s15 = smov [#allocation10]  }
  0x31   : > { %s559_s30 = sshll.u32 %s4455_s15, 4  ;;  %s560_s30 = int_to_ptr.vmem [resolvable:$true] %s559_s30 }
  0x32   : > { %s526_s23 = sshll.u32 %s5436_s14, 4  ;;  %603 = sbr.rel (%p4612_p10) target bundleno = 12344 (0x3038), region = 92  ;;  %s527_s23 = int_to_ptr.hbm [resolvable:$true] %s526_s23 }
  0x33   : > { %4005 = dma.hbm_to_vmem [thread:$0]  (!%p4626_p12), %s527_s23, 1536, %s529_s19, [#allocation6], %s4448_s25, %s4448_s25, %s4449_s26  }
  0x35   : > { %s557_s22 = sshll.u32 %s5437_s17, 4  ;;  %s558_s22 = int_to_ptr.hbm [resolvable:$true] %s557_s22 }
  0x36   : > { %4011 = dma.hbm_to_vmem [thread:$0]  (!%p4626_p12), %s558_s22, 48, %s560_s30, [#allocation9], %s4451_s20, %s4451_s20, %s4452_s21  }
  0x37   : > { %4416 = dma.done.wait (%p4016_p9), [#allocation3], 1536  }
  0x38   : > { %4418 = vsyncadd (%p4016_p9), [#allocation3], 4294965760 }
  0x39   : > { %4420 = dma.done.wait (%p4016_p9), [#allocation6], 3072  }
  0x3a   : > { %4422 = vsyncadd (%p4016_p9), [#allocation6], 4294964224 }
  0x3b   : > { %4424 = dma.done.wait (%p4016_p9), [#allocation9], 96  }
  0x3c   : > { %4426 = vsyncadd (%p4016_p9), [#allocation9], 4294967200  ;;  %p689_p13 = scmp.lt.s32.totalorder %s4584_s0, 1  ;;  %s5438_s29 = sld [smem:[#allocation25_spill]]  ;;  %vm709_vm0 = vcmask 261120   ;;  %v4456_v2 = vmov 32.0  }
  0x3d   : > { %4101 = vrcp.f32 %v4456_v2  ;;  %v764_v14 = vld [vmem:[%s5361_s4 + $0x18] sm:$0xff]  ;;  %v763_v15 = vld [vmem:[%s5361_s4 + $0x10] sm:$0xff]  ;;  %v762_v16 = vld [vmem:[%s5361_s4 + $0x8] sm:$0xff]  ;;  %s5403_s30 = smov 88   ;;  %vm804_vm5 = vcmask 64512   ;;  %s5439_s3 = sld [smem:[#allocation27_spill]] }
  0x3e   : > { %s690_s13 = scalar_select %p689_p13, %s4584_s0, 1  ;;  %784 = vmatpush.msra.mxu0 %v764_v14  ;;  %v761_v17 = vld [vmem:[%s5361_s4] sm:$0xff]  ;;  %v793_v62 = vld [vmem:[%s5363_s6 + $0x8] sm:$0xff]  ;;  %vm1666_vm15 = vcmask 523264  }
  0x3f   : > { %v792_v29 = vld [vmem:[%s5363_s6] sm:$0xff]  ;;  %s5392_s24 = smov 80   ;;  %s5394_s25 = smov 104  }
  0x40   : > { %s4665_s16 = sshll.u32 %s690_s13, 3  ;;  %785 = vmatpush.msra.mxu0 %v763_v15  ;;  %884 = vmatpush.msra.mxu3 %v792_v29  ;;  %v4080_v30 = vld [vmem:[%s5362_s5] ss:$0 sm:$0xff]  ;;  %s5405_s13 = smov 96  }
  0x41   : > { %s5396_s26 = smov 64   ;;  %s5407_s20 = smov 120   ;;  %v4081_v15 = vld [vmem:[%s5364_s7] ss:$0 sm:$0xff] }
  0x42   : > { %s696_s2 = scalar_lea.vmem %s5438_s29, %s4665_s16  ;;  %786 = vmatpush.msra.mxu0 %v762_v16  ;;  %s5398_s21 = smov 112  }
  0x43   : > { %v4671_v0 = vld [vmem:[%s696_s2] sm:$0xff]  ;;  %v4102_v3 = vpop.eup %4101  ;;  %s4714_s29 = scalar_lea.vmem %s5439_s3, %s4665_s16  ;;  %s5400_s2 = smov 56  }
  0x44   : > { %v739_v1 = vsel %vm709_vm0, %v4671_v0, 0.0  ;;  %v714_v4 = vmul.f32 32.0, %v4102_v3  ;;  %vm718_vm1 = vweird.f32 %v4102_v3  ;;  %787 = vmatpush.msra.mxu0 %v761_v17  ;;  %v4717_v35 = vld [vmem:[%s4714_s29] sm:$0xff]  ;;  %s5401_s1 = smov 72   ;;  %v800_v16 = vadd.f32 %v4081_v15, %v4671_v0  ;;  %s5388_s22 = smov 48  }
  0x45   : > { %740 = vadd.xlane.f32.xlu0 %v739_v1  ;;  %s5390_s15 = smov 40   ;;  %s5440_s18 = sld [smem:[#allocation24_spill]] }
  0x46   : > { %v715_v5 = vsub.f32 1.0, %v714_v4  ;;  %s5443_s19 = sld [smem:[#allocation33_spill]]  ;;  %s5444_s27 = smov 112  }
  0x48   : > { %v716_v6 = vmul.f32 %v4102_v3, %v715_v5 }
  0x4a   : > { %v717_v7 = vadd.f32 %v4102_v3, %v716_v6 }
  0x4b   : > { %s692_s28 = scalar_lea.vmem %s5440_s18, %s4665_s16  ;;  %s5441_s18 = sld [smem:[#allocation26_spill]] }
  0x4c   : > { %v4675_v8 = vsel %vm718_vm1, %v4102_v3, %v717_v7 }
  0xb8   : > { %v741_v9 = vpop.xlane.xlu0 %740 }
  0xb9   : > { %v742_v10 = vmul.f32 %v741_v9, %v4675_v8 }
  0xbb   : > { %v743_v11 = vsub.f32 %v4671_v0, %v742_v10 }
  0xbd   : > { %v744_v12 = vmul.f32 %v743_v11, %v743_v11 }
  0xbf   : > { %v745_v13 = vsel %vm709_vm0, %v744_v12, 0.0 }
  0xc0   : > { %746 = vadd.xlane.f32.xlu0 %v745_v13 }
 0x133   : > { %v747_v18 = vpop.xlane.xlu0 %746 }
 0x134   : > { %v748_v19 = vmul.f32 %v747_v18, %v4675_v8 }
 0x136   : > { %v749_v20 = vadd.f32 1e-05, %v748_v19 }
 0x138   : > { %4103 = vrsqrt.f32 %v749_v20  ;;  %vm756_vm3 = vweird.f32 %v749_v20 }
 0x13e   : > { %v4104_v21 = vpop.eup %4103 }
 0x13f   : > { %v751_v22 = vmul.f32 %v4104_v21, %v749_v20  ;;  %vm757_vm2 = vweird.f32 %v4104_v21 }
 0x140   : > { %vm758_vm4 = vmor %vm756_vm3, %vm757_vm2 }
 0x141   : > { %v752_v23 = vmul.f32 %v4104_v21, %v751_v22 }
 0x143   : > { %v753_v24 = vmul.f32 0.5, %v752_v23 }
 0x145   : > { %v754_v25 = vsub.f32 1.5, %v753_v24 }
 0x147   : > { %v755_v26 = vmul.f32 %v4104_v21, %v754_v25 }
 0x149   : > { %v759_v27 = vsel %vm758_vm4, %v4104_v21, %v755_v26 }
 0x14a   : > { %v760_v28 = vmul.f32 %v759_v27, %v743_v11 }
 0x14c   : > { %3809 = vmatmul.msk.f32.vlgmr.msra.gmra.mxu0 %vm709_vm0, %v760_v28 }
 0x1c9   : > { %v789_v31 = vpop.f32.mrf.mxu0 }
 0x1ca   : > { %v4700_v32 = vadd.f32 %v4080_v30, %v789_v31  ;;  %v794_v31 = vld [vmem:[%s5363_s6 + $0x10] sm:$0xff] }
 0x1cc   : > { %892 = vrot.lane.b32.xlu0 %v4700_v32, %s5403_s30  ;;  %802 = vrot.lane.b32.xlu1 %v4700_v32, %s5405_s13 }
 0x23e   : > { %v893_v33 = vpop.permute.xlu0 %892  ;;  %v803_v34 = vpop.permute.xlu1 %802 }
 0x23f   : > { %3810 = vmatpush.xpose.msk.msra.mxu1 %vm804_vm5, %v803_v34  ;;  %3814 = vmatpush.xpose.msk.msrb.mxu3 %vm804_vm5, %v893_v33 }
 0x242   : > { %3811 = vmatmul.msk.f32.vlgmr.msra.gmra.mxu1 %vm804_vm5, %v4700_v32 }
 0x243   : > { %973 = vmatpush.msrb.mxu1 %v793_v62  ;;  %v1212_v62 = vld [vmem:[#allocation2 + $0x10] sm:$0xff] }
 0x2bf   : > { %v826_v36 = vpop.f32.mrf.mxu1 }
 0x2c0   : > { %v827_v37 = vadd.f32 %v826_v36, %v4717_v35 }
 0x2c2   : > { %v829_v38 = vsel %vm804_vm5, %v827_v37, -inf }
 0x2c3   : > { %830 = vmax.xlane.f32.xlu1 %v829_v38 }
 0x2dc   : > { %929 = vrot.lane.b32.xlu1 %v4700_v32, %s5400_s2 }
 0x2e4   : > { %981 = vrot.lane.b32.xlu1 %v4700_v32, %s5392_s24 }
 0x2ec   : > { %1068 = vrot.lane.b32.xlu1 %v4700_v32, %s5394_s25 }
 0x336   : > { %v831_v39 = vpop.xlane.xlu1 %830 }
 0x337   : > { %v832_v40 = vsub.f32 %v827_v37, %v831_v39 }
 0x339   : > { %v833_v41 = vmul.f32 1.442695, %v832_v40 }
 0x33b   : > { %4105 = vpow2.f32 %v833_v41 }
 0x341   : > { %v4106_v42 = vpop.eup %4105 }
 0x342   : > { %v835_v43 = vsel %vm804_vm5, %v4106_v42, 0.0 }
 0x343   : > { %836 = vadd.xlane.f32.xlu2 %v835_v43 }
 0x34e   : > { %v930_v44 = vpop.permute.xlu1 %929 }
 0x356   : > { %v982_v45 = vpop.permute.xlu1 %981 }
 0x357   : > { %3818 = vmatpush.xpose.msk.msrb.mxu0 %vm804_vm5, %v982_v45  ;;  %v705_v45 = vld [vmem:[%s692_s28] sm:$0xff]  ;;  %s4828_s28 = scalar_lea.vmem %s5441_s18, %s4665_s16  ;;  %s5448_s18 = smov 40  }
 0x358   : > { %s5452_s16 = smov 72  }
 0x35b   : > { %840 = vrot.lane.b32.xlu2 %v4700_v32, %s5396_s26 }
 0x35e   : > { %v1069_v7 = vpop.permute.xlu1 %1068 }
 0x363   : > { %890 = vrot.lane.b32.xlu2 %v4700_v32, %s5407_s20 }
 0x3b6   : > { %v837_v46 = vpop.xlane.xlu2 %836 }
 0x3b7   : > { %4107 = vrcp.f32 %v837_v46  ;;  %v710_v46 = vsel %vm709_vm0, %v705_v45, 0.0 }
 0x3bd   : > { %v4108_v47 = vpop.eup %4107 }
 0x3be   : > { %v841_v48 = vpop.permute.xlu2 %840  ;;  %v839_v49 = vmul.f32 %v4108_v47, %v4106_v42 }
 0x3bf   : > { %861 = vmatpush.msra.mxu2 %v841_v48 }
 0x3c0   : > { %3812 = vmatmul.msk.f32.vlgmr.msra.gmra.mxu2 %vm804_vm5, %v839_v49 }
 0x3c6   : > { %v891_v51 = vpop.permute.xlu2 %890 }
 0x443   : > { %v863_v50 = vpop.f32.mrf.mxu2 }
 0x444   : > { %3813 = vmatmul.msk.f32.vlgmr.msra.gmra.mxu3 %vm804_vm5, %v863_v50 }
 0x445   : > { %950 = vmatpush.msra.mxu3 %v930_v44 }
 0x44c   : > { %3815 = vmatmul.msk.f32.vlgmr.msrb.gmra.mxu3 %vm804_vm5, %v891_v51 }
 0x44d   : > { %1062 = vmatpush.msrb.mxu3 %v794_v31 }
 0x4c7   : > { %v886_v52 = vpop.f32.mrf.mxu3 }
 0x4c8   : > { %v889_v17 = vadd.f32 %v886_v52, %v800_v16 }
 0x4cf   : > { %v915_v53 = vpop.f32.mrf.mxu3 }
 0x4d0   : > { %v916_v54 = vadd.f32 %v915_v53, %v4717_v35 }
 0x4d2   : > { %v918_v55 = vsel %vm804_vm5, %v916_v54, -inf }
 0x4d3   : > { %919 = vmax.xlane.f32.xlu0 %v918_v55 }
 0x4e7   : > { %979 = vrot.lane.b32.xlu0 %v4700_v32, %s5398_s21 }
 0x546   : > { %v920_v56 = vpop.xlane.xlu0 %919 }
 0x547   : > { %v921_v57 = vsub.f32 %v916_v54, %v920_v56 }
 0x549   : > { %v922_v58 = vmul.f32 1.442695, %v921_v57  ;;  %v1182_v57 = vld [vmem:[%s5365_s8 + $0x18] sm:$0xff] }
 0x54b   : > { %4109 = vpow2.f32 %v922_v58  ;;  %v1181_v58 = vld [vmem:[%s5365_s8 + $0x10] sm:$0xff] }
 0x551   : > { %v4110_v59 = vpop.eup %4109 }
 0x552   : > { %v924_v60 = vsel %vm804_vm5, %v4110_v59, 0.0 }
 0x553   : > { %925 = vadd.xlane.f32.xlu2 %v924_v60  ;;  %v1179_v60 = vld [vmem:[%s5365_s8] sm:$0xff] }
 0x559   : > { %v980_v61 = vpop.permute.xlu0 %979 }
 0x55a   : > { %3819 = vmatmul.msk.f32.vlgmr.msrb.gmra.mxu0 %vm804_vm5, %v980_v61  ;;  %v1213_v61 = vld [vmem:[#allocation2 + $0x18] sm:$0xff] }
 0x56b   : > { %1070 = vrot.lane.b32.xlu2 %v4700_v32, %s5401_s1 }
 0x5c6   : > { %v926_v63 = vpop.xlane.xlu2 %925 }
 0x5c7   : > { %4111 = vrcp.f32 %v926_v63  ;;  %v1211_v63 = vld [vmem:[#allocation2 + $0x8] sm:$0xff] }
 0x5cd   : > { %v4112_v1 = vpop.eup %4111 }
 0x5ce   : > { %v928_v2 = vmul.f32 %v4112_v1, %v4110_v59  ;;  %v1071_v3 = vpop.permute.xlu2 %1070  ;;  %v1180_v59 = vld [vmem:[%s5365_s8 + $0x8] sm:$0xff]  ;;  %v1210_v1 = vld [vmem:[#allocation2] sm:$0xff] }
 0x5cf   : > { %3822 = vmatpush.xpose.msk.msra.mxu1 %vm804_vm5, %v1071_v3 }
 0x5d0   : > { %3816 = vmatmul.msk.f32.vlgmr.msra.gmra.mxu3 %vm804_vm5, %v928_v2 }
 0x5d1   : > { %1202 = vmatpush.msra.mxu3 %v1182_v57 }
 0x5d3   : > { %1203 = vmatpush.msra.mxu3 %v1181_v58 }
 0x5d5   : > { %1204 = vmatpush.msra.mxu3 %v1180_v59 }
 0x5d7   : > { %v1004_v4 = vpop.f32.mrf.mxu0  ;;  %1205 = vmatpush.msra.mxu3 %v1179_v60 }
 0x5d8   : > { %v1005_v5 = vadd.f32 %v1004_v4, %v4717_v35 }
 0x5da   : > { %v1007_v6 = vsel %vm804_vm5, %v1005_v5, -inf }
 0x5db   : > { %1008 = vmax.xlane.f32.xlu1 %v1007_v6 }
 0x64e   : > { %v1009_v9 = vpop.xlane.xlu1 %1008 }
 0x64f   : > { %v1010_v10 = vsub.f32 %v1005_v5, %v1009_v9 }
 0x651   : > { %v1011_v11 = vmul.f32 1.442695, %v1010_v10 }
 0x653   : > { %4113 = vpow2.f32 %v1011_v11  ;;  %v952_v12 = vpop.f32.mrf.mxu3 }
 0x654   : > { %3817 = vmatmul.msk.f32.vlgmr.msrb.gmra.mxu1 %vm804_vm5, %v952_v12 }
 0x655   : > { %1233 = vmatpush.msrb.mxu1 %v1213_v61 }
 0x657   : > { %1234 = vmatpush.msrb.mxu1 %v1212_v62 }
 0x659   : > { %v4114_v13 = vpop.eup %4113  ;;  %1235 = vmatpush.msrb.mxu1 %v1211_v63 }
 0x65a   : > { %v1013_v14 = vsel %vm804_vm5, %v4114_v13, 0.0 }
 0x65b   : > { %1014 = vadd.xlane.f32.xlu2 %v1013_v14  ;;  %1236 = vmatpush.msrb.mxu1 %v1210_v1 }
 0x65c   : > { %3823 = vmatmul.msk.f32.vlgmr.msra.gmra.mxu1 %vm804_vm5, %v1069_v7 }
 0x6ce   : > { %v1015_v26 = vpop.xlane.xlu2 %1014 }
 0x6d1   : > { %v975_v18 = vpop.f32.mrf.mxu1 }
 0x6d2   : > { %v978_v19 = vadd.f32 %v975_v18, %v889_v17 }
 0x6d9   : > { %v1093_v20 = vpop.f32.mrf.mxu1 }
 0x6da   : > { %v1094_v21 = vadd.f32 %v1093_v20, %v4717_v35 }
 0x6dc   : > { %v1096_v22 = vsel %vm804_vm5, %v1094_v21, -inf }
 0x6dd   : > { %1097 = vmax.xlane.f32.xlu0 %v1096_v22 }
 0x6f1   : > { %1018 = vrot.lane.b32.xlu0 %v4700_v32, %s5388_s22  ;;  %s5445_s22 = smov 64  }
 0x750   : > { %v1098_v23 = vpop.xlane.xlu0 %1097 }
 0x751   : > { %v1099_v24 = vsub.f32 %v1094_v21, %v1098_v23 }
 0x753   : > { %v1100_v25 = vmul.f32 1.442695, %v1099_v24 }
 0x755   : > { %4115 = vpow2.f32 %v1100_v25  ;;  %v4082_v25 = vld [vmem:[%s5366_s9] ss:$0 sm:$0xff] }
 0x756   : > { %4117 = vrcp.f32 %v1015_v26  ;;  %v4083_v26 = vld [vmem:[%s5368_s11] ss:$0 sm:$0xff] }
 0x75b   : > { %v4116_v0 = vpop.eup %4115 }
 0x75c   : > { %v1102_v27 = vsel %vm804_vm5, %v4116_v0, 0.0  ;;  %v4118_v28 = vpop.eup %4117 }
 0x75d   : > { %1103 = vadd.xlane.f32.xlu1 %v1102_v27  ;;  %v1017_v30 = vmul.f32 %v4118_v28, %v4114_v13 }
 0x763   : > { %v1019_v29 = vpop.permute.xlu0 %1018 }
 0x764   : > { %1039 = vmatpush.msrb.mxu2 %v1019_v29 }
 0x765   : > { %3820 = vmatmul.msk.f32.vlgmr.msrb.gmra.mxu2 %vm804_vm5, %v1017_v30 }
 0x776   : > { %1107 = vrot.lane.b32.xlu1 %v4700_v32, %s5390_s15  ;;  %v795_v32 = vld [vmem:[%s5363_s6 + $0x18] sm:$0xff]  ;;  %s5442_s15 = sld [smem:[#allocation30_spill]] }
 0x777   : > { %1151 = vmatpush.msra.mxu2 %v795_v32 }
 0x7d0   : > { %v1104_v33 = vpop.xlane.xlu1 %1103 }
 0x7d1   : > { %4119 = vrcp.f32 %v1104_v33  ;;  %v4831_v33 = vld [vmem:[%s4828_s28] sm:$0xff] }
 0x7d7   : > { %v4120_v34 = vpop.eup %4119 }
 0x7d8   : > { %v1106_v36 = vmul.f32 %v4120_v34, %v4116_v0 }
 0x7e8   : > { %v1041_v37 = vpop.f32.mrf.mxu2  ;;  %v1108_v38 = vpop.permute.xlu1 %1107 }
 0x7e9   : > { %3821 = vmatmul.msk.f32.vlgmr.msrb.gmra.mxu3 %vm804_vm5, %v1041_v37  ;;  %1128 = vmatpush.msra.mxu0 %v1108_v38  ;;  %v1241_v38 = vld [vmem:[#allocation5] sm:$0xff] }
 0x7ea   : > { %3824 = vmatmul.msk.f32.vlgmr.msra.gmra.mxu0 %vm804_vm5, %v1106_v36  ;;  %1331 = vmatpush.msrb.mxu3 %v1241_v38 }
 0x867   : > { %v1130_v39 = vpop.f32.mrf.mxu0 }
 0x868   : > { %3825 = vmatmul.msk.f32.vlgmr.msra.gmra.mxu2 %vm804_vm5, %v1130_v39 }
 0x86c   : > { %v1064_v40 = vpop.f32.mrf.mxu3 }
 0x86d   : > { %v1067_v41 = vadd.f32 %v1064_v40, %v978_v19 }
 0x8eb   : > { %v1153_v42 = vpop.f32.mrf.mxu2 }
 0x8ec   : > { %v4775_v43 = vadd.f32 %v1153_v42, %v1067_v41 }
 0x8ee   : > { %v1157_v44 = vsel %vm709_vm0, %v4775_v43, 0.0 }
 0x8ef   : > { %1158 = vadd.xlane.f32.xlu2 %v1157_v44 }
 0x8f7   : > { %711 = vadd.xlane.f32.xlu2 %v710_v46 }
 0x962   : > { %v1159_v47 = vpop.xlane.xlu2 %1158 }
 0x963   : > { %v1160_v48 = vmul.f32 %v1159_v47, %v4675_v8 }
 0x965   : > { %v1161_v49 = vsub.f32 %v4775_v43, %v1160_v48 }
 0x967   : > { %v1162_v50 = vmul.f32 %v1161_v49, %v1161_v49 }
 0x969   : > { %v1163_v51 = vsel %vm709_vm0, %v1162_v50, 0.0 }
 0x96a   : > { %1164 = vadd.xlane.f32.xlu0 %v1163_v51  ;;  %v712_v52 = vpop.xlane.xlu2 %711 }
 0x96b   : > { %v720_v53 = vmul.f32 %v4675_v8, %v712_v52 }
 0x96d   : > { %v721_v54 = vsub.f32 %v705_v45, %v720_v53 }
 0x96f   : > { %v722_v55 = vmul.f32 %v721_v54, %v721_v54 }
 0x971   : > { %v723_v56 = vsel %vm709_vm0, %v722_v55, 0.0 }
 0x972   : > { %724 = vadd.xlane.f32.xlu2 %v723_v56 }
 0x9dd   : > { %v1165_v2 = vpop.xlane.xlu0 %1164 }
 0x9de   : > { %v1166_v3 = vmul.f32 %v1165_v2, %v4675_v8 }
 0x9e0   : > { %v1167_v4 = vadd.f32 1e-05, %v1166_v3 }
 0x9e2   : > { %4121 = vrsqrt.f32 %v1167_v4  ;;  %vm1174_vm7 = vweird.f32 %v1167_v4 }
 0x9e5   : > { %v725_v5 = vpop.xlane.xlu2 %724 }
 0x9e6   : > { %v726_v6 = vmul.f32 %v725_v5, %v4675_v8 }
 0x9e8   : > { %v4122_v7 = vpop.eup %4121  ;;  %v727_v9 = vadd.f32 1e-05, %v726_v6 }
 0x9e9   : > { %v1169_v10 = vmul.f32 %v4122_v7, %v1167_v4  ;;  %vm1175_vm6 = vweird.f32 %v4122_v7 }
 0x9ea   : > { %4123 = vrsqrt.f32 %v727_v9  ;;  %vm1176_vm8 = vmor %vm1174_vm7, %vm1175_vm6  ;;  %vm734_vm10 = vweird.f32 %v727_v9 }
 0x9eb   : > { %v1170_v11 = vmul.f32 %v4122_v7, %v1169_v10 }
 0x9ed   : > { %v1171_v12 = vmul.f32 0.5, %v1170_v11 }
 0x9ef   : > { %v1172_v13 = vsub.f32 1.5, %v1171_v12 }
 0x9f0   : > { %v4124_v14 = vpop.eup %4123 }
 0x9f1   : > { %v1173_v15 = vmul.f32 %v4122_v7, %v1172_v13  ;;  %v729_v16 = vmul.f32 %v4124_v14, %v727_v9  ;;  %vm735_vm9 = vweird.f32 %v4124_v14  ;;  %v4084_v9 = vld [vmem:[%s5442_s15] ss:$0 sm:$0xff] }
 0x9f2   : > { %vm736_vm11 = vmor %vm734_vm10, %vm735_vm9  ;;  %v1249_v10 = vadd.f32 %v4084_v9, %v4775_v43  ;;  %v1660_v9 = vld [vmem:[%s5443_s19 + $0x10] sm:$0xff] }
 0x9f3   : > { %v1177_v17 = vsel %vm1176_vm8, %v4122_v7, %v1173_v15  ;;  %v730_v18 = vmul.f32 %v4124_v14, %v729_v16 }
 0x9f4   : > { %v1178_v19 = vmul.f32 %v1177_v17, %v1161_v49  ;;  %v1242_v49 = vld [vmem:[#allocation5 + $0x8] sm:$0xff] }
 0x9f5   : > { %v731_v20 = vmul.f32 0.5, %v730_v18 }
 0x9f6   : > { %3826 = vmatmul.msk.f32.vlgmr.msra.gmra.mxu3 %vm709_vm0, %v1178_v19 }
 0x9f7   : > { %v732_v21 = vsub.f32 1.5, %v731_v20 }
 0x9f9   : > { %v733_v22 = vmul.f32 %v4124_v14, %v732_v21 }
 0x9fb   : > { %v737_v23 = vsel %vm736_vm11, %v4124_v14, %v733_v22 }
 0x9fc   : > { %v4804_v24 = vmul.f32 %v737_v23, %v721_v54 }
 0x9fe   : > { %3827 = vmatmul.msk.f32.vlgmr.msrb.gmra.mxu1 %vm709_vm0, %v4804_v24 }
 0xa79   : > { %v1207_v0 = vpop.f32.mrf.mxu3 }
 0xa7a   : > { %v1208_v27 = vadd.f32 %v4082_v25, %v1207_v0 }
 0xa7b   : > { %v1238_v28 = vpop.f32.mrf.mxu1 }
 0xa7c   : > { %v4814_v29 = vadd.f32 %v4083_v26, %v1238_v28  ;;  %1337 = vrot.lane.b32.xlu2 %v1208_v27, %s5407_s20 }
 0xa7e   : > { %1339 = vrot.lane.b32.xlu1 %v4814_v29, %s5407_s20  ;;  %3828 = vmatpush.xpose.msk.msrb.mxu0 %vm804_vm5, %v4814_v29 }
 0xa81   : > { %3829 = vmatmul.msk.f32.vlgmr.msrb.gmra.mxu0 %vm804_vm5, %v1208_v27 }
 0xad6   : > { %v1338_v31 = vpop.permute.xlu2 %1337 }
 0xaf0   : > { %v1340_v30 = vpop.permute.xlu1 %1339 }
 0xaf1   : > { %3832 = vmatpush.xpose.msk.msra.mxu1 %vm804_vm5, %v1340_v30 }
 0xaf4   : > { %3833 = vmatmul.msk.f32.vlgmr.msra.gmra.mxu1 %vm804_vm5, %v1338_v31 }
 0xafe   : > { %v1273_v34 = vpop.f32.mrf.mxu0 }
 0xaff   : > { %v1274_v36 = vadd.f32 %v1273_v34, %v4831_v33 }
 0xb01   : > { %v1276_v37 = vsel %vm804_vm5, %v1274_v36, -inf }
 0xb02   : > { %1277 = vmax.xlane.f32.xlu1 %v1276_v37 }
 0xb1b   : > { %1287 = vrot.lane.b32.xlu1 %v4814_v29, %s5405_s13 }
 0xb23   : > { %1428 = vrot.lane.b32.xlu1 %v4814_v29, %s5398_s21 }
 0xb71   : > { %v1362_v32 = vpop.f32.mrf.mxu1 }
 0xb72   : > { %v1363_v39 = vadd.f32 %v1362_v32, %v4831_v33  ;;  %v1244_v32 = vld [vmem:[#allocation5 + $0x18] sm:$0xff] }
 0xb74   : > { %v1365_v40 = vsel %vm804_vm5, %v1363_v39, -inf }
 0xb75   : > { %v1278_v41 = vpop.xlane.xlu1 %1277  ;;  %1366 = vmax.xlane.f32.xlu2 %v1365_v40 }
 0xb76   : > { %v1279_v42 = vsub.f32 %v1274_v36, %v1278_v41  ;;  %v1243_v36 = vld [vmem:[#allocation5 + $0x10] sm:$0xff] }
 0xb78   : > { %v1280_v44 = vmul.f32 1.442695, %v1279_v42 }
 0xb7a   : > { %4125 = vpow2.f32 %v1280_v44 }
 0xb80   : > { %v4126_v45 = vpop.eup %4125 }
 0xb81   : > { %v1282_v46 = vsel %vm804_vm5, %v4126_v45, 0.0 }
 0xb82   : > { %1283 = vadd.xlane.f32.xlu0 %v1282_v46 }
 0xb8d   : > { %v1288_v47 = vpop.permute.xlu1 %1287  ;;  %1517 = vrot.lane.b32.xlu2 %v4814_v29, %s5394_s25 }
 0xb8e   : > { %1308 = vmatpush.msrb.mxu2 %v1288_v47 }
 0xb90   : > { %1420 = vmatpush.msra.mxu2 %v1242_v49 }
 0xb95   : > { %v1429_v48 = vpop.permute.xlu1 %1428 }
 0xb96   : > { %3836 = vmatpush.xpose.msk.msra.mxu3 %vm804_vm5, %v1429_v48 }
 0xbe8   : > { %v1367_v50 = vpop.xlane.xlu2 %1366 }
 0xbe9   : > { %v1368_v51 = vsub.f32 %v1363_v39, %v1367_v50 }
 0xbeb   : > { %v1369_v52 = vmul.f32 1.442695, %v1368_v51  ;;  %v1629_v51 = vld [vmem:[#allocation7 + $0x18] sm:$0xff] }
 0xbed   : > { %4127 = vpow2.f32 %v1369_v52  ;;  %v1628_v52 = vld [vmem:[#allocation7 + $0x10] sm:$0xff] }
 0xbf0   : > { %v1518_v58 = vpop.permute.xlu2 %1517 }
 0xbf3   : > { %v4128_v53 = vpop.eup %4127 }
 0xbf4   : > { %v1371_v54 = vsel %vm804_vm5, %v4128_v53, 0.0 }
 0xbf5   : > { %v1284_v55 = vpop.xlane.xlu0 %1283  ;;  %1372 = vadd.xlane.f32.xlu0 %v1371_v54  ;;  %v1626_v54 = vld [vmem:[#allocation7] sm:$0xff] }
 0xbf6   : > { %4129 = vrcp.f32 %v1284_v55  ;;  %v1665_v55 = vld [vmem:[%s5443_s19 + $0x38] sm:$0xff] }
 0xbfc   : > { %v4130_v56 = vpop.eup %4129 }
 0xbfd   : > { %v1286_v57 = vmul.f32 %v4130_v56, %v4126_v45  ;;  %v1664_v56 = vld [vmem:[%s5443_s19 + $0x30] sm:$0xff] }
 0xbff   : > { %3830 = vmatmul.msk.f32.vlgmr.msrb.gmra.mxu2 %vm804_vm5, %v1286_v57  ;;  %v1663_v57 = vld [vmem:[%s5443_s19 + $0x28] sm:$0xff] }
 0xc00   : > { %3840 = vmatpush.xpose.msk.msrb.mxu2 %vm804_vm5, %v1518_v58  ;;  %v1662_v58 = vld [vmem:[%s5443_s19 + $0x20] sm:$0xff] }
 0xc09   : > { %1376 = vrot.lane.b32.xlu0 %v4814_v29, %s5403_s30 }
 0xc11   : > { %1515 = vrot.lane.b32.xlu0 %v1208_v27, %s5394_s25  ;;  %s5447_s25 = smov 80  }
 0xc19   : > { %1426 = vrot.lane.b32.xlu0 %v1208_v27, %s5398_s21  ;;  %s5449_s21 = smov 48  }
 0xc68   : > { %v1373_v59 = vpop.xlane.xlu0 %1372 }
 0xc69   : > { %4131 = vrcp.f32 %v1373_v59  ;;  %v1661_v59 = vld [vmem:[%s5443_s19 + $0x18] sm:$0xff] }
 0xc6f   : > { %v4132_v60 = vpop.eup %4131 }
 0xc70   : > { %v1375_v61 = vmul.f32 %v4132_v60, %v4128_v53  ;;  %v1627_v53 = vld [vmem:[#allocation7 + $0x8] sm:$0xff] }
 0xc7b   : > { %v1377_v62 = vpop.permute.xlu0 %1376 }
 0xc7c   : > { %1397 = vmatpush.msra.mxu0 %v1377_v62 }
 0xc7d   : > { %3834 = vmatmul.msk.f32.vlgmr.msra.gmra.mxu0 %vm804_vm5, %v1375_v61 }
 0xc7e   : > { %1509 = vmatpush.msrb.mxu0 %v1243_v36 }
 0xc80   : > { %1649 = vmatpush.msra.mxu0 %v1629_v51 }
 0xc82   : > { %v1310_v63 = vpop.f32.mrf.mxu2  ;;  %1650 = vmatpush.msra.mxu0 %v1628_v52 }
 0xc83   : > { %3831 = vmatmul.msk.f32.vlgmr.msrb.gmra.mxu3 %vm804_vm5, %v1310_v63  ;;  %v1516_v1 = vpop.permute.xlu0 %1515 }
 0xc84   : > { %1651 = vmatpush.msra.mxu0 %v1627_v53 }
 0xc86   : > { %1652 = vmatpush.msra.mxu0 %v1626_v54 }
 0xc8b   : > { %v1427_v2 = vpop.permute.xlu0 %1426 }
 0xc8c   : > { %3837 = vmatmul.msk.f32.vlgmr.msra.gmra.mxu3 %vm804_vm5, %v1427_v2 }
 0xcfa   : > { %v1399_v3 = vpop.f32.mrf.mxu0 }
 0xcfb   : > { %3835 = vmatmul.msk.f32.vlgmr.msra.gmra.mxu2 %vm804_vm5, %v1399_v3 }
 0xcfc   : > { %1678 = vmatpush.msra.mxu2 %v1665_v55  ;;  %v3853_v55 = vld [vmem:[%s5363_s6 + $0x28] sm:$0xff] }
 0xcfe   : > { %1679 = vmatpush.msra.mxu2 %v1664_v56 }
 0xd00   : > { %1680 = vmatpush.msra.mxu2 %v1663_v57 }
 0xd02   : > { %1681 = vmatpush.msra.mxu2 %v1662_v58 }
 0xd03   : > { %3841 = vmatmul.msk.f32.vlgmr.msrb.gmra.mxu2 %vm804_vm5, %v1516_v1 }
 0xd04   : > { %1682 = vmatpush.msra.mxu2 %v1661_v59 }
 0xd06   : > { %v1333_v4 = vpop.f32.mrf.mxu3  ;;  %1683 = vmatpush.msra.mxu2 %v1660_v9 }
 0xd07   : > { %v1336_v11 = vadd.f32 %v1333_v4, %v1249_v10  ;;  %v1659_v10 = vld [vmem:[%s5443_s19 + $0x8] sm:$0xff] }
 0xd08   : > { %1684 = vmatpush.msra.mxu2 %v1659_v10 }
 0xd0f   : > { %v1451_v5 = vpop.f32.mrf.mxu3 }
 0xd10   : > { %v1452_v6 = vadd.f32 %v1451_v5, %v4831_v33 }
 0xd12   : > { %v1454_v7 = vsel %vm804_vm5, %v1452_v6, -inf }
 0xd13   : > { %1455 = vmax.xlane.f32.xlu0 %v1454_v7 }
 0xd27   : > { %1554 = vrot.lane.b32.xlu0 %v4814_v29, %s5401_s1 }
 0xd7e   : > { %v1422_v12 = vpop.f32.mrf.mxu2 }
 0xd7f   : > { %v1425_v13 = vadd.f32 %v1422_v12, %v1336_v11  ;;  %v1658_v11 = vld [vmem:[%s5443_s19] sm:$0xff] }
 0xd80   : > { %1685 = vmatpush.msra.mxu2 %v1658_v11  ;;  %v4085_v12 = vld [vmem:[#allocation8] ss:$0 sm:$0xff] }
 0xd82   : > { %1933 = vmatpush.msrb.mxu2 %v3853_v55 }
 0xd86   : > { %v1456_v14 = vpop.xlane.xlu0 %1455  ;;  %v1540_v15 = vpop.f32.mrf.mxu2 }
 0xd87   : > { %v1457_v16 = vsub.f32 %v1452_v6, %v1456_v14  ;;  %v1541_v17 = vadd.f32 %v1540_v15, %v4831_v33 }
 0xd89   : > { %v1458_v18 = vmul.f32 1.442695, %v1457_v16  ;;  %v1543_v19 = vsel %vm804_vm5, %v1541_v17, -inf  ;;  %v4086_v16 = vld [vmem:[#allocation10] ss:$0 sm:$0xff] }
 0xd8a   : > { %1544 = vmax.xlane.f32.xlu1 %v1543_v19 }
 0xd8b   : > { %4133 = vpow2.f32 %v1458_v18 }
 0xd91   : > { %v4134_v20 = vpop.eup %4133 }
 0xd92   : > { %v1460_v21 = vsel %vm804_vm5, %v4134_v20, 0.0 }
 0xd93   : > { %1461 = vadd.xlane.f32.xlu1 %v1460_v21 }
 0xd99   : > { %v1555_v22 = vpop.permute.xlu0 %1554 }
 0xd9a   : > { %1575 = vmatpush.msrb.mxu3 %v1555_v22 }
 0xdac   : > { %1465 = vrot.lane.b32.xlu1 %v4814_v29, %s5392_s24  ;;  %s5446_s24 = smov 104  }
 0xdfd   : > { %v1545_v43 = vpop.xlane.xlu1 %1544 }
 0xdfe   : > { %v1546_v23 = vsub.f32 %v1541_v17, %v1545_v43 }
 0xe00   : > { %v1547_v25 = vmul.f32 1.442695, %v1546_v23 }
 0xe02   : > { %4135 = vpow2.f32 %v1547_v25 }
 0xe06   : > { %v1462_v27 = vpop.xlane.xlu1 %1461 }
 0xe07   : > { %4137 = vrcp.f32 %v1462_v27  ;;  %v3847_v27 = vld [vmem:[%s5361_s4 + $0x28] sm:$0xff] }
 0xe08   : > { %v4136_v26 = vpop.eup %4135 }
 0xe09   : > { %v1549_v0 = vsel %vm804_vm5, %v4136_v26, 0.0 }
 0xe0a   : > { %1550 = vadd.xlane.f32.xlu2 %v1549_v0  ;;  %v3848_v0 = vld [vmem:[%s5361_s4 + $0x30] sm:$0xff] }
 0xe0d   : > { %v4138_v28 = vpop.eup %4137 }
 0xe0e   : > { %v1464_v30 = vmul.f32 %v4138_v28, %v4134_v20  ;;  %v3846_v28 = vld [vmem:[%s5361_s4 + $0x20] sm:$0xff] }
 0xe1e   : > { %v1466_v31 = vpop.permute.xlu1 %1465 }
 0xe1f   : > { %1486 = vmatpush.msrb.mxu1 %v1466_v31 }
 0xe20   : > { %3838 = vmatmul.msk.f32.vlgmr.msrb.gmra.mxu1 %vm804_vm5, %v1464_v30 }
 0xe21   : > { %1598 = vmatpush.msra.mxu1 %v1244_v32 }
 0xe7d   : > { %v1551_v34 = vpop.xlane.xlu2 %1550 }
 0xe7e   : > { %4139 = vrcp.f32 %v1551_v34 }
 0xe84   : > { %v4140_v29 = vpop.eup %4139 }
 0xe85   : > { %v1553_v37 = vmul.f32 %v4140_v29, %v4136_v26  ;;  %v3849_v26 = vld [vmem:[%s5361_s4 + $0x38] sm:$0xff] }
 0xe86   : > { %1743 = vmatpush.msra.mxu3 %v3849_v26 }
 0xe87   : > { %3842 = vmatmul.msk.f32.vlgmr.msrb.gmra.mxu3 %vm804_vm5, %v1553_v37 }
 0xe88   : > { %1744 = vmatpush.msra.mxu3 %v3848_v0 }
 0xe8a   : > { %1745 = vmatpush.msra.mxu3 %v3847_v27 }
 0xe8c   : > { %1746 = vmatpush.msra.mxu3 %v3846_v28 }
 0xe9d   : > { %v1488_v38 = vpop.f32.mrf.mxu1 }
 0xe9e   : > { %3839 = vmatmul.msk.f32.vlgmr.msrb.gmra.mxu0 %vm804_vm5, %v1488_v38 }
 0xf0a   : > { %v1577_v39 = vpop.f32.mrf.mxu3 }
 0xf0b   : > { %3843 = vmatmul.msk.f32.vlgmr.msra.gmra.mxu1 %vm804_vm5, %v1577_v39 }
 0xf1b   : > { %v1511_v40 = vpop.f32.mrf.mxu0 }
 0xf1c   : > { %v1514_v41 = vadd.f32 %v1511_v40, %v1425_v13 }
 0xf88   : > { %v1600_v42 = vpop.f32.mrf.mxu1 }
 0xf89   : > { %v1603_v44 = vadd.f32 %v1600_v42, %v1514_v41  ;;  %v4087_v42 = vld [vmem:[%s5362_s5 + $0x1] ss:$0 sm:$0xff] }
 0xf8b   : > { %v1604_v45 = vsel %vm709_vm0, %v1603_v44, 0.0 }
 0xf8c   : > { %1605 = vadd.xlane.f32.xlu2 %v1604_v45 }
 0xfff   : > { %v1606_v46 = vpop.xlane.xlu2 %1605 }
0x1000   : > { %v1607_v47 = vmul.f32 %v1606_v46, %v4675_v8 }
0x1002   : > { %v1608_v48 = vsub.f32 %v1603_v44, %v1607_v47 }
0x1004   : > { %v1609_v49 = vmul.f32 %v1608_v48, %v1608_v48 }
0x1006   : > { %v1610_v50 = vsel %vm709_vm0, %v1609_v49, 0.0 }
0x1007   : > { %1611 = vadd.xlane.f32.xlu2 %v1610_v50 }
0x107a   : > { %v1612_v60 = vpop.xlane.xlu2 %1611 }
0x107b   : > { %v1613_v61 = vmul.f32 %v1612_v60, %v4675_v8 }
0x107d   : > { %v1614_v62 = vadd.f32 1e-05, %v1613_v61 }
0x107f   : > { %4141 = vrsqrt.f32 %v1614_v62  ;;  %vm1621_vm13 = vweird.f32 %v1614_v62 }
0x1085   : > { %v4142_v63 = vpop.eup %4141 }
0x1086   : > { %v1616_v1 = vmul.f32 %v4142_v63, %v1614_v62  ;;  %vm1622_vm12 = vweird.f32 %v4142_v63 }
0x1087   : > { %vm1623_vm14 = vmor %vm1621_vm13, %vm1622_vm12 }
0x1088   : > { %v1617_v2 = vmul.f32 %v4142_v63, %v1616_v1 }
0x108a   : > { %v1618_v3 = vmul.f32 0.5, %v1617_v2 }
0x108c   : > { %v1619_v4 = vsub.f32 1.5, %v1618_v3 }
0x108e   : > { %v1620_v5 = vmul.f32 %v4142_v63, %v1619_v4  ;;  %v3852_v4 = vld [vmem:[%s5363_s6 + $0x20] sm:$0xff] }
0x108f   : > { %1844 = vmatpush.msrb.mxu3 %v3852_v4 }
0x1090   : > { %v1624_v6 = vsel %vm1623_vm14, %v4142_v63, %v1620_v5 }
0x1091   : > { %v1625_v7 = vmul.f32 %v1624_v6, %v1608_v48 }
0x1093   : > { %3844 = vmatmul.msk.f32.vlgmr.msra.gmra.mxu0 %vm709_vm0, %v1625_v7 }
0x1110   : > { %v1654_v13 = vpop.f32.mrf.mxu0 }
0x1111   : > { %v1655_v14 = vadd.f32 %v4085_v12, %v1654_v13 }
0x1113   : > { %v1657_v15 = vmax.f32 %v1655_v14, 0.0 }
0x1115   : > { %3845 = vmatmul.msk.f32.vlgmr.msra.gmra.mxu2 %vm1666_vm15, %v1657_v15 }
0x1198   : > { %v1687_v17 = vpop.f32.mrf.mxu2 }
0x1199   : > { %v1690_v18 = vadd.f32 %v1687_v17, %v1603_v44  ;;  %v2176_v17 = vld [vmem:[#allocation2 + $0x38] sm:$0xff] }
0x119b   : > { %v4905_v19 = vadd.f32 %v4086_v16, %v1690_v18 }
0x119d   : > { %v1696_v20 = vsel %vm709_vm0, %v4905_v19, 0.0 }
0x119e   : > { %1697 = vadd.xlane.f32.xlu0 %v1696_v20 }
0x1211   : > { %v1698_v21 = vpop.xlane.xlu0 %1697 }
0x1212   : > { %v1699_v22 = vmul.f32 %v1698_v21, %v4675_v8  ;;  %v2175_v21 = vld [vmem:[#allocation2 + $0x30] sm:$0xff] }
0x1214   : > { %v1700_v43 = vsub.f32 %v4905_v19, %v1699_v22  ;;  %v2174_v22 = vld [vmem:[#allocation2 + $0x28] sm:$0xff] }
0x1216   : > { %v1701_v23 = vmul.f32 %v1700_v43, %v1700_v43 }
0x1218   : > { %v1702_v25 = vsel %vm709_vm0, %v1701_v23, 0.0 }
0x1219   : > { %1703 = vadd.xlane.f32.xlu2 %v1702_v25  ;;  %v4088_v25 = vld [vmem:[%s5364_s7 + $0x1] ss:$0 sm:$0xff] }
0x121a   : > { %v1761_v26 = vadd.f32 %v4088_v25, %v4905_v19 }
0x128c   : > { %v1704_v30 = vpop.xlane.xlu2 %1703 }
0x128d   : > { %v1705_v31 = vmul.f32 %v1704_v30, %v4675_v8 }
0x128f   : > { %v1706_v34 = vadd.f32 1e-05, %v1705_v31 }
0x1291   : > { %4143 = vrsqrt.f32 %v1706_v34  ;;  %vm1713_vm2 = vweird.f32 %v1706_v34 }
0x1297   : > { %v4144_v36 = vpop.eup %4143 }
0x1298   : > { %v1708_v29 = vmul.f32 %v4144_v36, %v1706_v34  ;;  %vm1714_vm1 = vweird.f32 %v4144_v36 }
0x1299   : > { %vm1715_vm3 = vmor %vm1713_vm2, %vm1714_vm1 }
0x129a   : > { %v1709_v37 = vmul.f32 %v4144_v36, %v1708_v29 }
0x129c   : > { %v1710_v38 = vmul.f32 0.5, %v1709_v37 }
0x129e   : > { %v1711_v32 = vsub.f32 1.5, %v1710_v38 }
0x12a0   : > { %v1712_v39 = vmul.f32 %v4144_v36, %v1711_v32 }
0x12a2   : > { %v1716_v40 = vsel %vm1715_vm3, %v4144_v36, %v1712_v39  ;;  %v4089_v39 = vld [vmem:[%s5368_s11 + $0x1] ss:$0 sm:$0xff] }
0x12a3   : > { %v1717_v41 = vmul.f32 %v1716_v40, %v1700_v43  ;;  %v2173_v43 = vld [vmem:[#allocation2 + $0x20] sm:$0xff] }
0x12a5   : > { %3851 = vmatmul.msk.f32.vlgmr.msra.gmra.mxu3 %vm709_vm0, %v1717_v41 }
0x1328   : > { %v1748_v44 = vpop.f32.mrf.mxu3 }
0x1329   : > { %v4929_v45 = vadd.f32 %v4087_v42, %v1748_v44 }
0x132b   : > { %1852 = vrot.lane.b32.xlu2 %v4929_v45, %s5403_s30  ;;  %1763 = vrot.lane.b32.xlu1 %v4929_v45, %s5405_s13  ;;  %s5453_s30 = smov 120   ;;  %s5454_s13 = smov 56  }
0x1333   : > { %1850 = vrot.lane.b32.xlu1 %v4929_v45, %s5407_s20 }
0x1385   : > { %v1853_v47 = vpop.permute.xlu2 %1852 }
0x139d   : > { %v1764_v46 = vpop.permute.xlu1 %1763 }
0x139e   : > { %3857 = vmatpush.xpose.msk.msrb.mxu1 %vm804_vm5, %v1764_v46 }
0x13a1   : > { %3858 = vmatmul.msk.f32.vlgmr.msrb.gmra.mxu1 %vm804_vm5, %v4929_v45 }
0x13a2   : > { %3861 = vmatpush.xpose.msk.msra.mxu1 %vm804_vm5, %v1853_v47 }
0x13a5   : > { %v1851_v48 = vpop.permute.xlu1 %1850 }
0x13a9   : > { %3862 = vmatmul.msk.f32.vlgmr.msra.gmra.mxu1 %vm804_vm5, %v1851_v48 }
0x141e   : > { %v1786_v49 = vpop.f32.mrf.mxu1 }
0x141f   : > { %v1787_v50 = vadd.f32 %v1786_v49, %v4717_v35 }
0x1421   : > { %v1789_v51 = vsel %vm804_vm5, %v1787_v50, -inf }
0x1422   : > { %1790 = vmax.xlane.f32.xlu1 %v1789_v51 }
0x1426   : > { %v1875_v52 = vpop.f32.mrf.mxu1 }
0x1427   : > { %v1876_v53 = vadd.f32 %v1875_v52, %v4717_v35 }
0x1429   : > { %v1878_v54 = vsel %vm804_vm5, %v1876_v53, -inf }
0x142a   : > { %1879 = vmax.xlane.f32.xlu2 %v1878_v54 }
0x143b   : > { %1889 = vrot.lane.b32.xlu1 %v4929_v45, %s5400_s2  ;;  %s5450_s2 = smov 96  }
0x1442   : > { %2030 = vrot.lane.b32.xlu2 %v4929_v45, %s5401_s1  ;;  %s5451_s1 = smov 88  }
0x1443   : > { %1939 = vrot.lane.b32.xlu1 %v4929_v45, %s5444_s27 }
0x1495   : > { %v1791_v56 = vpop.xlane.xlu1 %1790 }
0x1496   : > { %v1792_v57 = vsub.f32 %v1787_v50, %v1791_v56 }
0x1498   : > { %v1793_v58 = vmul.f32 1.442695, %v1792_v57 }
0x149a   : > { %4145 = vpow2.f32 %v1793_v58  ;;  %v3855_v58 = vld [vmem:[%s5363_s6 + $0x38] sm:$0xff] }
0x149d   : > { %v1880_v59 = vpop.xlane.xlu2 %1879 }
0x149e   : > { %v1881_v60 = vsub.f32 %v1876_v53, %v1880_v59 }
0x14a0   : > { %v4146_v61 = vpop.eup %4145  ;;  %v1882_v62 = vmul.f32 1.442695, %v1881_v60 }
0x14a1   : > { %v1795_v63 = vsel %vm804_vm5, %v4146_v61, 0.0 }
0x14a2   : > { %4147 = vpow2.f32 %v1882_v62  ;;  %1796 = vadd.xlane.f32.xlu0 %v1795_v63 }
0x14a5   : > { %v2031_v1 = vpop.permute.xlu2 %2030 }
0x14a6   : > { %3869 = vmatpush.xpose.msk.msra.mxu2 %vm804_vm5, %v2031_v1 }
0x14a8   : > { %v4148_v2 = vpop.eup %4147 }
0x14a9   : > { %v1884_v3 = vsel %vm804_vm5, %v4148_v2, 0.0 }
0x14aa   : > { %1885 = vadd.xlane.f32.xlu0 %v1884_v3 }
0x14ad   : > { %v1890_v11 = vpop.permute.xlu1 %1889 }
0x14b5   : > { %v1940_v18 = vpop.permute.xlu1 %1939 }
0x14be   : > { %1800 = vrot.lane.b32.xlu0 %v4929_v45, %s5445_s22 }
0x14c6   : > { %2028 = vrot.lane.b32.xlu0 %v4929_v45, %s5446_s24 }
0x14ce   : > { %1941 = vrot.lane.b32.xlu0 %v4929_v45, %s5447_s25 }
0x1515   : > { %v1797_v5 = vpop.xlane.xlu0 %1796 }
0x1516   : > { %4149 = vrcp.f32 %v1797_v5 }
0x151c   : > { %v4150_v7 = vpop.eup %4149 }
0x151d   : > { %v1886_v6 = vpop.xlane.xlu0 %1885  ;;  %v1799_v9 = vmul.f32 %v4150_v7, %v4146_v61 }
0x151e   : > { %4151 = vrcp.f32 %v1886_v6 }
0x1524   : > { %v4152_v12 = vpop.eup %4151 }
0x1525   : > { %v1888_v13 = vmul.f32 %v4152_v12, %v4148_v2  ;;  %v3873_v12 = vld [vmem:[%s5365_s8 + $0x20] sm:$0xff] }
0x1530   : > { %v1801_v10 = vpop.permute.xlu0 %1800 }
0x1531   : > { %1821 = vmatpush.msrb.mxu0 %v1801_v10  ;;  %v3875_v10 = vld [vmem:[%s5365_s8 + $0x30] sm:$0xff] }
0x1532   : > { %3859 = vmatmul.msk.f32.vlgmr.msrb.gmra.mxu0 %vm804_vm5, %v1799_v9  ;;  %v3876_v9 = vld [vmem:[%s5365_s8 + $0x38] sm:$0xff] }
0x1533   : > { %1910 = vmatpush.msra.mxu0 %v1890_v11  ;;  %v3874_v11 = vld [vmem:[%s5365_s8 + $0x28] sm:$0xff] }
0x1538   : > { %v2029_v14 = vpop.permute.xlu0 %2028 }
0x153a   : > { %3863 = vmatmul.msk.f32.vlgmr.msra.gmra.mxu0 %vm804_vm5, %v1888_v13 }
0x1540   : > { %v1942_v15 = vpop.permute.xlu0 %1941 }
0x1541   : > { %3865 = vmatpush.xpose.msk.msra.mxu3 %vm804_vm5, %v1942_v15 }
0x15af   : > { %v1823_v16 = vpop.f32.mrf.mxu0 }
0x15b0   : > { %3860 = vmatmul.msk.f32.vlgmr.msrb.gmra.mxu3 %vm804_vm5, %v1823_v16 }
0x15b7   : > { %v1912_v20 = vpop.f32.mrf.mxu0 }
0x15b8   : > { %3864 = vmatmul.msk.f32.vlgmr.msrb.gmra.mxu2 %vm804_vm5, %v1912_v20  ;;  %3866 = vmatmul.msk.f32.vlgmr.msra.gmra.mxu3 %vm804_vm5, %v1940_v18 }
0x15b9   : > { %2194 = vmatpush.msrb.mxu2 %v2176_v17 }
0x15bb   : > { %2195 = vmatpush.msrb.mxu2 %v2175_v21 }
0x15bd   : > { %2196 = vmatpush.msrb.mxu2 %v2174_v22 }
0x15bf   : > { %2197 = vmatpush.msrb.mxu2 %v2173_v43 }
0x15c0   : > { %3870 = vmatmul.msk.f32.vlgmr.msra.gmra.mxu2 %vm804_vm5, %v2029_v14 }
0x15c8   : > { %3880 = vmatmul.msk.f32.vlgmr.msrb.gmra.mxu2 %vm709_vm0, %v4804_v24 }
0x1633   : > { %v1846_v23 = vpop.f32.mrf.mxu3 }
0x1634   : > { %v1849_v0 = vadd.f32 %v1846_v23, %v1761_v26  ;;  %v4090_v26 = vld [vmem:[%s5366_s9 + $0x1] ss:$0 sm:$0xff] }
0x163b   : > { %v1935_v27 = vpop.f32.mrf.mxu2  ;;  %v1964_v28 = vpop.f32.mrf.mxu3 }
0x163c   : > { %v1938_v30 = vadd.f32 %v1935_v27, %v1849_v0  ;;  %v1965_v31 = vadd.f32 %v1964_v28, %v4717_v35 }
0x163e   : > { %v1967_v34 = vsel %vm804_vm5, %v1965_v31, -inf }
0x163f   : > { %1968 = vmax.xlane.f32.xlu2 %v1967_v34 }
0x1643   : > { %v2053_v36 = vpop.f32.mrf.mxu2 }
0x1644   : > { %v2054_v29 = vadd.f32 %v2053_v36, %v4717_v35 }
0x1646   : > { %v2056_v37 = vsel %vm804_vm5, %v2054_v29, -inf }
0x1647   : > { %2057 = vmax.xlane.f32.xlu0 %v2056_v37 }
0x164b   : > { %v2199_v40 = vpop.f32.mrf.mxu2 }
0x164c   : > { %v4989_v41 = vadd.f32 %v4089_v39, %v2199_v40 }
0x1657   : > { %2067 = vrot.lane.b32.xlu2 %v4929_v45, %s5448_s18 }
0x16b2   : > { %v1969_v38 = vpop.xlane.xlu2 %1968 }
0x16b3   : > { %v1970_v19 = vsub.f32 %v1965_v31, %v1969_v38 }
0x16b5   : > { %v1971_v32 = vmul.f32 1.442695, %v1970_v19 }
0x16b7   : > { %4153 = vpow2.f32 %v1971_v32 }
0x16ba   : > { %v2058_v42 = vpop.xlane.xlu0 %2057  ;;  %v2068_v44 = vpop.permute.xlu2 %2067 }
0x16bb   : > { %v2059_v35 = vsub.f32 %v2054_v29, %v2058_v42  ;;  %2088 = vmatpush.msrb.mxu3 %v2068_v44 }
0x16bd   : > { %3882 = vmatpush.xpose.msk.msra.mxu3 %vm804_vm5, %v4989_v41  ;;  %v4154_v46 = vpop.eup %4153  ;;  %v2060_v47 = vmul.f32 1.442695, %v2059_v35 }
0x16be   : > { %v1973_v48 = vsel %vm804_vm5, %v4154_v46, 0.0 }
0x16bf   : > { %4155 = vpow2.f32 %v2060_v47  ;;  %1974 = vadd.xlane.f32.xlu0 %v1973_v48 }
0x16c5   : > { %v4156_v49 = vpop.eup %4155 }
0x16c6   : > { %v2062_v50 = vsel %vm804_vm5, %v4156_v49, 0.0 }
0x16c7   : > { %2063 = vadd.xlane.f32.xlu1 %v2062_v50 }
0x16e0   : > { %1978 = vrot.lane.b32.xlu1 %v4929_v45, %s5449_s21  ;;  %v3854_v45 = vld [vmem:[%s5363_s6 + $0x30] sm:$0xff] }
0x16e1   : > { %2022 = vmatpush.msrb.mxu0 %v3854_v45 }
0x16e3   : > { %2164 = vmatpush.msra.mxu0 %v3876_v9 }
0x16e5   : > { %2165 = vmatpush.msra.mxu0 %v3875_v10 }
0x16e7   : > { %2166 = vmatpush.msra.mxu0 %v3874_v11 }
0x16e9   : > { %2167 = vmatpush.msra.mxu0 %v3873_v12 }
0x1732   : > { %v1975_v54 = vpop.xlane.xlu0 %1974 }
0x173a   : > { %v2064_v51 = vpop.xlane.xlu1 %2063 }
0x173b   : > { %4157 = vrcp.f32 %v2064_v51 }
0x173c   : > { %4159 = vrcp.f32 %v1975_v54  ;;  %v2204_v54 = vld [vmem:[#allocation5 + $0x28] sm:$0xff] }
0x1741   : > { %v4158_v52 = vpop.eup %4157 }
0x1742   : > { %v2066_v53 = vmul.f32 %v4158_v52, %v4156_v49  ;;  %v4160_v55 = vpop.eup %4159  ;;  %v2203_v49 = vld [vmem:[#allocation5 + $0x20] sm:$0xff] }
0x1743   : > { %v1977_v56 = vmul.f32 %v4160_v55, %v4154_v46 }
0x1744   : > { %3871 = vmatmul.msk.f32.vlgmr.msrb.gmra.mxu3 %vm804_vm5, %v2066_v53 }
0x1752   : > { %v1979_v57 = vpop.permute.xlu1 %1978 }
0x1753   : > { %1999 = vmatpush.msrb.mxu1 %v1979_v57 }
0x1754   : > { %3867 = vmatmul.msk.f32.vlgmr.msrb.gmra.mxu1 %vm804_vm5, %v1977_v56 }
0x1755   : > { %2111 = vmatpush.msra.mxu1 %v3855_v58 }
0x17c7   : > { %v2090_v59 = vpop.f32.mrf.mxu3 }
0x17c8   : > { %3872 = vmatmul.msk.f32.vlgmr.msra.gmra.mxu1 %vm804_vm5, %v2090_v59 }
0x17d1   : > { %v2001_v60 = vpop.f32.mrf.mxu1 }
0x17d2   : > { %3868 = vmatmul.msk.f32.vlgmr.msrb.gmra.mxu0 %vm804_vm5, %v2001_v60 }
0x17d3   : > { %2294 = vmatpush.msrb.mxu0 %v2203_v49  ;;  %v2590_v49 = vld [vmem:[#allocation7 + $0x20] sm:$0xff] }
0x1845   : > { %v2113_v63 = vpop.f32.mrf.mxu1 }
0x184f   : > { %v2024_v61 = vpop.f32.mrf.mxu0 }
0x1850   : > { %v2027_v62 = vadd.f32 %v2024_v61, %v1938_v30 }
0x1852   : > { %v5007_v1 = vadd.f32 %v2113_v63, %v2027_v62 }
0x1854   : > { %v2117_v2 = vsel %vm709_vm0, %v5007_v1, 0.0 }
0x1855   : > { %2118 = vadd.xlane.f32.xlu0 %v2117_v2 }
0x18c8   : > { %v2119_v3 = vpop.xlane.xlu0 %2118 }
0x18c9   : > { %v2120_v4 = vmul.f32 %v2119_v3, %v4675_v8 }
0x18cb   : > { %v2121_v5 = vsub.f32 %v5007_v1, %v2120_v4 }
0x18cd   : > { %v2122_v6 = vmul.f32 %v2121_v5, %v2121_v5 }
0x18cf   : > { %v2123_v7 = vsel %vm709_vm0, %v2122_v6, 0.0 }
0x18d0   : > { %2124 = vadd.xlane.f32.xlu0 %v2123_v7 }
0x18e4   : > { %2302 = vrot.lane.b32.xlu0 %v4989_v41, %s5407_s20 }
0x1943   : > { %v2125_v13 = vpop.xlane.xlu0 %2124 }
0x1944   : > { %v2126_v14 = vmul.f32 %v2125_v13, %v4675_v8 }
0x1946   : > { %v2127_v15 = vadd.f32 1e-05, %v2126_v14 }
0x1948   : > { %4161 = vrsqrt.f32 %v2127_v15  ;;  %vm2134_vm6 = vweird.f32 %v2127_v15 }
0x194e   : > { %v4162_v16 = vpop.eup %4161 }
0x194f   : > { %v2129_v17 = vmul.f32 %v4162_v16, %v2127_v15  ;;  %vm2135_vm4 = vweird.f32 %v4162_v16 }
0x1950   : > { %vm2136_vm7 = vmor %vm2134_vm6, %vm2135_vm4 }
0x1951   : > { %v2130_v18 = vmul.f32 %v4162_v16, %v2129_v17 }
0x1953   : > { %v2131_v20 = vmul.f32 0.5, %v2130_v18 }
0x1955   : > { %v2132_v21 = vsub.f32 1.5, %v2131_v20 }
0x1956   : > { %v2303_v22 = vpop.permute.xlu0 %2302 }
0x1957   : > { %v2133_v43 = vmul.f32 %v4162_v16, %v2132_v21  ;;  %3886 = vmatpush.xpose.msk.msra.mxu2 %vm804_vm5, %v2303_v22 }
0x1959   : > { %v2137_v23 = vsel %vm2136_vm7, %v4162_v16, %v2133_v43 }
0x195a   : > { %v2138_v25 = vmul.f32 %v2137_v23, %v2121_v5  ;;  %v4091_v5 = vld [vmem:[%s5442_s15 + $0x1] ss:$0 sm:$0xff] }
0x195b   : > { %v2212_v6 = vadd.f32 %v4091_v5, %v5007_v1  ;;  %v3899_v5 = vld [vmem:[%s5443_s19 + $0x40] sm:$0xff] }
0x195c   : > { %3878 = vmatmul.msk.f32.vlgmr.msra.gmra.mxu0 %vm709_vm0, %v2138_v25 }
0x19d9   : > { %v2169_v0 = vpop.f32.mrf.mxu0 }
0x19da   : > { %v2170_v27 = vadd.f32 %v4090_v26, %v2169_v0 }
0x19dc   : > { %2300 = vrot.lane.b32.xlu2 %v2170_v27, %s5407_s20  ;;  %3883 = vmatmul.msk.f32.vlgmr.msra.gmra.mxu3 %vm804_vm5, %v2170_v27 }
0x1a36   : > { %v2301_v28 = vpop.permute.xlu2 %2300 }
0x1a37   : > { %3887 = vmatmul.msk.f32.vlgmr.msra.gmra.mxu2 %vm804_vm5, %v2301_v28 }
0x1a5f   : > { %v2236_v30 = vpop.f32.mrf.mxu3 }
0x1a60   : > { %v2237_v31 = vadd.f32 %v2236_v30, %v4831_v33 }
0x1a62   : > { %v2239_v34 = vsel %vm804_vm5, %v2237_v31, -inf }
0x1a63   : > { %2240 = vmax.xlane.f32.xlu1 %v2239_v34  ;;  %v2206_v34 = vld [vmem:[#allocation5 + $0x38] sm:$0xff] }
0x1aba   : > { %v2325_v36 = vpop.f32.mrf.mxu2 }
0x1abb   : > { %v2326_v29 = vadd.f32 %v2325_v36, %v4831_v33 }
0x1abd   : > { %v2328_v37 = vsel %vm804_vm5, %v2326_v29, -inf }
0x1abe   : > { %2329 = vmax.xlane.f32.xlu2 %v2328_v37 }
0x1ad6   : > { %v2241_v38 = vpop.xlane.xlu1 %2240  ;;  %2250 = vrot.lane.b32.xlu2 %v4989_v41, %s5450_s2 }
0x1ad7   : > { %v2242_v19 = vsub.f32 %v2237_v31, %v2241_v38 }
0x1ad9   : > { %v2243_v32 = vmul.f32 1.442695, %v2242_v19 }
0x1adb   : > { %4163 = vpow2.f32 %v2243_v32 }
0x1ade   : > { %2389 = vrot.lane.b32.xlu2 %v2170_v27, %s5444_s27 }
0x1ae1   : > { %v4164_v39 = vpop.eup %4163 }
0x1ae2   : > { %v2245_v40 = vsel %vm804_vm5, %v4164_v39, 0.0 }
0x1ae3   : > { %2246 = vadd.xlane.f32.xlu0 %v2245_v40 }
0x1af7   : > { %2391 = vrot.lane.b32.xlu0 %v4989_v41, %s5444_s27 }
0x1aff   : > { %2478 = vrot.lane.b32.xlu0 %v2170_v27, %s5446_s24  ;;  %v2205_v27 = vld [vmem:[#allocation5 + $0x30] sm:$0xff] }
0x1b31   : > { %v2330_v42 = vpop.xlane.xlu2 %2329 }
0x1b32   : > { %v2331_v44 = vsub.f32 %v2326_v29, %v2330_v42 }
0x1b34   : > { %v2332_v35 = vmul.f32 1.442695, %v2331_v44 }
0x1b36   : > { %4165 = vpow2.f32 %v2332_v35 }
0x1b39   : > { %v2251_v46 = vpop.permute.xlu2 %2250 }
0x1b3a   : > { %2271 = vmatpush.msrb.mxu1 %v2251_v46  ;;  %v2593_v46 = vld [vmem:[#allocation7 + $0x38] sm:$0xff] }
0x1b3c   : > { %v4166_v47 = vpop.eup %4165  ;;  %2383 = vmatpush.msra.mxu1 %v2204_v54  ;;  %v3902_v54 = vld [vmem:[%s5443_s19 + $0x58] sm:$0xff] }
0x1b3d   : > { %v2334_v48 = vsel %vm804_vm5, %v4166_v47, 0.0 }
0x1b3e   : > { %2335 = vadd.xlane.f32.xlu1 %v2334_v48  ;;  %v2591_v48 = vld [vmem:[#allocation7 + $0x28] sm:$0xff] }
0x1b41   : > { %v2390_v60 = vpop.permute.xlu2 %2389 }
0x1b56   : > { %v2247_v50 = vpop.xlane.xlu0 %2246 }
0x1b57   : > { %4167 = vrcp.f32 %v2247_v50  ;;  %2339 = vrot.lane.b32.xlu1 %v4989_v41, %s5451_s1  ;;  %v3906_v50 = vld [vmem:[%s5443_s19 + $0x78] sm:$0xff] }
0x1b5d   : > { %v4168_v51 = vpop.eup %4167 }
0x1b5e   : > { %v2249_v52 = vmul.f32 %v4168_v51, %v4164_v39  ;;  %v3905_v51 = vld [vmem:[%s5443_s19 + $0x70] sm:$0xff] }
0x1b5f   : > { %2480 = vrot.lane.b32.xlu1 %v4989_v41, %s5446_s24 }
0x1b60   : > { %3884 = vmatmul.msk.f32.vlgmr.msrb.gmra.mxu1 %vm804_vm5, %v2249_v52  ;;  %v3904_v52 = vld [vmem:[%s5443_s19 + $0x68] sm:$0xff] }
0x1b69   : > { %v2392_v53 = vpop.permute.xlu0 %2391 }
0x1b6a   : > { %3890 = vmatpush.xpose.msk.msra.mxu0 %vm804_vm5, %v2392_v53  ;;  %v3903_v53 = vld [vmem:[%s5443_s19 + $0x60] sm:$0xff] }
0x1b71   : > { %v2479_v62 = vpop.permute.xlu0 %2478 }
0x1bb1   : > { %v2336_v55 = vpop.xlane.xlu1 %2335 }
0x1bb2   : > { %4169 = vrcp.f32 %v2336_v55 }
0x1bb8   : > { %v4170_v56 = vpop.eup %4169 }
0x1bb9   : > { %v2338_v57 = vmul.f32 %v4170_v56, %v4166_v47  ;;  %v2592_v47 = vld [vmem:[#allocation7 + $0x30] sm:$0xff] }
0x1bc9   : > { %v2340_v58 = vpop.permute.xlu1 %2339 }
0x1bca   : > { %2360 = vmatpush.msrb.mxu3 %v2340_v58 }
0x1bcb   : > { %3888 = vmatmul.msk.f32.vlgmr.msrb.gmra.mxu3 %vm804_vm5, %v2338_v57 }
0x1bcc   : > { %2472 = vmatpush.msra.mxu3 %v2205_v27 }
0x1bce   : > { %2614 = vmatpush.msrb.mxu3 %v2593_v46 }
0x1bd0   : > { %2615 = vmatpush.msrb.mxu3 %v2592_v47 }
0x1bd1   : > { %v2481_v45 = vpop.permute.xlu1 %2480 }
0x1bd2   : > { %3894 = vmatpush.xpose.msk.msrb.mxu1 %vm804_vm5, %v2481_v45  ;;  %2616 = vmatpush.msrb.mxu3 %v2591_v48 }
0x1bd4   : > { %2617 = vmatpush.msrb.mxu3 %v2590_v49  ;;  %v3914_v49 = vld [vmem:[%s5363_s6 + $0x40] sm:$0xff] }
0x1bdd   : > { %v2273_v59 = vpop.f32.mrf.mxu1 }
0x1bde   : > { %3885 = vmatmul.msk.f32.vlgmr.msrb.gmra.mxu0 %vm804_vm5, %v2273_v59 }
0x1be6   : > { %3891 = vmatmul.msk.f32.vlgmr.msra.gmra.mxu0 %vm804_vm5, %v2390_v60 }
0x1c4e   : > { %v2362_v61 = vpop.f32.mrf.mxu3 }
0x1c4f   : > { %3889 = vmatmul.msk.f32.vlgmr.msra.gmra.mxu1 %vm804_vm5, %v2362_v61 }
0x1c50   : > { %2643 = vmatpush.msra.mxu1 %v3906_v50 }
0x1c52   : > { %2644 = vmatpush.msra.mxu1 %v3905_v51 }
0x1c54   : > { %2645 = vmatpush.msra.mxu1 %v3904_v52 }
0x1c56   : > { %2646 = vmatpush.msra.mxu1 %v3903_v53 }
0x1c57   : > { %3895 = vmatmul.msk.f32.vlgmr.msrb.gmra.mxu1 %vm804_vm5, %v2479_v62 }
0x1c58   : > { %2647 = vmatpush.msra.mxu1 %v3902_v54 }
0x1c5b   : > { %v2296_v63 = vpop.f32.mrf.mxu0 }
0x1c5c   : > { %v2299_v7 = vadd.f32 %v2296_v63, %v2212_v6  ;;  %v4092_v6 = vld [vmem:[#allocation8 + $0x1] ss:$0 sm:$0xff] }
0x1c63   : > { %v2414_v2 = vpop.f32.mrf.mxu0 }
0x1c64   : > { %v2415_v3 = vadd.f32 %v2414_v2, %v4831_v33 }
0x1c66   : > { %v2417_v4 = vsel %vm804_vm5, %v2415_v3, -inf }
0x1c67   : > { %2418 = vmax.xlane.f32.xlu2 %v2417_v4  ;;  %v3900_v4 = vld [vmem:[%s5443_s19 + $0x48] sm:$0xff] }
0x1ccc   : > { %v2385_v9 = vpop.f32.mrf.mxu1 }
0x1ccd   : > { %v2388_v10 = vadd.f32 %v2385_v9, %v2299_v7 }
0x1cd4   : > { %v2503_v11 = vpop.f32.mrf.mxu1 }
0x1cd5   : > { %v2504_v12 = vadd.f32 %v2503_v11, %v4831_v33  ;;  %v4093_v11 = vld [vmem:[#allocation10 + $0x1] ss:$0 sm:$0xff] }
0x1cd7   : > { %v2506_v13 = vsel %vm804_vm5, %v2504_v12, -inf }
0x1cd8   : > { %2507 = vmax.xlane.f32.xlu1 %v2506_v13 }
0x1cda   : > { %v2419_v14 = vpop.xlane.xlu2 %2418 }
0x1cdb   : > { %v2420_v15 = vsub.f32 %v2415_v3, %v2419_v14  ;;  %v3901_v3 = vld [vmem:[%s5443_s19 + $0x50] sm:$0xff] }
0x1cdc   : > { %2648 = vmatpush.msra.mxu1 %v3901_v3 }
0x1cdd   : > { %v2421_v16 = vmul.f32 1.442695, %v2420_v15 }
0x1cde   : > { %2649 = vmatpush.msra.mxu1 %v3900_v4 }
0x1cdf   : > { %4171 = vpow2.f32 %v2421_v16 }
0x1ce0   : > { %2650 = vmatpush.msra.mxu1 %v3899_v5 }
0x1ce5   : > { %v4172_v17 = vpop.eup %4171 }
0x1ce6   : > { %v2423_v18 = vsel %vm804_vm5, %v4172_v17, 0.0 }
0x1ce7   : > { %2424 = vadd.xlane.f32.xlu0 %v2423_v18 }
0x1cf1   : > { %2428 = vrot.lane.b32.xlu1 %v4989_v41, %s5447_s25 }
0x1cfb   : > { %2517 = vrot.lane.b32.xlu0 %v4989_v41, %s5452_s16 }
0x1d4b   : > { %v2508_v1 = vpop.xlane.xlu1 %2507 }
0x1d4c   : > { %v2509_v20 = vsub.f32 %v2504_v12, %v2508_v1 }
0x1d4e   : > { %v2510_v33 = vmul.f32 1.442695, %v2509_v20 }
0x1d50   : > { %4173 = vpow2.f32 %v2510_v33  ;;  %v3911_v33 = vld [vmem:[%s5361_s4 + $0x58] sm:$0xff] }
0x1d56   : > { %v4174_v21 = vpop.eup %4173 }
0x1d57   : > { %v2512_v22 = vsel %vm804_vm5, %v4174_v21, 0.0 }
0x1d58   : > { %2513 = vadd.xlane.f32.xlu2 %v2512_v22  ;;  %v3909_v22 = vld [vmem:[%s5361_s4 + $0x48] sm:$0xff] }
0x1d5a   : > { %v2425_v43 = vpop.xlane.xlu0 %2424 }
0x1d5b   : > { %4175 = vrcp.f32 %v2425_v43  ;;  %v3908_v43 = vld [vmem:[%s5361_s4 + $0x40] sm:$0xff] }
0x1d61   : > { %v4176_v23 = vpop.eup %4175 }
0x1d62   : > { %v2427_v25 = vmul.f32 %v4176_v23, %v4172_v17 }
0x1d63   : > { %v2429_v26 = vpop.permute.xlu1 %2428 }
0x1d64   : > { %2449 = vmatpush.msrb.mxu2 %v2429_v26 }
0x1d65   : > { %3892 = vmatmul.msk.f32.vlgmr.msrb.gmra.mxu2 %vm804_vm5, %v2427_v25 }
0x1d66   : > { %2561 = vmatpush.msra.mxu2 %v2206_v34 }
0x1d6d   : > { %v2518_v0 = vpop.permute.xlu0 %2517 }
0x1d6e   : > { %2538 = vmatpush.msrb.mxu0 %v2518_v0 }
0x1d70   : > { %2709 = vmatpush.msra.mxu0 %v3911_v33 }
0x1dcb   : > { %v2514_v41 = vpop.xlane.xlu2 %2513 }
0x1dcc   : > { %4177 = vrcp.f32 %v2514_v41 }
0x1dd2   : > { %v4178_v28 = vpop.eup %4177 }
0x1dd3   : > { %v2516_v30 = vmul.f32 %v4178_v28, %v4174_v21  ;;  %v3910_v21 = vld [vmem:[%s5361_s4 + $0x50] sm:$0xff] }
0x1dd4   : > { %2710 = vmatpush.msra.mxu0 %v3910_v21 }
0x1dd5   : > { %3896 = vmatmul.msk.f32.vlgmr.msrb.gmra.mxu0 %vm804_vm5, %v2516_v30 }
0x1dd6   : > { %2711 = vmatpush.msra.mxu0 %v3909_v22 }
0x1dd8   : > { %2712 = vmatpush.msra.mxu0 %v3908_v43 }
0x1dda   : > { %2810 = vmatpush.msrb.mxu0 %v3914_v49 }
0x1de8   : > { %v2451_v31 = vpop.f32.mrf.mxu2 }
0x1de9   : > { %3893 = vmatmul.msk.f32.vlgmr.msra.gmra.mxu3 %vm804_vm5, %v2451_v31 }
0x1e52   : > { %v2540_v36 = vpop.f32.mrf.mxu0 }
0x1e53   : > { %3897 = vmatmul.msk.f32.vlgmr.msra.gmra.mxu2 %vm804_vm5, %v2540_v36 }
0x1e6c   : > { %v2474_v29 = vpop.f32.mrf.mxu3 }
0x1e6d   : > { %v2477_v37 = vadd.f32 %v2474_v29, %v2388_v10  ;;  %v4094_v29 = vld [vmem:[%s5362_s5 + $0x2] ss:$0 sm:$0xff] }
0x1ed6   : > { %v2563_v38 = vpop.f32.mrf.mxu2 }
0x1ed7   : > { %v2566_v19 = vadd.f32 %v2563_v38, %v2477_v37 }
0x1ed9   : > { %v2567_v32 = vsel %vm709_vm0, %v2566_v19, 0.0 }
0x1eda   : > { %2568 = vadd.xlane.f32.xlu2 %v2567_v32 }
0x1f4d   : > { %v2569_v39 = vpop.xlane.xlu2 %2568 }
0x1f4e   : > { %v2570_v40 = vmul.f32 %v2569_v39, %v4675_v8 }
0x1f50   : > { %v2571_v42 = vsub.f32 %v2566_v19, %v2570_v40 }
0x1f52   : > { %v2572_v44 = vmul.f32 %v2571_v42, %v2571_v42 }
0x1f54   : > { %v2573_v35 = vsel %vm709_vm0, %v2572_v44, 0.0 }
0x1f55   : > { %2574 = vadd.xlane.f32.xlu2 %v2573_v35 }
0x1fc8   : > { %v2575_v55 = vpop.xlane.xlu2 %2574 }
0x1fc9   : > { %v2576_v56 = vmul.f32 %v2575_v55, %v4675_v8 }
0x1fcb   : > { %v2577_v57 = vadd.f32 1e-05, %v2576_v56 }
0x1fcd   : > { %4179 = vrsqrt.f32 %v2577_v57  ;;  %vm2584_vm9 = vweird.f32 %v2577_v57 }
0x1fd3   : > { %v4180_v58 = vpop.eup %4179 }
0x1fd4   : > { %v2579_v45 = vmul.f32 %v4180_v58, %v2577_v57  ;;  %vm2585_vm8 = vweird.f32 %v4180_v58 }
0x1fd5   : > { %vm2586_vm10 = vmor %vm2584_vm9, %vm2585_vm8 }
0x1fd6   : > { %v2580_v59 = vmul.f32 %v4180_v58, %v2579_v45 }
0x1fd8   : > { %v2581_v60 = vmul.f32 0.5, %v2580_v59 }
0x1fda   : > { %v2582_v61 = vsub.f32 1.5, %v2581_v60  ;;  %v3915_v60 = vld [vmem:[%s5363_s6 + $0x48] sm:$0xff] }
0x1fdb   : > { %2899 = vmatpush.msrb.mxu1 %v3915_v60 }
0x1fdc   : > { %v2583_v62 = vmul.f32 %v4180_v58, %v2582_v61 }
0x1fde   : > { %v2587_v63 = vsel %vm2586_vm10, %v4180_v58, %v2583_v62 }
0x1fdf   : > { %v2588_v2 = vmul.f32 %v2587_v63, %v2571_v42  ;;  %v5147_v42 = vld [vmem:[%s4714_s29] sm:$0xff]  ;;  %s5455_s29 = sld [smem:[#allocation17_spill]] }
0x1fe1   : > { %3898 = vmatmul.msk.f32.vlgmr.msrb.gmra.mxu3 %vm709_vm0, %v2588_v2 }
0x1fe5   : > { %s686_s17 = sand.u32 1, %s5455_s29  }
0x2064   : > { %v2619_v7 = vpop.f32.mrf.mxu3 }
0x2065   : > { %v2620_v9 = vadd.f32 %v4092_v6, %v2619_v7 }
0x2067   : > { %v2622_v10 = vmax.f32 %v2620_v9, 0.0 }
0x2069   : > { %3907 = vmatmul.msk.f32.vlgmr.msra.gmra.mxu1 %vm1666_vm15, %v2622_v10 }
0x20e6   : > { %v2652_v12 = vpop.f32.mrf.mxu1 }
0x20e7   : > { %v2655_v13 = vadd.f32 %v2652_v12, %v2566_v19 }
0x20e9   : > { %v5109_v14 = vadd.f32 %v4093_v11, %v2655_v13  ;;  %v3142_v11 = vld [vmem:[#allocation2 + $0x58] sm:$0xff]  ;;  %v3141_v13 = vld [vmem:[#allocation2 + $0x50] sm:$0xff] }
0x20eb   : > { %v2662_v15 = vsel %vm709_vm0, %v5109_v14, 0.0 }
0x20ec   : > { %2663 = vadd.xlane.f32.xlu2 %v2662_v15  ;;  %v3140_v15 = vld [vmem:[#allocation2 + $0x48] sm:$0xff] }
0x215f   : > { %v2664_v16 = vpop.xlane.xlu2 %2663 }
0x2160   : > { %v2665_v17 = vmul.f32 %v2664_v16, %v4675_v8  ;;  %v3139_v16 = vld [vmem:[#allocation2 + $0x40] sm:$0xff] }
0x2162   : > { %v2666_v18 = vsub.f32 %v5109_v14, %v2665_v17 }
0x2164   : > { %v2667_v1 = vmul.f32 %v2666_v18, %v2666_v18 }
0x2166   : > { %v2668_v20 = vsel %vm709_vm0, %v2667_v1, 0.0  ;;  %v4095_v1 = vld [vmem:[%s5364_s7 + $0x2] ss:$0 sm:$0xff] }
0x2167   : > { %2669 = vadd.xlane.f32.xlu0 %v2668_v20  ;;  %v2727_v20 = vadd.f32 %v4095_v1, %v5109_v14  ;;  %v4096_v14 = vld [vmem:[%s5368_s11 + $0x2] ss:$0 sm:$0xff] }
0x21da   : > { %v2670_v23 = vpop.xlane.xlu0 %2669 }
0x21db   : > { %v2671_v25 = vmul.f32 %v2670_v23, %v4675_v8 }
0x21dd   : > { %v2672_v26 = vadd.f32 1e-05, %v2671_v25 }
0x21df   : > { %4181 = vrsqrt.f32 %v2672_v26  ;;  %vm2679_vm12 = vweird.f32 %v2672_v26 }
0x21e5   : > { %v4182_v0 = vpop.eup %4181 }
0x21e6   : > { %v2674_v27 = vmul.f32 %v4182_v0, %v2672_v26  ;;  %vm2680_vm11 = vweird.f32 %v4182_v0 }
0x21e7   : > { %vm2681_vm13 = vmor %vm2679_vm12, %vm2680_vm11 }
0x21e8   : > { %v2675_v41 = vmul.f32 %v4182_v0, %v2674_v27 }
0x21ea   : > { %v2676_v28 = vmul.f32 0.5, %v2675_v41 }
0x21ec   : > { %v2677_v30 = vsub.f32 1.5, %v2676_v28 }
0x21ee   : > { %v2678_v31 = vmul.f32 %v4182_v0, %v2677_v30 }
0x21f0   : > { %v2682_v34 = vsel %vm2681_vm13, %v4182_v0, %v2678_v31 }
0x21f1   : > { %v2683_v36 = vmul.f32 %v2682_v34, %v2666_v18 }
0x21f3   : > { %3913 = vmatmul.msk.f32.vlgmr.msra.gmra.mxu0 %vm709_vm0, %v2683_v36 }
0x2270   : > { %v2714_v37 = vpop.f32.mrf.mxu0 }
0x2271   : > { %v5133_v38 = vadd.f32 %v4094_v29, %v2714_v37 }
0x2273   : > { %2818 = vrot.lane.b32.xlu2 %v5133_v38, %s5451_s1  ;;  %2729 = vrot.lane.b32.xlu1 %v5133_v38, %s5450_s2 }
0x227b   : > { %2816 = vrot.lane.b32.xlu1 %v5133_v38, %s5453_s30 }
0x22cd   : > { %v2819_v32 = vpop.permute.xlu2 %2818 }
0x22e5   : > { %v2730_v19 = vpop.permute.xlu1 %2729 }
0x22e6   : > { %3919 = vmatpush.xpose.msk.msrb.mxu2 %vm804_vm5, %v2730_v19 }
0x22e9   : > { %3920 = vmatmul.msk.f32.vlgmr.msrb.gmra.mxu2 %vm804_vm5, %v5133_v38 }
0x22ea   : > { %3923 = vmatpush.xpose.msk.msra.mxu2 %vm804_vm5, %v2819_v32 }
0x22ed   : > { %v2817_v39 = vpop.permute.xlu1 %2816 }
0x22f1   : > { %3924 = vmatmul.msk.f32.vlgmr.msra.gmra.mxu2 %vm804_vm5, %v2817_v39 }
0x236c   : > { %v2752_v40 = vpop.f32.mrf.mxu2 }
0x236d   : > { %v2753_v44 = vadd.f32 %v5147_v42, %v2752_v40 }
0x236f   : > { %v2755_v35 = vsel %vm804_vm5, %v2753_v44, -inf }
0x2370   : > { %2756 = vmax.xlane.f32.xlu1 %v2755_v35 }
0x2374   : > { %v2841_v46 = vpop.f32.mrf.mxu2 }
0x2375   : > { %v2842_v47 = vadd.f32 %v5147_v42, %v2841_v46 }
0x2377   : > { %v2844_v48 = vsel %vm804_vm5, %v2842_v47, -inf }
0x2378   : > { %2845 = vmax.xlane.f32.xlu2 %v2844_v48 }
0x2389   : > { %2855 = vrot.lane.b32.xlu1 %v5133_v38, %s5454_s13 }
0x2390   : > { %2907 = vrot.lane.b32.xlu2 %v5133_v38, %s5447_s25 }
0x2391   : > { %2994 = vrot.lane.b32.xlu1 %v5133_v38, %s5446_s24 }
0x23e3   : > { %v2757_v50 = vpop.xlane.xlu1 %2756 }
0x23e4   : > { %v2758_v51 = vsub.f32 %v2753_v44, %v2757_v50 }
0x23e6   : > { %v2759_v52 = vmul.f32 1.442695, %v2758_v51  ;;  %v3917_v51 = vld [vmem:[%s5363_s6 + $0x58] sm:$0xff] }
0x23e8   : > { %4183 = vpow2.f32 %v2759_v52 }
0x23eb   : > { %v2846_v53 = vpop.xlane.xlu2 %2845 }
0x23ec   : > { %v2847_v54 = vsub.f32 %v2842_v47, %v2846_v53 }
0x23ee   : > { %v4184_v55 = vpop.eup %4183  ;;  %v2848_v56 = vmul.f32 1.442695, %v2847_v54 }
0x23ef   : > { %v2761_v57 = vsel %vm804_vm5, %v4184_v55, 0.0 }
0x23f0   : > { %4185 = vpow2.f32 %v2848_v56  ;;  %2762 = vadd.xlane.f32.xlu0 %v2761_v57 }
0x23f3   : > { %v2908_v58 = vpop.permute.xlu2 %2907 }
0x23f4   : > { %3927 = vmatpush.xpose.msk.msra.mxu0 %vm804_vm5, %v2908_v58 }
0x23f6   : > { %v4186_v45 = vpop.eup %4185 }
0x23f7   : > { %v2850_v59 = vsel %vm804_vm5, %v4186_v45, 0.0 }
0x23f8   : > { %2851 = vadd.xlane.f32.xlu0 %v2850_v59 }
0x23fb   : > { %v2856_v4 = vpop.permute.xlu1 %2855 }
0x2403   : > { %v2995_v17 = vpop.permute.xlu1 %2994 }
0x240c   : > { %2766 = vrot.lane.b32.xlu0 %v5133_v38, %s5445_s22 }
0x2414   : > { %2905 = vrot.lane.b32.xlu0 %v5133_v38, %s5444_s27 }
0x241c   : > { %2996 = vrot.lane.b32.xlu0 %v5133_v38, %s5452_s16 }
0x2463   : > { %v2763_v61 = vpop.xlane.xlu0 %2762 }
0x2464   : > { %4187 = vrcp.f32 %v2763_v61 }
0x246a   : > { %v4188_v63 = vpop.eup %4187 }
0x246b   : > { %v2852_v62 = vpop.xlane.xlu0 %2851  ;;  %v2765_v2 = vmul.f32 %v4188_v63, %v4184_v55  ;;  %v3938_v63 = vld [vmem:[%s5365_s8 + $0x58] sm:$0xff] }
0x246c   : > { %4189 = vrcp.f32 %v2852_v62 }
0x2472   : > { %v4190_v5 = vpop.eup %4189 }
0x2473   : > { %v2854_v6 = vmul.f32 %v4190_v5, %v4186_v45 }
0x247e   : > { %v2767_v3 = vpop.permute.xlu0 %2766 }
0x247f   : > { %2787 = vmatpush.msra.mxu3 %v2767_v3  ;;  %v3936_v3 = vld [vmem:[%s5365_s8 + $0x48] sm:$0xff] }
0x2480   : > { %3921 = vmatmul.msk.f32.vlgmr.msra.gmra.mxu3 %vm804_vm5, %v2765_v2  ;;  %v3937_v2 = vld [vmem:[%s5365_s8 + $0x50] sm:$0xff] }
0x2481   : > { %2876 = vmatpush.msrb.mxu3 %v2856_v4  ;;  %v3935_v4 = vld [vmem:[%s5365_s8 + $0x40] sm:$0xff] }
0x2486   : > { %v2906_v7 = vpop.permute.xlu0 %2905 }
0x2488   : > { %3925 = vmatmul.msk.f32.vlgmr.msrb.gmra.mxu3 %vm804_vm5, %v2854_v6 }
0x248e   : > { %v2997_v9 = vpop.permute.xlu0 %2996 }
0x248f   : > { %3931 = vmatpush.xpose.msk.msra.mxu1 %vm804_vm5, %v2997_v9 }
0x2503   : > { %v2789_v10 = vpop.f32.mrf.mxu3 }
0x2504   : > { %3922 = vmatmul.msk.f32.vlgmr.msrb.gmra.mxu0 %vm804_vm5, %v2789_v10 }
0x250b   : > { %v2878_v12 = vpop.f32.mrf.mxu3 }
0x250c   : > { %3926 = vmatmul.msk.f32.vlgmr.msrb.gmra.mxu1 %vm804_vm5, %v2878_v12  ;;  %3928 = vmatmul.msk.f32.vlgmr.msra.gmra.mxu0 %vm804_vm5, %v2906_v7 }
0x250d   : > { %3160 = vmatpush.msrb.mxu1 %v3142_v11 }
0x250f   : > { %3161 = vmatpush.msrb.mxu1 %v3141_v13 }
0x2511   : > { %3162 = vmatpush.msrb.mxu1 %v3140_v15 }
0x2513   : > { %3163 = vmatpush.msrb.mxu1 %v3139_v16 }
0x2514   : > { %3932 = vmatmul.msk.f32.vlgmr.msra.gmra.mxu1 %vm804_vm5, %v2995_v17 }
0x251c   : > { %3942 = vmatmul.msk.f32.vlgmr.msrb.gmra.mxu1 %vm709_vm0, %v4804_v24 }
0x2581   : > { %v2812_v18 = vpop.f32.mrf.mxu0 }
0x2582   : > { %v2815_v33 = vadd.f32 %v2812_v18, %v2727_v20  ;;  %v4097_v18 = vld [vmem:[%s5366_s9 + $0x2] ss:$0 sm:$0xff] }
0x2589   : > { %v2901_v21 = vpop.f32.mrf.mxu1  ;;  %v2930_v22 = vpop.f32.mrf.mxu0 }
0x258a   : > { %v2904_v43 = vadd.f32 %v2901_v21, %v2815_v33  ;;  %v2931_v23 = vadd.f32 %v5147_v42, %v2930_v22  ;;  %v5245_v22 = vld [vmem:[%s4828_s28] sm:$0xff]  ;;  %s3971_s28 = sshll.u32 %s4584_s0, 3 }
0x258c   : > { %v2933_v25 = vsel %vm804_vm5, %v2931_v23, -inf }
0x258d   : > { %2934 = vmax.xlane.f32.xlu2 %v2933_v25 }
0x2591   : > { %v3019_v26 = vpop.f32.mrf.mxu1 }
0x2592   : > { %v3020_v0 = vadd.f32 %v5147_v42, %v3019_v26 }
0x2594   : > { %v3022_v24 = vsel %vm804_vm5, %v3020_v0, -inf }
0x2595   : > { %3023 = vmax.xlane.f32.xlu0 %v3022_v24 }
0x2599   : > { %v3165_v27 = vpop.f32.mrf.mxu1 }
0x259a   : > { %v5196_v41 = vadd.f32 %v4096_v14, %v3165_v27 }
0x25a9   : > { %2944 = vrot.lane.b32.xlu0 %v5133_v38, %s5449_s21  ;;  %s3804_s21 = sshll.u32 %s686_s17, 3 }
0x25b1   : > { %3268 = vrot.lane.b32.xlu0 %v5196_v41, %s5453_s30 }
0x2600   : > { %v2935_v28 = vpop.xlane.xlu2 %2934 }
0x2601   : > { %v2936_v30 = vsub.f32 %v2931_v23, %v2935_v28 }
0x2603   : > { %v2937_v31 = vmul.f32 1.442695, %v2936_v30 }
0x2605   : > { %4191 = vpow2.f32 %v2937_v31  ;;  %v3169_v31 = vld [vmem:[#allocation5 + $0x40] sm:$0xff] }
0x2608   : > { %v3024_v34 = vpop.xlane.xlu0 %3023 }
0x2609   : > { %v3025_v36 = vsub.f32 %v3020_v0, %v3024_v34 }
0x260b   : > { %v4192_v29 = vpop.eup %4191  ;;  %v3026_v37 = vmul.f32 1.442695, %v3025_v36 }
0x260c   : > { %v2939_v19 = vsel %vm804_vm5, %v4192_v29, 0.0 }
0x260d   : > { %4193 = vpow2.f32 %v3026_v37  ;;  %2940 = vadd.xlane.f32.xlu1 %v2939_v19 }
0x2613   : > { %v4194_v32 = vpop.eup %4193 }
0x2614   : > { %v3028_v39 = vsel %vm804_vm5, %v4194_v32, 0.0 }
0x2615   : > { %3029 = vadd.xlane.f32.xlu2 %v3028_v39 }
0x261b   : > { %v2945_v40 = vpop.permute.xlu0 %2944 }
0x261c   : > { %2965 = vmatpush.msrb.mxu2 %v2945_v40 }
0x261e   : > { %3077 = vmatpush.msra.mxu2 %v3917_v51 }
0x2623   : > { %v3269_v42 = vpop.permute.xlu0 %3268 }
0x2624   : > { %3948 = vmatpush.xpose.msk.msra.mxu1 %vm804_vm5, %v3269_v42 }
0x2626   : > { %3033 = vrot.lane.b32.xlu1 %v5133_v38, %s5448_s18  ;;  %v3916_v38 = vld [vmem:[%s5363_s6 + $0x50] sm:$0xff]  ;;  %s3630_s18 = scalar_lea.sflag [#allocation4], %s686_s17 }
0x2627   : > { %2988 = vmatpush.msra.mxu3 %v3916_v38 }
0x2629   : > { %3130 = vmatpush.msrb.mxu3 %v3938_v63 }
0x262b   : > { %3131 = vmatpush.msrb.mxu3 %v3937_v2 }
0x262d   : > { %3132 = vmatpush.msrb.mxu3 %v3936_v3 }
0x262f   : > { %3133 = vmatpush.msrb.mxu3 %v3935_v4 }
0x2680   : > { %v2941_v44 = vpop.xlane.xlu1 %2940 }
0x2681   : > { %4195 = vrcp.f32 %v2941_v44 }
0x2687   : > { %v4196_v35 = vpop.eup %4195 }
0x2688   : > { %v2943_v46 = vmul.f32 %v4196_v35, %v4192_v29  ;;  %v3030_v47 = vpop.xlane.xlu2 %3029 }
0x2689   : > { %4197 = vrcp.f32 %v3030_v47 }
0x268a   : > { %3929 = vmatmul.msk.f32.vlgmr.msrb.gmra.mxu2 %vm804_vm5, %v2943_v46 }
0x268f   : > { %v4198_v48 = vpop.eup %4197 }
0x2690   : > { %v3032_v49 = vmul.f32 %v4198_v48, %v4194_v32  ;;  %v3170_v32 = vld [vmem:[#allocation5 + $0x48] sm:$0xff] }
0x2698   : > { %v3034_v50 = vpop.permute.xlu1 %3033 }
0x2699   : > { %3054 = vmatpush.msrb.mxu0 %v3034_v50 }
0x269a   : > { %3933 = vmatmul.msk.f32.vlgmr.msrb.gmra.mxu0 %vm804_vm5, %v3032_v49 }
0x269b   : > { %3944 = vmatpush.xpose.msk.msra.mxu0 %vm804_vm5, %v5196_v41 }
0x270d   : > { %v2967_v52 = vpop.f32.mrf.mxu2 }
0x270e   : > { %3930 = vmatmul.msk.f32.vlgmr.msra.gmra.mxu3 %vm804_vm5, %v2967_v52 }
0x270f   : > { %3260 = vmatpush.msra.mxu3 %v3169_v31 }
0x2717   : > { %v3056_v53 = vpop.f32.mrf.mxu0 }
0x2718   : > { %3934 = vmatmul.msk.f32.vlgmr.msra.gmra.mxu2 %vm804_vm5, %v3056_v53 }
0x2791   : > { %v2990_v54 = vpop.f32.mrf.mxu3 }
0x2792   : > { %v2993_v55 = vadd.f32 %v2990_v54, %v2904_v43 }
0x279b   : > { %v3079_v56 = vpop.f32.mrf.mxu2 }
0x279c   : > { %v5217_v57 = vadd.f32 %v3079_v56, %v2993_v55 }
0x279e   : > { %v3083_v58 = vsel %vm709_vm0, %v5217_v57, 0.0 }
0x279f   : > { %3084 = vadd.xlane.f32.xlu2 %v3083_v58 }
0x2812   : > { %v3085_v45 = vpop.xlane.xlu2 %3084 }
0x2813   : > { %v3086_v59 = vmul.f32 %v3085_v45, %v4675_v8  ;;  %v4098_v45 = vld [vmem:[%s5442_s15 + $0x2] ss:$0 sm:$0xff] }
0x2815   : > { %v3087_v60 = vsub.f32 %v5217_v57, %v3086_v59  ;;  %v3178_v59 = vadd.f32 %v4098_v45, %v5217_v57 }
0x2817   : > { %v3088_v61 = vmul.f32 %v3087_v60, %v3087_v60 }
0x2819   : > { %v3089_v62 = vsel %vm709_vm0, %v3088_v61, 0.0 }
0x281a   : > { %3090 = vadd.xlane.f32.xlu2 %v3089_v62 }
0x288d   : > { %v3091_v5 = vpop.xlane.xlu2 %3090 }
0x288e   : > { %v3092_v6 = vmul.f32 %v3091_v5, %v4675_v8 }
0x2890   : > { %v3093_v7 = vadd.f32 1e-05, %v3092_v6 }
0x2892   : > { %4199 = vrsqrt.f32 %v3093_v7  ;;  %vm3100_vm1 = vweird.f32 %v3093_v7 }
0x2898   : > { %v4200_v9 = vpop.eup %4199 }
0x2899   : > { %v3095_v10 = vmul.f32 %v4200_v9, %v3093_v7  ;;  %vm3101_vm14 = vweird.f32 %v4200_v9 }
0x289a   : > { %vm3102_vm2 = vmor %vm3100_vm1, %vm3101_vm14 }
0x289b   : > { %v3096_v11 = vmul.f32 %v4200_v9, %v3095_v10 }
0x289d   : > { %v3097_v12 = vmul.f32 0.5, %v3096_v11 }
0x289f   : > { %v3098_v13 = vsub.f32 1.5, %v3097_v12 }
0x28a1   : > { %v3099_v15 = vmul.f32 %v4200_v9, %v3098_v13 }
0x28a3   : > { %v3103_v16 = vsel %vm3102_vm2, %v4200_v9, %v3099_v15 }
0x28a4   : > { %v3104_v17 = vmul.f32 %v3103_v16, %v3087_v60 }
0x28a6   : > { %3940 = vmatmul.msk.f32.vlgmr.msrb.gmra.mxu3 %vm709_vm0, %v3104_v17 }
0x2929   : > { %v3135_v1 = vpop.f32.mrf.mxu3 }
0x292a   : > { %v3136_v20 = vadd.f32 %v4097_v18, %v3135_v1 }
0x292c   : > { %3266 = vrot.lane.b32.xlu2 %v3136_v20, %s5453_s30  ;;  %3945 = vmatmul.msk.f32.vlgmr.msra.gmra.mxu0 %vm804_vm5, %v3136_v20 }
0x2986   : > { %v3267_v33 = vpop.permute.xlu2 %3266 }
0x2987   : > { %3949 = vmatmul.msk.f32.vlgmr.msra.gmra.mxu1 %vm804_vm5, %v3267_v33 }
0x29a9   : > { %v3202_v21 = vpop.f32.mrf.mxu0 }
0x29aa   : > { %v3203_v43 = vadd.f32 %v5245_v22, %v3202_v21 }
0x29ac   : > { %v3205_v23 = vsel %vm804_vm5, %v3203_v43, -inf }
0x29ad   : > { %3206 = vmax.xlane.f32.xlu1 %v3205_v23 }
0x2a04   : > { %v3291_v25 = vpop.f32.mrf.mxu1 }
0x2a05   : > { %v3292_v26 = vadd.f32 %v5245_v22, %v3291_v25 }
0x2a07   : > { %v3294_v0 = vsel %vm804_vm5, %v3292_v26, -inf }
0x2a08   : > { %3295 = vmax.xlane.f32.xlu0 %v3294_v0 }
0x2a1c   : > { %3216 = vrot.lane.b32.xlu0 %v5196_v41, %s5450_s2 }
0x2a20   : > { %v3207_v24 = vpop.xlane.xlu1 %3206 }
0x2a21   : > { %v3208_v14 = vsub.f32 %v3203_v43, %v3207_v24  ;;  %v3172_v43 = vld [vmem:[#allocation5 + $0x58] sm:$0xff] }
0x2a23   : > { %v3209_v27 = vmul.f32 1.442695, %v3208_v14 }
0x2a24   : > { %3444 = vrot.lane.b32.xlu0 %v3136_v20, %s5446_s24 }
0x2a25   : > { %4201 = vpow2.f32 %v3209_v27 }
0x2a2b   : > { %v4202_v28 = vpop.eup %4201 }
0x2a2c   : > { %3357 = vrot.lane.b32.xlu0 %v5196_v41, %s5444_s27  ;;  %v3211_v30 = vsel %vm804_vm5, %v4202_v28, 0.0 }
0x2a2d   : > { %3212 = vadd.xlane.f32.xlu2 %v3211_v30 }
0x2a45   : > { %3446 = vrot.lane.b32.xlu2 %v5196_v41, %s5446_s24 }
0x2a7b   : > { %v3296_v34 = vpop.xlane.xlu0 %3295 }
0x2a7c   : > { %v3297_v36 = vsub.f32 %v3292_v26, %v3296_v34 }
0x2a7e   : > { %v3298_v29 = vmul.f32 1.442695, %v3297_v36  ;;  %v3559_v36 = vld [vmem:[#allocation7 + $0x58] sm:$0xff] }
0x2a80   : > { %4203 = vpow2.f32 %v3298_v29  ;;  %v3558_v29 = vld [vmem:[#allocation7 + $0x50] sm:$0xff] }
0x2a86   : > { %v4204_v37 = vpop.eup %4203 }
0x2a87   : > { %v3300_v19 = vsel %vm804_vm5, %v4204_v37, 0.0 }
0x2a88   : > { %3301 = vadd.xlane.f32.xlu1 %v3300_v19  ;;  %v3556_v19 = vld [vmem:[#allocation7 + $0x40] sm:$0xff] }
0x2a8e   : > { %v3217_v39 = vpop.permute.xlu0 %3216 }
0x2a8f   : > { %3237 = vmatpush.msrb.mxu2 %v3217_v39  ;;  %v3967_v39 = vld [vmem:[%s5443_s19 + $0xb0] sm:$0xff] }
0x2a91   : > { %3349 = vmatpush.msra.mxu2 %v3170_v32  ;;  %v3968_v32 = vld [vmem:[%s5443_s19 + $0xb8] sm:$0xff] }
0x2a96   : > { %v3445_v40 = vpop.permute.xlu0 %3444 }
0x2a9e   : > { %v3358_v42 = vpop.permute.xlu0 %3357 }
0x2a9f   : > { %3952 = vmatpush.xpose.msk.msrb.mxu3 %vm804_vm5, %v3358_v42  ;;  %v3965_v42 = vld [vmem:[%s5443_s19 + $0xa0] sm:$0xff] }
0x2aa0   : > { %v3213_v44 = vpop.xlane.xlu2 %3212 }
0x2aa1   : > { %4205 = vrcp.f32 %v3213_v44  ;;  %3305 = vrot.lane.b32.xlu1 %v5196_v41, %s5451_s1  ;;  %v3964_v44 = vld [vmem:[%s5443_s19 + $0x98] sm:$0xff] }
0x2aa7   : > { %v4206_v35 = vpop.eup %4205 }
0x2aa8   : > { %v3215_v46 = vmul.f32 %v4206_v35, %v4202_v28  ;;  %v3447_v47 = vpop.permute.xlu2 %3446 }
0x2aa9   : > { %3355 = vrot.lane.b32.xlu1 %v3136_v20, %s5444_s27 }
0x2aaa   : > { %3946 = vmatmul.msk.f32.vlgmr.msrb.gmra.mxu2 %vm804_vm5, %v3215_v46 }
0x2aab   : > { %3956 = vmatpush.xpose.msk.msrb.mxu2 %vm804_vm5, %v3447_v47 }
0x2afb   : > { %v3302_v48 = vpop.xlane.xlu1 %3301 }
0x2afc   : > { %4207 = vrcp.f32 %v3302_v48 }
0x2b02   : > { %v4208_v49 = vpop.eup %4207 }
0x2b03   : > { %v3304_v50 = vmul.f32 %v4208_v49, %v4204_v37  ;;  %v3557_v37 = vld [vmem:[#allocation7 + $0x48] sm:$0xff] }
0x2b13   : > { %v3306_v38 = vpop.permute.xlu1 %3305 }
0x2b14   : > { %3326 = vmatpush.msrb.mxu0 %v3306_v38 }
0x2b15   : > { %3950 = vmatmul.msk.f32.vlgmr.msrb.gmra.mxu0 %vm804_vm5, %v3304_v50 }
0x2b1b   : > { %v3356_v52 = vpop.permute.xlu1 %3355 }
0x2b2d   : > { %v3239_v51 = vpop.f32.mrf.mxu2 }
0x2b2e   : > { %3947 = vmatmul.msk.f32.vlgmr.msra.gmra.mxu3 %vm804_vm5, %v3239_v51 }
0x2b36   : > { %3953 = vmatmul.msk.f32.vlgmr.msrb.gmra.mxu3 %vm804_vm5, %v3356_v52 }
0x2b92   : > { %v3328_v53 = vpop.f32.mrf.mxu0 }
0x2b93   : > { %3951 = vmatmul.msk.f32.vlgmr.msra.gmra.mxu2 %vm804_vm5, %v3328_v53 }
0x2b94   : > { %3609 = vmatpush.msra.mxu2 %v3968_v32 }
0x2b96   : > { %3610 = vmatpush.msra.mxu2 %v3967_v39 }
0x2b9b   : > { %3957 = vmatmul.msk.f32.vlgmr.msrb.gmra.mxu2 %vm804_vm5, %v3445_v40  ;;  %v3966_v40 = vld [vmem:[%s5443_s19 + $0xa8] sm:$0xff] }
0x2b9c   : > { %3611 = vmatpush.msra.mxu2 %v3966_v40 }
0x2b9e   : > { %3612 = vmatpush.msra.mxu2 %v3965_v42 }
0x2ba0   : > { %3613 = vmatpush.msra.mxu2 %v3964_v44 }
0x2bb1   : > { %v3262_v54 = vpop.f32.mrf.mxu3 }
0x2bb2   : > { %v3265_v60 = vadd.f32 %v3262_v54, %v3178_v59 }
0x2bb9   : > { %v3380_v55 = vpop.f32.mrf.mxu3 }
0x2bba   : > { %v3381_v56 = vadd.f32 %v5245_v22, %v3380_v55  ;;  %v3962_v55 = vld [vmem:[%s5443_s19 + $0x88] sm:$0xff] }
0x2bbc   : > { %v3383_v58 = vsel %vm804_vm5, %v3381_v56, -inf }
0x2bbd   : > { %3384 = vmax.xlane.f32.xlu1 %v3383_v58  ;;  %v4099_v58 = vld [vmem:[#allocation8 + $0x2] ss:$0 sm:$0xff] }
0x2bd6   : > { %3483 = vrot.lane.b32.xlu1 %v5196_v41, %s5452_s16  ;;  %s688_s16 = scalar_lea.vmem [#allocation11], %s3804_s21 }
0x2bd7   : > { %s3642_s30 = sshll.u32 %s688_s16, 4  ;;  %s3643_s30 = int_to_ptr.vmem [resolvable:$true] %s3642_s30 }
0x2c16   : > { %v3351_v61 = vpop.f32.mrf.mxu2 }
0x2c17   : > { %v3354_v62 = vadd.f32 %v3351_v61, %v3265_v60  ;;  %v4100_v61 = vld [vmem:[#allocation10 + $0x2] ss:$0 sm:$0xff] }
0x2c1e   : > { %v3469_v63 = vpop.f32.mrf.mxu2 }
0x2c1f   : > { %v3470_v2 = vadd.f32 %v5245_v22, %v3469_v63  ;;  %v3171_v22 = vld [vmem:[#allocation5 + $0x50] sm:$0xff] }
0x2c20   : > { %3438 = vmatpush.msra.mxu0 %v3171_v22 }
0x2c21   : > { %v3472_v3 = vsel %vm804_vm5, %v3470_v2, -inf }
0x2c22   : > { %3473 = vmax.xlane.f32.xlu0 %v3472_v3  ;;  %3580 = vmatpush.msrb.mxu0 %v3559_v36 }
0x2c24   : > { %3581 = vmatpush.msrb.mxu0 %v3558_v29 }
0x2c26   : > { %3582 = vmatpush.msrb.mxu0 %v3557_v37 }
0x2c28   : > { %3583 = vmatpush.msrb.mxu0 %v3556_v19 }
0x2c30   : > { %v3385_v4 = vpop.xlane.xlu1 %3384 }
0x2c31   : > { %v3386_v5 = vsub.f32 %v3381_v56, %v3385_v4  ;;  %v3961_v56 = vld [vmem:[%s5443_s19 + $0x80] sm:$0xff] }
0x2c33   : > { %v3387_v6 = vmul.f32 1.442695, %v3386_v5 }
0x2c35   : > { %4209 = vpow2.f32 %v3387_v6 }
0x2c3b   : > { %v4210_v7 = vpop.eup %4209 }
0x2c3c   : > { %v3389_v9 = vsel %vm804_vm5, %v4210_v7, 0.0 }
0x2c3d   : > { %3390 = vadd.xlane.f32.xlu0 %v3389_v9 }
0x2c48   : > { %v3484_v10 = vpop.permute.xlu1 %3483 }
0x2c49   : > { %3504 = vmatpush.msra.mxu3 %v3484_v10 }
0x2c95   : > { %v3474_v57 = vpop.xlane.xlu0 %3473 }
0x2c96   : > { %v3475_v11 = vsub.f32 %v3470_v2, %v3474_v57 }
0x2c98   : > { %v3476_v12 = vmul.f32 1.442695, %v3475_v11 }
0x2c9a   : > { %4211 = vpow2.f32 %v3476_v12 }
0x2ca0   : > { %v4212_v13 = vpop.eup %4211 }
0x2ca1   : > { %v3478_v15 = vsel %vm804_vm5, %v4212_v13, 0.0 }
0x2ca2   : > { %3479 = vadd.xlane.f32.xlu2 %v3478_v15 }
0x2cb0   : > { %v3391_v16 = vpop.xlane.xlu0 %3390 }
0x2cb1   : > { %4213 = vrcp.f32 %v3391_v16 }
0x2cb7   : > { %v4214_v18 = vpop.eup %4213 }
0x2cb8   : > { %v3393_v20 = vmul.f32 %v4214_v18, %v4210_v7 }
0x2cba   : > { %3394 = vrot.lane.b32.xlu2 %v5196_v41, %s5447_s25  ;;  %s5456_s25 = sld [smem:[#allocation35_spill]] }
0x2cc0   : > { %s3640_s2 = scalar_lea.hbm %s5456_s25, %s3971_s28  ;;  %s4391_s23 = scalar_lea.hbm %s5456_s25, 16 }
0x2cc1   : > { %s3644_s20 = sshll.u32 %s3640_s2, 4  ;;  %s3645_s20 = int_to_ptr.hbm [resolvable:$true] %s3644_s20 }
0x2cc2   : > { %s4385_s26 = sshra.s32 %s3645_s20, 4  ;;  %s4386_s26 = int_to_ptr.hbm [resolvable:$true] %s4385_s26 }
0x2cc3   : > { %s4387_s0 = scalar_lea.hbm %s4386_s26, 8  ;;  %p4392_p3 = scmp.lt.s32.totalorder %s4386_s26, %s5456_s25 }
0x2cc4   : > { %p4388_p0 = scmp.ne.s32.totalorder %s4386_s26, %s4387_s0  ;;  %p4393_p4 = scmp.lt.s32.totalorder %s4391_s23, %s4387_s0 }
0x2cc6   : > { %p4389_p1 = pnand %p4388_p0, %p4601_p5  ;;  %p4394_p7 = por %p4393_p4, %p4392_p3 }
0x2cc8   : > { %p4390_p2 = pneg %p4389_p1 }
0x2cca   : > { %p4395_p8 = pnand %p4394_p7, %p4390_p2 }
0x2d15   : > { %v3480_v17 = vpop.xlane.xlu2 %3479 }
0x2d16   : > { %4215 = vrcp.f32 %v3480_v17 }
0x2d1c   : > { %v4216_v1 = vpop.eup %4215 }
0x2d1d   : > { %v3482_v33 = vmul.f32 %v4216_v1, %v4212_v13  ;;  %v3395_v21 = vpop.permute.xlu2 %3394 }
0x2d1e   : > { %3415 = vmatpush.msrb.mxu1 %v3395_v21 }
0x2d1f   : > { %3954 = vmatmul.msk.f32.vlgmr.msrb.gmra.mxu1 %vm804_vm5, %v3393_v20  ;;  %3958 = vmatmul.msk.f32.vlgmr.msra.gmra.mxu3 %vm804_vm5, %v3482_v33 }
0x2d20   : > { %3527 = vmatpush.msra.mxu1 %v3172_v43 }
0x2d9c   : > { %v3417_v23 = vpop.f32.mrf.mxu1 }
0x2d9d   : > { %3955 = vmatmul.msk.f32.vlgmr.msra.gmra.mxu0 %vm804_vm5, %v3417_v23 }
0x2da2   : > { %v3506_v41 = vpop.f32.mrf.mxu3 }
0x2da3   : > { %3959 = vmatmul.msk.f32.vlgmr.msra.gmra.mxu1 %vm804_vm5, %v3506_v41 }
0x2e1a   : > { %v3440_v25 = vpop.f32.mrf.mxu0 }
0x2e1b   : > { %v3443_v26 = vadd.f32 %v3440_v25, %v3354_v62 }
0x2e20   : > { %v3529_v0 = vpop.f32.mrf.mxu1 }
0x2e21   : > { %v5289_v24 = vadd.f32 %v3529_v0, %v3443_v26 }
0x2e23   : > { %v3533_v14 = vsel %vm709_vm0, %v5289_v24, 0.0 }
0x2e24   : > { %3534 = vadd.xlane.f32.xlu0 %v3533_v14 }
0x2e97   : > { %v3535_v27 = vpop.xlane.xlu0 %3534 }
0x2e98   : > { %v3536_v28 = vmul.f32 %v3535_v27, %v4675_v8 }
0x2e9a   : > { %v3537_v30 = vsub.f32 %v5289_v24, %v3536_v28 }
0x2e9c   : > { %v3538_v31 = vmul.f32 %v3537_v30, %v3537_v30 }
0x2e9e   : > { %v3539_v34 = vsel %vm709_vm0, %v3538_v31, 0.0 }
0x2e9f   : > { %3540 = vadd.xlane.f32.xlu0 %v3539_v34 }
0x2f12   : > { %v3541_v35 = vpop.xlane.xlu0 %3540 }
0x2f13   : > { %v3542_v46 = vmul.f32 %v3541_v35, %v4675_v8  ;;  %v3963_v8 = vld [vmem:[%s5443_s19 + $0x90] sm:$0xff] }
0x2f14   : > { %3614 = vmatpush.msra.mxu2 %v3963_v8 }
0x2f15   : > { %v3543_v47 = vadd.f32 1e-05, %v3542_v46 }
0x2f16   : > { %3615 = vmatpush.msra.mxu2 %v3962_v55 }
0x2f17   : > { %4217 = vrsqrt.f32 %v3543_v47  ;;  %vm3550_vm3 = vweird.f32 %v3543_v47 }
0x2f18   : > { %3616 = vmatpush.msra.mxu2 %v3961_v56 }
0x2f1d   : > { %v4218_v48 = vpop.eup %4217 }
0x2f1e   : > { %v3545_v49 = vmul.f32 %v4218_v48, %v3543_v47  ;;  %vm3551_vm5 = vweird.f32 %v4218_v48 }
0x2f1f   : > { %vm3552_vm4 = vmor %vm3550_vm3, %vm3551_vm5 }
0x2f20   : > { %v3546_v50 = vmul.f32 %v4218_v48, %v3545_v49 }
0x2f22   : > { %v3547_v38 = vmul.f32 0.5, %v3546_v50 }
0x2f24   : > { %v3548_v51 = vsub.f32 1.5, %v3547_v38 }
0x2f26   : > { %v3549_v52 = vmul.f32 %v4218_v48, %v3548_v51 }
0x2f28   : > { %v3553_v53 = vsel %vm3552_vm4, %v4218_v48, %v3549_v52 }
0x2f29   : > { %v3554_v54 = vmul.f32 %v3553_v53, %v3537_v30 }
0x2f2b   : > { %3960 = vmatmul.msk.f32.vlgmr.msrb.gmra.mxu0 %vm709_vm0, %v3554_v54 }
0x2fa8   : > { %v3585_v45 = vpop.f32.mrf.mxu0 }
0x2fa9   : > { %v3586_v59 = vadd.f32 %v4099_v58, %v3585_v45 }
0x2fab   : > { %v3588_v60 = vmax.f32 %v3586_v59, 0.0 }
0x2fad   : > { %3969 = vmatmul.msk.f32.vlgmr.msra.gmra.mxu2 %vm1666_vm15, %v3588_v60 }
0x3030   : > { %v3618_v62 = vpop.f32.mrf.mxu2 }
0x3031   : > { %v3621_v63 = vadd.f32 %v3618_v62, %v5289_v24 }
0x3033   : > { %v3627_v2 = vadd.f32 %v4100_v61, %v3621_v63 }
0x3035   : > { %3628 = vst.msk [vmem:[%s688_s16] sm:$0xff] %vm709_vm0, %v3627_v2 }
0x3036   : > { %4398 = shalt.err (!%p4395_p8)
}
0x3037   : > { %3994 = dma.vmem_to_hbm [thread:$0]  (%p4601_p5), %s3643_s30, 128, %s3645_s20, %s3630_s18  }
0x3038 PF: > { %s5458_s22 = sld [smem:[#allocation19_spill]] }
0x3039   : > { %s5459_s10 = sld [smem:[#allocation16_spill]] }
0x303e   : > { %p4026_p9 = scmp.ge.s32.totalorder %s5458_s22, 2 }
0x303f   : > { %s3656_s17 = sand.u32 1, %s5459_s10  }
0x3040   : > { %p4013_p10 = pnand %p4026_p9, %p4605_p6  ;;  %s3657_s21 = scalar_lea.sflag [#allocation4], %s3656_s17 }
0x3042   : > { %p4014_p11 = pneg %p4013_p10 }
0x3044   : > { %4428 = dma.done.wait (%p4014_p11), %s3657_s21, 128  }
0x3045   : > { %4430 = vsyncadd (%p4014_p11), %s3657_s21, 4294967168  ;;  %s5461_s30 = sld [smem:[#allocation20_spill]] }
0x3046   : > { %s5462_s27 = sld [smem:[#allocation17_spill]] }
0x3047   : > { %s5463_s28 = sld [smem:[#allocation18_spill]] }
0x3048   : > { %s5464_s29 = sld [smem:[#allocation21_spill]] }
0x304b   : > { %p31_p12 = scmp.ge.s32.totalorder %s5461_s30, 4  }
0x304d   :  { %33 = sbr.rel (!%p31_p12) target bundleno = 19 (0x13), region = 185 }
0x3052   :  { %3663 = vsyncpa [#allocation3], 1 }
0x3053   :  { %3665 = vsyncpa [#allocation3 + $0x1], 1 }
0x3054   :  { %3666 = vsyncpa [#allocation6], 1 }
0x3055   :  { %3667 = vsyncpa [#allocation9], 1 }
0x3056   :  { %3668 = vsyncpa [#allocation4], 1 }
0x3057   :  { %3670 = vsyncpa [#allocation4 + $0x1], 1 }

</bundles_post_ra>
